<compile_context>
chip_gen: v7x
topology: tpu7x:2x2x1
jax: 0.10.0
libtpu: 0.0.40
codegen_flags: <defaults>
</compile_context>

<pallas_src>
import jax
import jax.numpy as jnp
from jax import lax
from jax.experimental import pallas as pl
from jax.experimental.pallas import tpu as pltpu

# ----- module hyper-parameters (consistent with the nn.Module) -----
NUM_CAPS_IN = 8
DIM_CAPS_IN = 16
NUM_CAPS_OUT = 4
DIM_CAPS_OUT = 32
NUM_ITERATIONS = 3  # forward() hard-codes 3 routing passes
EPS = 1e-7

IN_FLAT = NUM_CAPS_IN * DIM_CAPS_IN        # 128   index = i*D_in + k
OUT_FLAT = NUM_CAPS_OUT * DIM_CAPS_OUT     # 128   index = j*D_out + d
U_FLAT = NUM_CAPS_IN * OUT_FLAT            # 1024  index = i*128 + j*32 + d
B_FLAT = NUM_CAPS_IN * NUM_CAPS_OUT        # 32    index = i*N_out + j

# Batch rows per grid step.  256 keeps per-step overhead negligible while
# letting batches >= 16 rows produce >= 2 grid steps (v7x has 2 TensorCores).
TB_MAX = 256

# Set to jnp.bfloat16 on v6e/v7x for native-rate MXU matmuls (masks are exactly
# representable; accumulation stays f32 via preferred_element_type).  Left at
# f32 here so the self-check below validates against the exact f32 reference.
MATMUL_DTYPE = jnp.float32


def capsule_kernel(x_ref, wbd_ref, g4_ref, ce_ref, g32_ref, bred_ref, o_ref):
    # x_ref:    (TB, 128)    flattened inputs (i*D_in + k)
    # wbd_ref:  (128, 1024)  block-diagonal W
    # g4_ref:   (32, 32)     per-input-capsule group-sum mask (softmax denom)
    # ce_ref:   (32, 1024)   expand c[i,j] over the D_out lanes
    # g32_ref:  (128, 128)   per-output-capsule |s|^2 broadcast mask
    # bred_ref: (1024, 32)   reduce over D_out for the b-logit update
    # o_ref:    (TB, 128)    flattened output (j*D_out + d)
    f32 = jnp.float32
    x = x_ref[...]

    # u_hat[b, i*128 + j*32 + d] = sum_k W[i, j, d, k] * x[b, i*16 + k]   (MXU)
    u = jnp.dot(x.astype(MATMUL_DTYPE), wbd_ref[...],
                preferred_element_type=f32)                       # (TB, 1024)

    # 128-lane-aligned views per input capsule i (vreg-aligned, no relayout).
    u_i = [u[:, i * OUT_FLAT:(i + 1) * OUT_FLAT] for i in range(NUM_CAPS_IN)]
    bred = bred_ref[...]
    bred_i = [bred[i * OUT_FLAT:(i + 1) * OUT_FLAT, :] for i in range(NUM_CAPS_IN)]
    g32 = g32_ref[...]

    def squash(s):
        # per-output-capsule |s|^2, broadcast back over its 32 D_out lanes (MXU)
        mag_sq = jnp.dot((s * s).astype(MATMUL_DTYPE), g32,
                         preferred_element_type=f32)              # (TB, 128)
        # |s|^2/(1+|s|^2) * s / sqrt(|s|^2 + eps): EUP reciprocal + rsqrt
        return (mag_sq * pl.reciprocal(1.0 + mag_sq, approx=True)
                * s * lax.rsqrt(mag_sq + EPS))

    def b_delta(v):
        # delta_b[b, i*4+j] = sum_d u_hat[b,i,j,d] * v[b,j,d], computed per
        # 128-lane chunk so no (TB,1024) tiling of v is ever materialized.
        d = jnp.dot((u_i[0] * v).astype(MATMUL_DTYPE), bred_i[0],
                    preferred_element_type=f32)
        for i in range(1, NUM_CAPS_IN):
            d = d + jnp.dot((u_i[i] * v).astype(MATMUL_DTYPE), bred_i[i],
                            preferred_element_type=f32)
        return d                                                  # (TB, 32)

    # ---- routing iteration 0, peeled: b == 0  =>  c == 1/N_out exactly ----
    s = u_i[0]
    for i in range(1, NUM_CAPS_IN):
        s = s + u_i[i]
    s = s * (1.0 / NUM_CAPS_OUT)
    v = squash(s)
    b = b_delta(v)                     # b started at zero

    # ---- routing iterations 1 .. NUM_ITERATIONS-1 ----
    for it in range(1, NUM_ITERATIONS):
        # softmax over output capsules (groups of N_out lanes).  The per-row
        # max shift is constant within each group, so this is exactly the
        # reference per-group softmax.
        m = jnp.max(b, axis=-1, keepdims=True)
        e = jnp.exp(b - m)
        denom = jnp.dot(e.astype(MATMUL_DTYPE), g4_ref[...],
                        preferred_element_type=f32)               # group sums
        c = e * pl.reciprocal(denom, approx=True)                 # (TB, 32)

        # expand c[i,j] over the 32 D_out lanes (MXU), then
        # s = sum_i c_i * u_i via lane-aligned slice multiply/adds (VPU).
        c_full = jnp.dot(c.astype(MATMUL_DTYPE), ce_ref[...],
                         preferred_element_type=f32)              # (TB, 1024)
        s = c_full[:, 0:OUT_FLAT] * u_i[0]
        for i in range(1, NUM_CAPS_IN):
            s = s + c_full[:, i * OUT_FLAT:(i + 1) * OUT_FLAT] * u_i[i]

        v = squash(s)
        if it < NUM_ITERATIONS - 1:
            b = b + b_delta(v)

    o_ref[...] = v.astype(o_ref.dtype)


def _routing_constants(W):
    """Wrapper-side (one-time) packing of W and the constant 0/1 block masks."""
    f32 = jnp.float32
    w = W[0].astype(f32)                                    # (N_in, N_out, D_out, D_in)
    # W_bd[(i,k), (i, j*32+d)] = W[i, j, d, k]   (block-diagonal over i)
    wt = jnp.transpose(w, (0, 3, 1, 2)).reshape(NUM_CAPS_IN, DIM_CAPS_IN, OUT_FLAT)
    eye_i = jnp.eye(NUM_CAPS_IN, dtype=f32)
    wbd = (eye_i[:, None, :, None] * wt[:, :, None, :]).reshape(IN_FLAT, U_FLAT)

    g4 = jnp.kron(jnp.eye(NUM_CAPS_IN, dtype=f32),
                  jnp.ones((NUM_CAPS_OUT, NUM_CAPS_OUT), f32))            # (32, 32)
    ce = jnp.kron(jnp.eye(B_FLAT, dtype=f32),
                  jnp.ones((1, DIM_CAPS_OUT), f32))                       # (32, 1024)
    g32 = jnp.kron(jnp.eye(NUM_CAPS_OUT, dtype=f32),
                   jnp.ones((DIM_CAPS_OUT, DIM_CAPS_OUT), f32))           # (128, 128)
    bred = ce.T                                                           # (1024, 32)
    return tuple(a.astype(MATMUL_DTYPE) for a in (wbd, g4, ce, g32, bred))


def _choose_batch_tiling(B):
    """Sublane-aligned padded batch and tile size; >=2 grid steps when possible."""
    bp = max(8, ((B + 7) // 8) * 8)
    tb = min(TB_MAX, bp)
    # v7x has 2 TensorCores: a 1-step ("parallel",) grid leaves one idle.
    if bp > 8 and bp // tb < 2:
        tb = max(8, ((bp // 2 + 7) // 8) * 8)
    bp = ((bp + tb - 1) // tb) * tb
    return bp, tb


@jax.jit
def capsule_layer(x, W):
    """x: (B, N_in, D_in); W: (1, N_in, N_out, D_out, D_in)."""
    B = x.shape[0]
    x_flat = x.reshape(B, IN_FLAT).astype(jnp.float32)

    bp, tb = _choose_batch_tiling(B)
    if bp != B:
        x_flat = jnp.pad(x_flat, ((0, bp - B), (0, 0)))

    wbd, g4, ce, g32, bred = _routing_constants(W)

    def const_spec(arr):
        # Constant index_map: DMA'd once, stays resident across the batch grid.
        return pl.BlockSpec(arr.shape, lambda i: (0, 0))

    out = pl.pallas_call(
        capsule_kernel,
        out_shape=jax.ShapeDtypeStruct((bp, OUT_FLAT), jnp.float32),
        grid=(bp // tb,),
        in_specs=[
            pl.BlockSpec((tb, IN_FLAT), lambda i: (i, 0)),
            const_spec(wbd), const_spec(g4), const_spec(ce),
            const_spec(g32), const_spec(bred),
        ],
        out_specs=pl.BlockSpec((tb, OUT_FLAT), lambda i: (i, 0)),
        compiler_params=pltpu.CompilerParams(
            dimension_semantics=("parallel",),   # batch grid shards across v7x's 2 TCs
            vmem_limit_bytes=32 * 1024 * 1024,   # explicit for v5e's 16 MiB scoped default
        ),
    )(x_flat, wbd, g4, ce, g32, bred)

    return out[:B].reshape(B, NUM_CAPS_OUT, DIM_CAPS_OUT).astype(x.dtype)


def capsule_layer_ref(x, W):
    """Pure-JAX reference mirroring the PyTorch forward exactly (f32 elementwise)."""
    u_hat = jnp.sum(W[0][None, ...] * x[:, :, None, None, :], axis=-1)  # (B, N_in, N_out, D_out)
    b = jnp.zeros((x.shape[0], NUM_CAPS_IN, NUM_CAPS_OUT), jnp.float32)
    v = None
    for it in range(NUM_ITERATIONS):
        c = jax.nn.softmax(b, axis=2)[..., None]
        s = jnp.sum(c * u_hat, axis=1)
        mag_sq = jnp.sum(s * s, axis=-1, keepdims=True)
        v = mag_sq / (1.0 + mag_sq) * (s / jnp.sqrt(mag_sq + EPS))
        if it < NUM_ITERATIONS - 1:
            b = b + jnp.sum(u_hat * v[:, None, :, :], axis=-1)
    return v


if __name__ == "__main__":
    key = jax.random.PRNGKey(0)
    kx, kw = jax.random.split(key)

    B = 2
    x = jax.random.normal(kx, (B, NUM_CAPS_IN, DIM_CAPS_IN), dtype=jnp.float32)
    # deterministic stand-in for torch.randn(1, N_in, N_out, D_out, D_in)
    W = jax.random.normal(
        kw, (1, NUM_CAPS_IN, NUM_CAPS_OUT, DIM_CAPS_OUT, DIM_CAPS_IN), dtype=jnp.float32
    )

    out = jax.block_until_ready(capsule_layer(x, W))
    ref = capsule_layer_ref(x, W)

    assert out.shape == (B, NUM_CAPS_OUT, DIM_CAPS_OUT)
    # Typical observed error is ~1e-5..1e-3 (f32 MXU + EUP approx reciprocals);
    # the looser bound only guards against accumulation-order differences
    # across TPU generations.
    assert jnp.allclose(out, ref, atol=1e-2, rtol=1e-2), (
        f"max abs err {jnp.max(jnp.abs(out - ref))}"
    )

    print("KERNEL_OK")
</pallas_src>

<mosaic_0001>
module attributes {stable_mosaic.version = 11 : i64} {
  func.func @capsule_kernel(%arg0: i32, %arg1: memref<8x128xf32, #tpu.memory_space<vmem>>, %arg2: memref<128x1024xf32, #tpu.memory_space<vmem>>, %arg3: memref<32x32xf32, #tpu.memory_space<vmem>>, %arg4: memref<32x1024xf32, #tpu.memory_space<vmem>>, %arg5: memref<128x128xf32, #tpu.memory_space<vmem>>, %arg6: memref<1024x32xf32, #tpu.memory_space<vmem>>, %arg7: memref<8x128xf32, #tpu.memory_space<vmem>>) attributes {dimension_semantics = [#tpu.dimension_semantics<parallel>], iteration_bounds = array<i64: 1>, scalar_prefetch = 0 : i64, scratch_operands = 0 : i64, tpu.core_type = #tpu.core_type<tc>, window_params = [{transform_indices = @transform_0, window_bounds = array<i64: 8, 128>}, {pipeline_mode = #tpu.pipeline_mode<synchronous>, transform_indices = @transform_1, window_bounds = array<i64: 128, 1024>}, {pipeline_mode = #tpu.pipeline_mode<synchronous>, transform_indices = @transform_2, window_bounds = array<i64: 32, 32>}, {pipeline_mode = #tpu.pipeline_mode<synchronous>, transform_indices = @transform_3, window_bounds = array<i64: 32, 1024>}, {pipeline_mode = #tpu.pipeline_mode<synchronous>, transform_indices = @transform_4, window_bounds = array<i64: 128, 128>}, {pipeline_mode = #tpu.pipeline_mode<synchronous>, transform_indices = @transform_5, window_bounds = array<i64: 1024, 32>}, {transform_indices = @transform_6, window_bounds = array<i64: 8, 128>}]} {
    %c0 = arith.constant 0 : index
    %c0_0 = arith.constant 0 : index
    %0 = vector.load %arg1[%c0, %c0_0] : memref<8x128xf32, #tpu.memory_space<vmem>>, vector<8x128xf32>
    %c0_1 = arith.constant 0 : index
    %c0_2 = arith.constant 0 : index
    %1 = vector.load %arg2[%c0_1, %c0_2] : memref<128x1024xf32, #tpu.memory_space<vmem>>, vector<128x1024xf32>
    %cst = arith.constant dense<0.000000e+00> : vector<8x1024xf32>
    %2 = tpu.matmul %0, %1, %cst {dimension_numbers = #tpu.dot_dimension_numbers<[1], [0], [0], [1], [0, 0, 1, 1], [], []>} : vector<8x128xf32>, vector<128x1024xf32>, vector<8x1024xf32> -> vector<8x1024xf32>
    %3 = vector.extract_strided_slice %2 {offsets = [0, 0], sizes = [8, 128], strides = [1, 1]} : vector<8x1024xf32> to vector<8x128xf32>
    %4 = vector.extract_strided_slice %2 {offsets = [0, 128], sizes = [8, 128], strides = [1, 1]} : vector<8x1024xf32> to vector<8x128xf32>
    %5 = vector.extract_strided_slice %2 {offsets = [0, 256], sizes = [8, 128], strides = [1, 1]} : vector<8x1024xf32> to vector<8x128xf32>
    %6 = vector.extract_strided_slice %2 {offsets = [0, 384], sizes = [8, 128], strides = [1, 1]} : vector<8x1024xf32> to vector<8x128xf32>
    %7 = vector.extract_strided_slice %2 {offsets = [0, 512], sizes = [8, 128], strides = [1, 1]} : vector<8x1024xf32> to vector<8x128xf32>
    %8 = vector.extract_strided_slice %2 {offsets = [0, 640], sizes = [8, 128], strides = [1, 1]} : vector<8x1024xf32> to vector<8x128xf32>
    %9 = vector.extract_strided_slice %2 {offsets = [0, 768], sizes = [8, 128], strides = [1, 1]} : vector<8x1024xf32> to vector<8x128xf32>
    %10 = vector.extract_strided_slice %2 {offsets = [0, 896], sizes = [8, 128], strides = [1, 1]} : vector<8x1024xf32> to vector<8x128xf32>
    %c0_3 = arith.constant 0 : index
    %c0_4 = arith.constant 0 : index
    %11 = vector.load %arg6[%c0_3, %c0_4] : memref<1024x32xf32, #tpu.memory_space<vmem>>, vector<1024x32xf32>
    %12 = vector.extract_strided_slice %11 {offsets = [0, 0], sizes = [128, 32], strides = [1, 1]} : vector<1024x32xf32> to vector<128x32xf32>
    %13 = vector.extract_strided_slice %11 {offsets = [128, 0], sizes = [128, 32], strides = [1, 1]} : vector<1024x32xf32> to vector<128x32xf32>
    %14 = vector.extract_strided_slice %11 {offsets = [256, 0], sizes = [128, 32], strides = [1, 1]} : vector<1024x32xf32> to vector<128x32xf32>
    %15 = vector.extract_strided_slice %11 {offsets = [384, 0], sizes = [128, 32], strides = [1, 1]} : vector<1024x32xf32> to vector<128x32xf32>
    %16 = vector.extract_strided_slice %11 {offsets = [512, 0], sizes = [128, 32], strides = [1, 1]} : vector<1024x32xf32> to vector<128x32xf32>
    %17 = vector.extract_strided_slice %11 {offsets = [640, 0], sizes = [128, 32], strides = [1, 1]} : vector<1024x32xf32> to vector<128x32xf32>
    %18 = vector.extract_strided_slice %11 {offsets = [768, 0], sizes = [128, 32], strides = [1, 1]} : vector<1024x32xf32> to vector<128x32xf32>
    %19 = vector.extract_strided_slice %11 {offsets = [896, 0], sizes = [128, 32], strides = [1, 1]} : vector<1024x32xf32> to vector<128x32xf32>
    %c0_5 = arith.constant 0 : index
    %c0_6 = arith.constant 0 : index
    %20 = vector.load %arg5[%c0_5, %c0_6] : memref<128x128xf32, #tpu.memory_space<vmem>>, vector<128x128xf32>
    %21 = arith.addf %3, %4 : vector<8x128xf32>
    %22 = arith.addf %21, %5 : vector<8x128xf32>
    %23 = arith.addf %22, %6 : vector<8x128xf32>
    %24 = arith.addf %23, %7 : vector<8x128xf32>
    %25 = arith.addf %24, %8 : vector<8x128xf32>
    %26 = arith.addf %25, %9 : vector<8x128xf32>
    %27 = arith.addf %26, %10 : vector<8x128xf32>
    %cst_7 = arith.constant 2.500000e-01 : f32
    %28 = vector.broadcast %cst_7 : f32 to vector<8x128xf32>
    %29 = arith.mulf %27, %28 : vector<8x128xf32>
    %30 = arith.mulf %29, %29 : vector<8x128xf32>
    %cst_8 = arith.constant dense<0.000000e+00> : vector<8x128xf32>
    %31 = tpu.matmul %30, %20, %cst_8 {dimension_numbers = #tpu.dot_dimension_numbers<[1], [0], [0], [1], [0, 0, 1, 1], [], []>} : vector<8x128xf32>, vector<128x128xf32>, vector<8x128xf32> -> vector<8x128xf32>
    %cst_9 = arith.constant 1.000000e+00 : f32
    %32 = vector.broadcast %cst_9 : f32 to vector<8x128xf32>
    %33 = arith.addf %32, %31 : vector<8x128xf32>
    %34 = tpu.reciprocal %33 {approx = true} : vector<8x128xf32> -> vector<8x128xf32>
    %35 = arith.mulf %31, %34 : vector<8x128xf32>
    %36 = arith.mulf %35, %29 : vector<8x128xf32>
    %cst_10 = arith.constant 1.000000e-07 : f32
    %37 = vector.broadcast %cst_10 : f32 to vector<8x128xf32>
    %38 = arith.addf %31, %37 : vector<8x128xf32>
    %39 = math.rsqrt %38 : vector<8x128xf32>
    %40 = arith.mulf %36, %39 : vector<8x128xf32>
    %41 = arith.mulf %3, %40 : vector<8x128xf32>
    %cst_11 = arith.constant dense<0.000000e+00> : vector<8x32xf32>
    %42 = tpu.matmul %41, %12, %cst_11 {dimension_numbers = #tpu.dot_dimension_numbers<[1], [0], [0], [1], [0, 0, 1, 1], [], []>} : vector<8x128xf32>, vector<128x32xf32>, vector<8x32xf32> -> vector<8x32xf32>
    %43 = arith.mulf %4, %40 : vector<8x128xf32>
    %cst_12 = arith.constant dense<0.000000e+00> : vector<8x32xf32>
    %44 = tpu.matmul %43, %13, %cst_12 {dimension_numbers = #tpu.dot_dimension_numbers<[1], [0], [0], [1], [0, 0, 1, 1], [], []>} : vector<8x128xf32>, vector<128x32xf32>, vector<8x32xf32> -> vector<8x32xf32>
    %45 = arith.addf %42, %44 : vector<8x32xf32>
    %46 = arith.mulf %5, %40 : vector<8x128xf32>
    %cst_13 = arith.constant dense<0.000000e+00> : vector<8x32xf32>
    %47 = tpu.matmul %46, %14, %cst_13 {dimension_numbers = #tpu.dot_dimension_numbers<[1], [0], [0], [1], [0, 0, 1, 1], [], []>} : vector<8x128xf32>, vector<128x32xf32>, vector<8x32xf32> -> vector<8x32xf32>
    %48 = arith.addf %45, %47 : vector<8x32xf32>
    %49 = arith.mulf %6, %40 : vector<8x128xf32>
    %cst_14 = arith.constant dense<0.000000e+00> : vector<8x32xf32>
    %50 = tpu.matmul %49, %15, %cst_14 {dimension_numbers = #tpu.dot_dimension_numbers<[1], [0], [0], [1], [0, 0, 1, 1], [], []>} : vector<8x128xf32>, vector<128x32xf32>, vector<8x32xf32> -> vector<8x32xf32>
    %51 = arith.addf %48, %50 : vector<8x32xf32>
    %52 = arith.mulf %7, %40 : vector<8x128xf32>
    %cst_15 = arith.constant dense<0.000000e+00> : vector<8x32xf32>
    %53 = tpu.matmul %52, %16, %cst_15 {dimension_numbers = #tpu.dot_dimension_numbers<[1], [0], [0], [1], [0, 0, 1, 1], [], []>} : vector<8x128xf32>, vector<128x32xf32>, vector<8x32xf32> -> vector<8x32xf32>
    %54 = arith.addf %51, %53 : vector<8x32xf32>
    %55 = arith.mulf %8, %40 : vector<8x128xf32>
    %cst_16 = arith.constant dense<0.000000e+00> : vector<8x32xf32>
    %56 = tpu.matmul %55, %17, %cst_16 {dimension_numbers = #tpu.dot_dimension_numbers<[1], [0], [0], [1], [0, 0, 1, 1], [], []>} : vector<8x128xf32>, vector<128x32xf32>, vector<8x32xf32> -> vector<8x32xf32>
    %57 = arith.addf %54, %56 : vector<8x32xf32>
    %58 = arith.mulf %9, %40 : vector<8x128xf32>
    %cst_17 = arith.constant dense<0.000000e+00> : vector<8x32xf32>
    %59 = tpu.matmul %58, %18, %cst_17 {dimension_numbers = #tpu.dot_dimension_numbers<[1], [0], [0], [1], [0, 0, 1, 1], [], []>} : vector<8x128xf32>, vector<128x32xf32>, vector<8x32xf32> -> vector<8x32xf32>
    %60 = arith.addf %57, %59 : vector<8x32xf32>
    %61 = arith.mulf %10, %40 : vector<8x128xf32>
    %cst_18 = arith.constant dense<0.000000e+00> : vector<8x32xf32>
    %62 = tpu.matmul %61, %19, %cst_18 {dimension_numbers = #tpu.dot_dimension_numbers<[1], [0], [0], [1], [0, 0, 1, 1], [], []>} : vector<8x128xf32>, vector<128x32xf32>, vector<8x32xf32> -> vector<8x32xf32>
    %63 = arith.addf %60, %62 : vector<8x32xf32>
    %cst_19 = arith.constant dense<0xFF800000> : vector<8xf32>
    %64 = vector.multi_reduction <maximumf>, %63, %cst_19 [1] : vector<8x32xf32> to vector<8xf32>
    %65 = vector.shape_cast %64 : vector<8xf32> to vector<8x1xf32>
    %66 = vector.broadcast %65 : vector<8x1xf32> to vector<8x32xf32>
    %67 = arith.subf %63, %66 : vector<8x32xf32>
    %68 = math.exp %67 : vector<8x32xf32>
    %c0_20 = arith.constant 0 : index
    %c0_21 = arith.constant 0 : index
    %69 = vector.load %arg3[%c0_20, %c0_21] : memref<32x32xf32, #tpu.memory_space<vmem>>, vector<32x32xf32>
    %cst_22 = arith.constant dense<0.000000e+00> : vector<8x32xf32>
    %70 = tpu.matmul %68, %69, %cst_22 {dimension_numbers = #tpu.dot_dimension_numbers<[1], [0], [0], [1], [0, 0, 1, 1], [], []>} : vector<8x32xf32>, vector<32x32xf32>, vector<8x32xf32> -> vector<8x32xf32>
    %71 = tpu.reciprocal %70 {approx = true} : vector<8x32xf32> -> vector<8x32xf32>
    %72 = arith.mulf %68, %71 : vector<8x32xf32>
    %c0_23 = arith.constant 0 : index
    %c0_24 = arith.constant 0 : index
    %73 = vector.load %arg4[%c0_23, %c0_24] : memref<32x1024xf32, #tpu.memory_space<vmem>>, vector<32x1024xf32>
    %cst_25 = arith.constant dense<0.000000e+00> : vector<8x1024xf32>
    %74 = tpu.matmul %72, %73, %cst_25 {dimension_numbers = #tpu.dot_dimension_numbers<[1], [0], [0], [1], [0, 0, 1, 1], [], []>} : vector<8x32xf32>, vector<32x1024xf32>, vector<8x1024xf32> -> vector<8x1024xf32>
    %75 = vector.extract_strided_slice %74 {offsets = [0, 0], sizes = [8, 128], strides = [1, 1]} : vector<8x1024xf32> to vector<8x128xf32>
    %76 = arith.mulf %75, %3 : vector<8x128xf32>
    %77 = vector.extract_strided_slice %74 {offsets = [0, 128], sizes = [8, 128], strides = [1, 1]} : vector<8x1024xf32> to vector<8x128xf32>
    %78 = arith.mulf %77, %4 : vector<8x128xf32>
    %79 = arith.addf %76, %78 : vector<8x128xf32>
    %80 = vector.extract_strided_slice %74 {offsets = [0, 256], sizes = [8, 128], strides = [1, 1]} : vector<8x1024xf32> to vector<8x128xf32>
    %81 = arith.mulf %80, %5 : vector<8x128xf32>
    %82 = arith.addf %79, %81 : vector<8x128xf32>
    %83 = vector.extract_strided_slice %74 {offsets = [0, 384], sizes = [8, 128], strides = [1, 1]} : vector<8x1024xf32> to vector<8x128xf32>
    %84 = arith.mulf %83, %6 : vector<8x128xf32>
    %85 = arith.addf %82, %84 : vector<8x128xf32>
    %86 = vector.extract_strided_slice %74 {offsets = [0, 512], sizes = [8, 128], strides = [1, 1]} : vector<8x1024xf32> to vector<8x128xf32>
    %87 = arith.mulf %86, %7 : vector<8x128xf32>
    %88 = arith.addf %85, %87 : vector<8x128xf32>
    %89 = vector.extract_strided_slice %74 {offsets = [0, 640], sizes = [8, 128], strides = [1, 1]} : vector<8x1024xf32> to vector<8x128xf32>
    %90 = arith.mulf %89, %8 : vector<8x128xf32>
    %91 = arith.addf %88, %90 : vector<8x128xf32>
    %92 = vector.extract_strided_slice %74 {offsets = [0, 768], sizes = [8, 128], strides = [1, 1]} : vector<8x1024xf32> to vector<8x128xf32>
    %93 = arith.mulf %92, %9 : vector<8x128xf32>
    %94 = arith.addf %91, %93 : vector<8x128xf32>
    %95 = vector.extract_strided_slice %74 {offsets = [0, 896], sizes = [8, 128], strides = [1, 1]} : vector<8x1024xf32> to vector<8x128xf32>
    %96 = arith.mulf %95, %10 : vector<8x128xf32>
    %97 = arith.addf %94, %96 : vector<8x128xf32>
    %98 = arith.mulf %97, %97 : vector<8x128xf32>
    %cst_26 = arith.constant dense<0.000000e+00> : vector<8x128xf32>
    %99 = tpu.matmul %98, %20, %cst_26 {dimension_numbers = #tpu.dot_dimension_numbers<[1], [0], [0], [1], [0, 0, 1, 1], [], []>} : vector<8x128xf32>, vector<128x128xf32>, vector<8x128xf32> -> vector<8x128xf32>
    %cst_27 = arith.constant 1.000000e+00 : f32
    %100 = vector.broadcast %cst_27 : f32 to vector<8x128xf32>
    %101 = arith.addf %100, %99 : vector<8x128xf32>
    %102 = tpu.reciprocal %101 {approx = true} : vector<8x128xf32> -> vector<8x128xf32>
    %103 = arith.mulf %99, %102 : vector<8x128xf32>
    %104 = arith.mulf %103, %97 : vector<8x128xf32>
    %cst_28 = arith.constant 1.000000e-07 : f32
    %105 = vector.broadcast %cst_28 : f32 to vector<8x128xf32>
    %106 = arith.addf %99, %105 : vector<8x128xf32>
    %107 = math.rsqrt %106 : vector<8x128xf32>
    %108 = arith.mulf %104, %107 : vector<8x128xf32>
    %109 = arith.mulf %3, %108 : vector<8x128xf32>
    %cst_29 = arith.constant dense<0.000000e+00> : vector<8x32xf32>
    %110 = tpu.matmul %109, %12, %cst_29 {dimension_numbers = #tpu.dot_dimension_numbers<[1], [0], [0], [1], [0, 0, 1, 1], [], []>} : vector<8x128xf32>, vector<128x32xf32>, vector<8x32xf32> -> vector<8x32xf32>
    %111 = arith.mulf %4, %108 : vector<8x128xf32>
    %cst_30 = arith.constant dense<0.000000e+00> : vector<8x32xf32>
    %112 = tpu.matmul %111, %13, %cst_30 {dimension_numbers = #tpu.dot_dimension_numbers<[1], [0], [0], [1], [0, 0, 1, 1], [], []>} : vector<8x128xf32>, vector<128x32xf32>, vector<8x32xf32> -> vector<8x32xf32>
    %113 = arith.addf %110, %112 : vector<8x32xf32>
    %114 = arith.mulf %5, %108 : vector<8x128xf32>
    %cst_31 = arith.constant dense<0.000000e+00> : vector<8x32xf32>
    %115 = tpu.matmul %114, %14, %cst_31 {dimension_numbers = #tpu.dot_dimension_numbers<[1], [0], [0], [1], [0, 0, 1, 1], [], []>} : vector<8x128xf32>, vector<128x32xf32>, vector<8x32xf32> -> vector<8x32xf32>
    %116 = arith.addf %113, %115 : vector<8x32xf32>
    %117 = arith.mulf %6, %108 : vector<8x128xf32>
    %cst_32 = arith.constant dense<0.000000e+00> : vector<8x32xf32>
    %118 = tpu.matmul %117, %15, %cst_32 {dimension_numbers = #tpu.dot_dimension_numbers<[1], [0], [0], [1], [0, 0, 1, 1], [], []>} : vector<8x128xf32>, vector<128x32xf32>, vector<8x32xf32> -> vector<8x32xf32>
    %119 = arith.addf %116, %118 : vector<8x32xf32>
    %120 = arith.mulf %7, %108 : vector<8x128xf32>
    %cst_33 = arith.constant dense<0.000000e+00> : vector<8x32xf32>
    %121 = tpu.matmul %120, %16, %cst_33 {dimension_numbers = #tpu.dot_dimension_numbers<[1], [0], [0], [1], [0, 0, 1, 1], [], []>} : vector<8x128xf32>, vector<128x32xf32>, vector<8x32xf32> -> vector<8x32xf32>
    %122 = arith.addf %119, %121 : vector<8x32xf32>
    %123 = arith.mulf %8, %108 : vector<8x128xf32>
    %cst_34 = arith.constant dense<0.000000e+00> : vector<8x32xf32>
    %124 = tpu.matmul %123, %17, %cst_34 {dimension_numbers = #tpu.dot_dimension_numbers<[1], [0], [0], [1], [0, 0, 1, 1], [], []>} : vector<8x128xf32>, vector<128x32xf32>, vector<8x32xf32> -> vector<8x32xf32>
    %125 = arith.addf %122, %124 : vector<8x32xf32>
    %126 = arith.mulf %9, %108 : vector<8x128xf32>
    %cst_35 = arith.constant dense<0.000000e+00> : vector<8x32xf32>
    %127 = tpu.matmul %126, %18, %cst_35 {dimension_numbers = #tpu.dot_dimension_numbers<[1], [0], [0], [1], [0, 0, 1, 1], [], []>} : vector<8x128xf32>, vector<128x32xf32>, vector<8x32xf32> -> vector<8x32xf32>
    %128 = arith.addf %125, %127 : vector<8x32xf32>
    %129 = arith.mulf %10, %108 : vector<8x128xf32>
    %cst_36 = arith.constant dense<0.000000e+00> : vector<8x32xf32>
    %130 = tpu.matmul %129, %19, %cst_36 {dimension_numbers = #tpu.dot_dimension_numbers<[1], [0], [0], [1], [0, 0, 1, 1], [], []>} : vector<8x128xf32>, vector<128x32xf32>, vector<8x32xf32> -> vector<8x32xf32>
    %131 = arith.addf %128, %130 : vector<8x32xf32>
    %132 = arith.addf %63, %131 : vector<8x32xf32>
    %cst_37 = arith.constant dense<0xFF800000> : vector<8xf32>
    %133 = vector.multi_reduction <maximumf>, %132, %cst_37 [1] : vector<8x32xf32> to vector<8xf32>
    %134 = vector.shape_cast %133 : vector<8xf32> to vector<8x1xf32>
    %135 = vector.broadcast %134 : vector<8x1xf32> to vector<8x32xf32>
    %136 = arith.subf %132, %135 : vector<8x32xf32>
    %137 = math.exp %136 : vector<8x32xf32>
    %c0_38 = arith.constant 0 : index
    %c0_39 = arith.constant 0 : index
    %138 = vector.load %arg3[%c0_38, %c0_39] : memref<32x32xf32, #tpu.memory_space<vmem>>, vector<32x32xf32>
    %cst_40 = arith.constant dense<0.000000e+00> : vector<8x32xf32>
    %139 = tpu.matmul %137, %138, %cst_40 {dimension_numbers = #tpu.dot_dimension_numbers<[1], [0], [0], [1], [0, 0, 1, 1], [], []>} : vector<8x32xf32>, vector<32x32xf32>, vector<8x32xf32> -> vector<8x32xf32>
    %140 = tpu.reciprocal %139 {approx = true} : vector<8x32xf32> -> vector<8x32xf32>
    %141 = arith.mulf %137, %140 : vector<8x32xf32>
    %c0_41 = arith.constant 0 : index
    %c0_42 = arith.constant 0 : index
    %142 = vector.load %arg4[%c0_41, %c0_42] : memref<32x1024xf32, #tpu.memory_space<vmem>>, vector<32x1024xf32>
    %cst_43 = arith.constant dense<0.000000e+00> : vector<8x1024xf32>
    %143 = tpu.matmul %141, %142, %cst_43 {dimension_numbers = #tpu.dot_dimension_numbers<[1], [0], [0], [1], [0, 0, 1, 1], [], []>} : vector<8x32xf32>, vector<32x1024xf32>, vector<8x1024xf32> -> vector<8x1024xf32>
    %144 = vector.extract_strided_slice %143 {offsets = [0, 0], sizes = [8, 128], strides = [1, 1]} : vector<8x1024xf32> to vector<8x128xf32>
    %145 = arith.mulf %144, %3 : vector<8x128xf32>
    %146 = vector.extract_strided_slice %143 {offsets = [0, 128], sizes = [8, 128], strides = [1, 1]} : vector<8x1024xf32> to vector<8x128xf32>
    %147 = arith.mulf %146, %4 : vector<8x128xf32>
    %148 = arith.addf %145, %147 : vector<8x128xf32>
    %149 = vector.extract_strided_slice %143 {offsets = [0, 256], sizes = [8, 128], strides = [1, 1]} : vector<8x1024xf32> to vector<8x128xf32>
    %150 = arith.mulf %149, %5 : vector<8x128xf32>
    %151 = arith.addf %148, %150 : vector<8x128xf32>
    %152 = vector.extract_strided_slice %143 {offsets = [0, 384], sizes = [8, 128], strides = [1, 1]} : vector<8x1024xf32> to vector<8x128xf32>
    %153 = arith.mulf %152, %6 : vector<8x128xf32>
    %154 = arith.addf %151, %153 : vector<8x128xf32>
    %155 = vector.extract_strided_slice %143 {offsets = [0, 512], sizes = [8, 128], strides = [1, 1]} : vector<8x1024xf32> to vector<8x128xf32>
    %156 = arith.mulf %155, %7 : vector<8x128xf32>
    %157 = arith.addf %154, %156 : vector<8x128xf32>
    %158 = vector.extract_strided_slice %143 {offsets = [0, 640], sizes = [8, 128], strides = [1, 1]} : vector<8x1024xf32> to vector<8x128xf32>
    %159 = arith.mulf %158, %8 : vector<8x128xf32>
    %160 = arith.addf %157, %159 : vector<8x128xf32>
    %161 = vector.extract_strided_slice %143 {offsets = [0, 768], sizes = [8, 128], strides = [1, 1]} : vector<8x1024xf32> to vector<8x128xf32>
    %162 = arith.mulf %161, %9 : vector<8x128xf32>
    %163 = arith.addf %160, %162 : vector<8x128xf32>
    %164 = vector.extract_strided_slice %143 {offsets = [0, 896], sizes = [8, 128], strides = [1, 1]} : vector<8x1024xf32> to vector<8x128xf32>
    %165 = arith.mulf %164, %10 : vector<8x128xf32>
    %166 = arith.addf %163, %165 : vector<8x128xf32>
    %167 = arith.mulf %166, %166 : vector<8x128xf32>
    %cst_44 = arith.constant dense<0.000000e+00> : vector<8x128xf32>
    %168 = tpu.matmul %167, %20, %cst_44 {dimension_numbers = #tpu.dot_dimension_numbers<[1], [0], [0], [1], [0, 0, 1, 1], [], []>} : vector<8x128xf32>, vector<128x128xf32>, vector<8x128xf32> -> vector<8x128xf32>
    %cst_45 = arith.constant 1.000000e+00 : f32
    %169 = vector.broadcast %cst_45 : f32 to vector<8x128xf32>
    %170 = arith.addf %169, %168 : vector<8x128xf32>
    %171 = tpu.reciprocal %170 {approx = true} : vector<8x128xf32> -> vector<8x128xf32>
    %172 = arith.mulf %168, %171 : vector<8x128xf32>
    %173 = arith.mulf %172, %166 : vector<8x128xf32>
    %cst_46 = arith.constant 1.000000e-07 : f32
    %174 = vector.broadcast %cst_46 : f32 to vector<8x128xf32>
    %175 = arith.addf %168, %174 : vector<8x128xf32>
    %176 = math.rsqrt %175 : vector<8x128xf32>
    %177 = arith.mulf %173, %176 : vector<8x128xf32>
    %c0_47 = arith.constant 0 : index
    %c0_48 = arith.constant 0 : index
    %178 = vector.load %arg7[%c0_47, %c0_48] : memref<8x128xf32, #tpu.memory_space<vmem>>, vector<8x128xf32>
    tpu.vector_store %arg7[%c0_47, %c0_48], %177 {strides = array<i32>} : memref<8x128xf32, #tpu.memory_space<vmem>>, vector<8x128xf32>,
    return
  }
  func.func @transform_0(%arg0: i32) -> (i32, i32) {
    %c0_i32 = arith.constant 0 : i32
    %c0_i32_0 = arith.constant 0 : i32
    return %arg0, %c0_i32 : i32, i32
  }
  func.func @transform_1(%arg0: i32) -> (i32, i32) {
    %c0_i32 = arith.constant 0 : i32
    %c0_i32_0 = arith.constant 0 : i32
    %c0_i32_1 = arith.constant 0 : i32
    return %c0_i32, %c0_i32_0 : i32, i32
  }
  func.func @transform_2(%arg0: i32) -> (i32, i32) {
    %c0_i32 = arith.constant 0 : i32
    %c0_i32_0 = arith.constant 0 : i32
    %c0_i32_1 = arith.constant 0 : i32
    return %c0_i32, %c0_i32_0 : i32, i32
  }
  func.func @transform_3(%arg0: i32) -> (i32, i32) {
    %c0_i32 = arith.constant 0 : i32
    %c0_i32_0 = arith.constant 0 : i32
    %c0_i32_1 = arith.constant 0 : i32
    return %c0_i32, %c0_i32_0 : i32, i32
  }
  func.func @transform_4(%arg0: i32) -> (i32, i32) {
    %c0_i32 = arith.constant 0 : i32
    %c0_i32_0 = arith.constant 0 : i32
    %c0_i32_1 = arith.constant 0 : i32
    return %c0_i32, %c0_i32_0 : i32, i32
  }
  func.func @transform_5(%arg0: i32) -> (i32, i32) {
    %c0_i32 = arith.constant 0 : i32
    %c0_i32_0 = arith.constant 0 : i32
    %c0_i32_1 = arith.constant 0 : i32
    return %c0_i32, %c0_i32_0 : i32, i32
  }
  func.func @transform_6(%arg0: i32) -> (i32, i32) {
    %c0_i32 = arith.constant 0 : i32
    %c0_i32_0 = arith.constant 0 : i32
    return %arg0, %c0_i32 : i32, i32
  }
}

</mosaic_0001>

<bundles_post_ra>
// kernel: mul.53
= control target key start
LH: loop header
LB: loop body
LE: loop exit
PB: predicated region body
PF: predicated region fallthrough
CT: control target
= control target key end

     0   :  { %vm642_vm0 = vcmask 1047556   ;;  %s1622_s10 = smov 96   ;;  %vm644_vm1 = vcmask 261120   ;;  %s1624_s16 = smov 32   ;;  %vm789_vm2 = vcmask 1048320   ;;  %vm964_vm3 = vcmask 785920   ;;  %s2387_s0 = inlined_call_operand.vmem [shape: f32[8,16,4,32], index: 0, kind: input, shape index: {}]   ;;  %s2388_s1 = inlined_call_operand.vmem [shape: f32[8,16,128], index: 1, kind: output, shape index: {}]  }
   0x1   :  { %v1552_v0 = vld [vmem:[%s2387_s0 + $0x1c] sm:$0xf]  ;;  %v1553_v1 = vld [vmem:[%s2387_s0 + $0x18] sm:$0xf]  ;;  %v1554_v2 = vld [vmem:[%s2387_s0 + $0x14] sm:$0xf] }
   0x2   :  { %608 = vst [vmem:[#allocation0 + $0x38] sm:$0xf] %v1552_v0  ;;  %613 = vst [vmem:[#allocation0 + $0x30] sm:$0xf] %v1553_v1  ;;  %v1555_v3 = vld [vmem:[%s2387_s0 + $0x10] sm:$0xf] }
   0x3   :  { %618 = vst [vmem:[#allocation0 + $0x28] sm:$0xf] %v1554_v2  ;;  %v1556_v4 = vld [vmem:[%s2387_s0 + $0xc] sm:$0xf]  ;;  %v1557_v5 = vld [vmem:[%s2387_s0 + $0x8] sm:$0xf] }
   0x4   :  { %623 = vst [vmem:[#allocation0 + $0x20] sm:$0xf] %v1555_v3  ;;  %628 = vst [vmem:[#allocation0 + $0x18] sm:$0xf] %v1556_v4  ;;  %v1558_v6 = vld [vmem:[%s2387_s0 + $0x4] sm:$0xf] }
   0x5   :  { %633 = vst [vmem:[#allocation0 + $0x10] sm:$0xf] %v1557_v5  ;;  %v638_v7 = vld [vmem:[%s2387_s0] sm:$0xf]  ;;  %637 = vst [vmem:[#allocation0 + $0x8] sm:$0xf] %v1558_v6 }
   0x6   :  { %639 = vst [vmem:[#allocation0] sm:$0xf] %v638_v7  ;;  %v1488_v8 = vld [vmem:[%s2387_s0 + $0x11c] sm:$0xf]  ;;  %v1489_v9 = vld [vmem:[%s2387_s0 + $0x118] sm:$0xf] }
   0x7   :  { %v1490_v10 = vld [vmem:[%s2387_s0 + $0x114] sm:$0xf]  ;;  %288 = vst [vmem:[#allocation0 + $0x238] sm:$0xf] %v1488_v8  ;;  %293 = vst [vmem:[#allocation0 + $0x230] sm:$0xf] %v1489_v9 }
   0x8   :  { %298 = vst [vmem:[#allocation0 + $0x228] sm:$0xf] %v1490_v10  ;;  %v1491_v11 = vld [vmem:[%s2387_s0 + $0x110] sm:$0xf]  ;;  %v1492_v12 = vld [vmem:[%s2387_s0 + $0x10c] sm:$0xf] }
   0x9   :  { %v1493_v13 = vld [vmem:[%s2387_s0 + $0x108] sm:$0xf]  ;;  %303 = vst [vmem:[#allocation0 + $0x220] sm:$0xf] %v1491_v11  ;;  %308 = vst [vmem:[#allocation0 + $0x218] sm:$0xf] %v1492_v12 }
   0xa   :  { %313 = vst [vmem:[#allocation0 + $0x210] sm:$0xf] %v1493_v13  ;;  %v1494_v14 = vld [vmem:[%s2387_s0 + $0x104] sm:$0xf]  ;;  %v1495_v15 = vld [vmem:[%s2387_s0 + $0x100] sm:$0xf] }
   0xb   :  { %v1520_v16 = vld [vmem:[%s2387_s0 + $0x9c] sm:$0xf]  ;;  %318 = vst [vmem:[#allocation0 + $0x208] sm:$0xf] %v1494_v14  ;;  %323 = vst [vmem:[#allocation0 + $0x200] sm:$0xf] %v1495_v15 }
   0xc   :  { %448 = vst [vmem:[#allocation0 + $0x138] sm:$0xf] %v1520_v16  ;;  %v1521_v17 = vld [vmem:[%s2387_s0 + $0x98] sm:$0xf]  ;;  %v1522_v18 = vld [vmem:[%s2387_s0 + $0x94] sm:$0xf] }
   0xd   :  { %v1523_v19 = vld [vmem:[%s2387_s0 + $0x90] sm:$0xf]  ;;  %453 = vst [vmem:[#allocation0 + $0x130] sm:$0xf] %v1521_v17  ;;  %458 = vst [vmem:[#allocation0 + $0x128] sm:$0xf] %v1522_v18 }
   0xe   :  { %463 = vst [vmem:[#allocation0 + $0x120] sm:$0xf] %v1523_v19  ;;  %v1524_v20 = vld [vmem:[%s2387_s0 + $0x8c] sm:$0xf]  ;;  %v1525_v21 = vld [vmem:[%s2387_s0 + $0x88] sm:$0xf] }
   0xf   :  { %v1526_v22 = vld [vmem:[%s2387_s0 + $0x84] sm:$0xf]  ;;  %468 = vst [vmem:[#allocation0 + $0x118] sm:$0xf] %v1524_v20  ;;  %473 = vst [vmem:[#allocation0 + $0x110] sm:$0xf] %v1525_v21 }
  0x10   :  { %478 = vst [vmem:[#allocation0 + $0x108] sm:$0xf] %v1526_v22  ;;  %v1527_v23 = vld [vmem:[%s2387_s0 + $0x80] sm:$0xf]  ;;  %v1456_v24 = vld [vmem:[%s2387_s0 + $0x19c] sm:$0xf] }
  0x11   :  { %v1457_v25 = vld [vmem:[%s2387_s0 + $0x198] sm:$0xf]  ;;  %483 = vst [vmem:[#allocation0 + $0x100] sm:$0xf] %v1527_v23  ;;  %128 = vst [vmem:[#allocation0 + $0x338] sm:$0xf] %v1456_v24 }
  0x12   :  { %v784_v26 = vld [vmem:[#allocation0 + $0x3] ss:$8 sm:$0xf0]   ;;  %133 = vst [vmem:[#allocation0 + $0x330] sm:$0xf] %v1457_v25  ;;  %vm1139_vm4 = vcmask 523520  }
  0x13   :  { %v1458_v27 = vld [vmem:[%s2387_s0 + $0x194] sm:$0xf]  ;;  %v782_v28 = vld [vmem:[#allocation0 + $0x3] ss:$8 sm:$0xf]  }
  0x14   :  { %138 = vst [vmem:[#allocation0 + $0x328] sm:$0xf] %v1458_v27  ;;  %v1459_v29 = vld [vmem:[%s2387_s0 + $0x190] sm:$0xf]  ;;  %v786_v30 = vsel %vm642_vm0, %v784_v26, %v782_v28  ;;  %v1460_v31 = vld [vmem:[%s2387_s0 + $0x18c] sm:$0xf] }
  0x15   :  { %143 = vst [vmem:[#allocation0 + $0x320] sm:$0xf] %v1459_v29  ;;  %v1461_v32 = vld [vmem:[%s2387_s0 + $0x188] sm:$0xf]  ;;  %v1462_v33 = vld [vmem:[%s2387_s0 + $0x184] sm:$0xf]  ;;  %787 = vrot.lane.b32.xlu0 %v786_v30, %s1622_s10 }
  0x16   :  { %v805_v34 = vld [vmem:[#allocation0 + $0x203] ss:$8 sm:$0xf0]   ;;  %148 = vst [vmem:[#allocation0 + $0x318] sm:$0xf] %v1460_v31 }
  0x17   :  { %153 = vst [vmem:[#allocation0 + $0x310] sm:$0xf] %v1461_v32  ;;  %158 = vst [vmem:[#allocation0 + $0x308] sm:$0xf] %v1462_v33  ;;  %v1463_v35 = vld [vmem:[%s2387_s0 + $0x180] sm:$0xf] }
  0x18   :  { %v803_v36 = vld [vmem:[#allocation0 + $0x203] ss:$8 sm:$0xf]   ;;  %163 = vst [vmem:[#allocation0 + $0x300] sm:$0xf] %v1463_v35 }
  0x19   :  { %v1544_v37 = vld [vmem:[%s2387_s0 + $0x3c] sm:$0xf]  ;;  %v807_v38 = vsel %vm642_vm0, %v805_v34, %v803_v36  ;;  %v794_v39 = vld [vmem:[#allocation0 + $0x103] ss:$8 sm:$0xf0]  }
  0x1a   :  { %568 = vst [vmem:[#allocation0 + $0x78] sm:$0xf] %v1544_v37  ;;  %v1545_v40 = vld [vmem:[%s2387_s0 + $0x38] sm:$0xf]  ;;  %808 = vrot.lane.b32.xlu1 %v807_v38, %s1622_s10  ;;  %v1546_v41 = vld [vmem:[%s2387_s0 + $0x34] sm:$0xf] }
  0x1b   :  { %573 = vst [vmem:[#allocation0 + $0x70] sm:$0xf] %v1545_v40  ;;  %v1547_v42 = vld [vmem:[%s2387_s0 + $0x30] sm:$0xf]  ;;  %v1548_v43 = vld [vmem:[%s2387_s0 + $0x2c] sm:$0xf] }
  0x1c   :  { %v792_v44 = vld [vmem:[#allocation0 + $0x103] ss:$8 sm:$0xf]   ;;  %578 = vst [vmem:[#allocation0 + $0x68] sm:$0xf] %v1546_v41 }
  0x1d   :  { %583 = vst [vmem:[#allocation0 + $0x60] sm:$0xf] %v1547_v42  ;;  %588 = vst [vmem:[#allocation0 + $0x58] sm:$0xf] %v1548_v43  ;;  %v1549_v45 = vld [vmem:[%s2387_s0 + $0x28] sm:$0xf]  ;;  %v796_v46 = vsel %vm642_vm0, %v794_v39, %v792_v44 }
  0x1e   :  { %593 = vst [vmem:[#allocation0 + $0x50] sm:$0xf] %v1549_v45  ;;  %v1550_v47 = vld [vmem:[%s2387_s0 + $0x24] sm:$0xf]  ;;  %v1551_v48 = vld [vmem:[%s2387_s0 + $0x20] sm:$0xf]  ;;  %797 = vrot.lane.b32.xlu0 %v796_v46, %s1622_s10 }
  0x1f   :  { %v1512_v49 = vld [vmem:[%s2387_s0 + $0xbc] sm:$0xf]  ;;  %v816_v50 = vld [vmem:[#allocation0 + $0x303] ss:$8 sm:$0xf0]  }
  0x20   :  { %598 = vst [vmem:[#allocation0 + $0x48] sm:$0xf] %v1550_v47  ;;  %603 = vst [vmem:[#allocation0 + $0x40] sm:$0xf] %v1551_v48  ;;  %v1513_v51 = vld [vmem:[%s2387_s0 + $0xb8] sm:$0xf] }
  0x21   :  { %408 = vst [vmem:[#allocation0 + $0x178] sm:$0xf] %v1512_v49  ;;  %413 = vst [vmem:[#allocation0 + $0x170] sm:$0xf] %v1513_v51  ;;  %v1514_v52 = vld [vmem:[%s2387_s0 + $0xb4] sm:$0xf] }
  0x22   :  { %v1515_v53 = vld [vmem:[%s2387_s0 + $0xb0] sm:$0xf]  ;;  %v1516_v54 = vld [vmem:[%s2387_s0 + $0xac] sm:$0xf]  ;;  %418 = vst [vmem:[#allocation0 + $0x168] sm:$0xf] %v1514_v52 }
  0x23   :  { %v814_v55 = vld [vmem:[#allocation0 + $0x303] ss:$8 sm:$0xf]   ;;  %423 = vst [vmem:[#allocation0 + $0x160] sm:$0xf] %v1515_v53 }
  0x24   :  { %428 = vst [vmem:[#allocation0 + $0x158] sm:$0xf] %v1516_v54  ;;  %v1517_v56 = vld [vmem:[%s2387_s0 + $0xa8] sm:$0xf]  ;;  %v818_v57 = vsel %vm642_vm0, %v816_v50, %v814_v55  ;;  %v1518_v58 = vld [vmem:[%s2387_s0 + $0xa4] sm:$0xf] }
  0x25   :  { %433 = vst [vmem:[#allocation0 + $0x150] sm:$0xf] %v1517_v56  ;;  %v1519_v59 = vld [vmem:[%s2387_s0 + $0xa0] sm:$0xf]  ;;  %v1480_v60 = vld [vmem:[%s2387_s0 + $0x13c] sm:$0xf]  ;;  %819 = vrot.lane.b32.xlu1 %v818_v57, %s1622_s10 }
  0x26   :  { %438 = vst [vmem:[#allocation0 + $0x148] sm:$0xf] %v1518_v58  ;;  %443 = vst [vmem:[#allocation0 + $0x140] sm:$0xf] %v1519_v59  ;;  %v1481_v61 = vld [vmem:[%s2387_s0 + $0x138] sm:$0xf] }
  0x27   :  { %248 = vst [vmem:[#allocation0 + $0x278] sm:$0xf] %v1480_v60  ;;  %v1482_v62 = vld [vmem:[%s2387_s0 + $0x134] sm:$0xf]  ;;  %v1483_v63 = vld [vmem:[%s2387_s0 + $0x130] sm:$0xf] }
  0x28   :  { %v827_v0 = vld [vmem:[#allocation0 + $0x43] ss:$8 sm:$0xf0]   ;;  %253 = vst [vmem:[#allocation0 + $0x270] sm:$0xf] %v1481_v61 }
  0x29   :  { %258 = vst [vmem:[#allocation0 + $0x268] sm:$0xf] %v1482_v62  ;;  %263 = vst [vmem:[#allocation0 + $0x260] sm:$0xf] %v1483_v63  ;;  %v1484_v1 = vld [vmem:[%s2387_s0 + $0x12c] sm:$0xf] }
  0x2a   :  { %268 = vst [vmem:[#allocation0 + $0x258] sm:$0xf] %v1484_v1  ;;  %v1485_v2 = vld [vmem:[%s2387_s0 + $0x128] sm:$0xf]  ;;  %v1486_v3 = vld [vmem:[%s2387_s0 + $0x124] sm:$0xf] }
  0x2b   :  { %v1487_v4 = vld [vmem:[%s2387_s0 + $0x120] sm:$0xf]  ;;  %273 = vst [vmem:[#allocation0 + $0x250] sm:$0xf] %v1485_v2  ;;  %278 = vst [vmem:[#allocation0 + $0x248] sm:$0xf] %v1486_v3 }
  0x2c   :  { %v825_v5 = vld [vmem:[#allocation0 + $0x43] ss:$8 sm:$0xf]   ;;  %283 = vst [vmem:[#allocation0 + $0x240] sm:$0xf] %v1487_v4 }
  0x2d   :  { %v1448_v6 = vld [vmem:[%s2387_s0 + $0x1bc] sm:$0xf]  ;;  %v829_v7 = vsel %vm642_vm0, %v827_v0, %v825_v5  ;;  %v1449_v8 = vld [vmem:[%s2387_s0 + $0x1b8] sm:$0xf]  ;;  %v1450_v9 = vld [vmem:[%s2387_s0 + $0x1b4] sm:$0xf] }
  0x2e   :  { %88 = vst [vmem:[#allocation0 + $0x378] sm:$0xf] %v1448_v6  ;;  %v1451_v10 = vld [vmem:[%s2387_s0 + $0x1b0] sm:$0xf]  ;;  %830 = vrot.lane.b32.xlu0 %v829_v7, %s1622_s10  ;;  %93 = vst [vmem:[#allocation0 + $0x370] sm:$0xf] %v1449_v8 }
  0x2f   :  { %v838_v11 = vld [vmem:[#allocation0 + $0x143] ss:$8 sm:$0xf0]   ;;  %98 = vst [vmem:[#allocation0 + $0x368] sm:$0xf] %v1450_v9 }
  0x30   :  { %103 = vst [vmem:[#allocation0 + $0x360] sm:$0xf] %v1451_v10  ;;  %v1452_v12 = vld [vmem:[%s2387_s0 + $0x1ac] sm:$0xf]  ;;  %v1453_v13 = vld [vmem:[%s2387_s0 + $0x1a8] sm:$0xf] }
  0x31   :  { %108 = vst [vmem:[#allocation0 + $0x358] sm:$0xf] %v1452_v12  ;;  %v1454_v14 = vld [vmem:[%s2387_s0 + $0x1a4] sm:$0xf]  ;;  %v1455_v15 = vld [vmem:[%s2387_s0 + $0x1a0] sm:$0xf] }
  0x32   :  { %v836_v16 = vld [vmem:[#allocation0 + $0x143] ss:$8 sm:$0xf]   ;;  %113 = vst [vmem:[#allocation0 + $0x350] sm:$0xf] %v1453_v13 }
  0x33   :  { %118 = vst [vmem:[#allocation0 + $0x348] sm:$0xf] %v1454_v14  ;;  %123 = vst [vmem:[#allocation0 + $0x340] sm:$0xf] %v1455_v15  ;;  %v1536_v17 = vld [vmem:[%s2387_s0 + $0x5c] sm:$0xf]  ;;  %v840_v18 = vsel %vm642_vm0, %v838_v11, %v836_v16 }
  0x34   :  { %v849_v19 = vld [vmem:[#allocation0 + $0x243] ss:$8 sm:$0xf0]   ;;  %528 = vst [vmem:[#allocation0 + $0xb8] sm:$0xf] %v1536_v17  ;;  %841 = vrot.lane.b32.xlu1 %v840_v18, %s1622_s10 }
  0x35   :  { %v1537_v20 = vld [vmem:[%s2387_s0 + $0x58] sm:$0xf]  ;;  %v1538_v21 = vld [vmem:[%s2387_s0 + $0x54] sm:$0xf]  ;;  %v1539_v22 = vld [vmem:[%s2387_s0 + $0x50] sm:$0xf] }
  0x36   :  { %533 = vst [vmem:[#allocation0 + $0xb0] sm:$0xf] %v1537_v20  ;;  %v1540_v23 = vld [vmem:[%s2387_s0 + $0x4c] sm:$0xf]  ;;  %538 = vst [vmem:[#allocation0 + $0xa8] sm:$0xf] %v1538_v21 }
  0x37   :  { %v847_v24 = vld [vmem:[#allocation0 + $0x243] ss:$8 sm:$0xf]   ;;  %543 = vst [vmem:[#allocation0 + $0xa0] sm:$0xf] %v1539_v22 }
  0x38   :  { %548 = vst [vmem:[#allocation0 + $0x98] sm:$0xf] %v1540_v23  ;;  %v1541_v25 = vld [vmem:[%s2387_s0 + $0x48] sm:$0xf]  ;;  %v851_v26 = vsel %vm642_vm0, %v849_v19, %v847_v24  ;;  %v1542_v27 = vld [vmem:[%s2387_s0 + $0x44] sm:$0xf] }
  0x39   :  { %553 = vst [vmem:[#allocation0 + $0x90] sm:$0xf] %v1541_v25  ;;  %v1543_v28 = vld [vmem:[%s2387_s0 + $0x40] sm:$0xf]  ;;  %v1504_v29 = vld [vmem:[%s2387_s0 + $0xdc] sm:$0xf]  ;;  %852 = vrot.lane.b32.xlu0 %v851_v26, %s1622_s10 }
  0x3a   :  { %v860_v30 = vld [vmem:[#allocation0 + $0x343] ss:$8 sm:$0xf0]   ;;  %558 = vst [vmem:[#allocation0 + $0x88] sm:$0xf] %v1542_v27 }
  0x3b   :  { %563 = vst [vmem:[#allocation0 + $0x80] sm:$0xf] %v1543_v28  ;;  %368 = vst [vmem:[#allocation0 + $0x1b8] sm:$0xf] %v1504_v29  ;;  %v1505_v31 = vld [vmem:[%s2387_s0 + $0xd8] sm:$0xf] }
  0x3c   :  { %373 = vst [vmem:[#allocation0 + $0x1b0] sm:$0xf] %v1505_v31  ;;  %v1506_v32 = vld [vmem:[%s2387_s0 + $0xd4] sm:$0xf]  ;;  %v1507_v33 = vld [vmem:[%s2387_s0 + $0xd0] sm:$0xf] }
  0x3d   :  { %v1508_v34 = vld [vmem:[%s2387_s0 + $0xcc] sm:$0xf]  ;;  %v858_v35 = vld [vmem:[#allocation0 + $0x343] ss:$8 sm:$0xf]  }
  0x3e   :  { %378 = vst [vmem:[#allocation0 + $0x1a8] sm:$0xf] %v1506_v32  ;;  %383 = vst [vmem:[#allocation0 + $0x1a0] sm:$0xf] %v1507_v33  ;;  %v1509_v36 = vld [vmem:[%s2387_s0 + $0xc8] sm:$0xf]  ;;  %v862_v37 = vsel %vm642_vm0, %v860_v30, %v858_v35 }
  0x3f   :  { %388 = vst [vmem:[#allocation0 + $0x198] sm:$0xf] %v1508_v34  ;;  %393 = vst [vmem:[#allocation0 + $0x190] sm:$0xf] %v1509_v36  ;;  %v1510_v38 = vld [vmem:[%s2387_s0 + $0xc4] sm:$0xf]  ;;  %863 = vrot.lane.b32.xlu1 %v862_v37, %s1622_s10 }
  0x40   :  { %v1511_v39 = vld [vmem:[%s2387_s0 + $0xc0] sm:$0xf]  ;;  %v1472_v40 = vld [vmem:[%s2387_s0 + $0x15c] sm:$0xf]  ;;  %398 = vst [vmem:[#allocation0 + $0x188] sm:$0xf] %v1510_v38 }
  0x41   :  { %403 = vst [vmem:[#allocation0 + $0x180] sm:$0xf] %v1511_v39  ;;  %208 = vst [vmem:[#allocation0 + $0x2b8] sm:$0xf] %v1472_v40  ;;  %v1473_v41 = vld [vmem:[%s2387_s0 + $0x158] sm:$0xf] }
  0x42   :  { %v1474_v42 = vld [vmem:[%s2387_s0 + $0x154] sm:$0xf]  ;;  %v1475_v43 = vld [vmem:[%s2387_s0 + $0x150] sm:$0xf]  ;;  %213 = vst [vmem:[#allocation0 + $0x2b0] sm:$0xf] %v1473_v41 }
  0x43   :  { %v871_v44 = vld [vmem:[#allocation0 + $0x83] ss:$8 sm:$0xf0]   ;;  %218 = vst [vmem:[#allocation0 + $0x2a8] sm:$0xf] %v1474_v42 }
  0x44   :  { %223 = vst [vmem:[#allocation0 + $0x2a0] sm:$0xf] %v1475_v43  ;;  %v1476_v45 = vld [vmem:[%s2387_s0 + $0x14c] sm:$0xf]  ;;  %v1477_v46 = vld [vmem:[%s2387_s0 + $0x148] sm:$0xf] }
  0x45   :  { %228 = vst [vmem:[#allocation0 + $0x298] sm:$0xf] %v1476_v45  ;;  %v1478_v47 = vld [vmem:[%s2387_s0 + $0x144] sm:$0xf]  ;;  %v1479_v48 = vld [vmem:[%s2387_s0 + $0x140] sm:$0xf] }
  0x46   :  { %v869_v49 = vld [vmem:[#allocation0 + $0x83] ss:$8 sm:$0xf]   ;;  %233 = vst [vmem:[#allocation0 + $0x290] sm:$0xf] %v1477_v46 }
  0x47   :  { %238 = vst [vmem:[#allocation0 + $0x288] sm:$0xf] %v1478_v47  ;;  %243 = vst [vmem:[#allocation0 + $0x280] sm:$0xf] %v1479_v48  ;;  %v1440_v50 = vld [vmem:[%s2387_s0 + $0x1dc] sm:$0xf]  ;;  %v873_v51 = vsel %vm642_vm0, %v871_v44, %v869_v49 }
  0x48   :  { %48 = vst [vmem:[#allocation0 + $0x3b8] sm:$0xf] %v1440_v50  ;;  %v1441_v52 = vld [vmem:[%s2387_s0 + $0x1d8] sm:$0xf]  ;;  %v1442_v53 = vld [vmem:[%s2387_s0 + $0x1d4] sm:$0xf]  ;;  %874 = vrot.lane.b32.xlu0 %v873_v51, %s1622_s10 }
  0x49   :  { %v1443_v54 = vld [vmem:[%s2387_s0 + $0x1d0] sm:$0xf]  ;;  %53 = vst [vmem:[#allocation0 + $0x3b0] sm:$0xf] %v1441_v52  ;;  %58 = vst [vmem:[#allocation0 + $0x3a8] sm:$0xf] %v1442_v53 }
  0x4a   :  { %v882_v55 = vld [vmem:[#allocation0 + $0x183] ss:$8 sm:$0xf0]   ;;  %63 = vst [vmem:[#allocation0 + $0x3a0] sm:$0xf] %v1443_v54 }
  0x4b   :  { %v1444_v56 = vld [vmem:[%s2387_s0 + $0x1cc] sm:$0xf]  ;;  %v1445_v57 = vld [vmem:[%s2387_s0 + $0x1c8] sm:$0xf]  ;;  %v1446_v58 = vld [vmem:[%s2387_s0 + $0x1c4] sm:$0xf] }
  0x4c   :  { %68 = vst [vmem:[#allocation0 + $0x398] sm:$0xf] %v1444_v56  ;;  %v1447_v59 = vld [vmem:[%s2387_s0 + $0x1c0] sm:$0xf]  ;;  %73 = vst [vmem:[#allocation0 + $0x390] sm:$0xf] %v1445_v57 }
  0x4d   :  { %v880_v60 = vld [vmem:[#allocation0 + $0x183] ss:$8 sm:$0xf]   ;;  %78 = vst [vmem:[#allocation0 + $0x388] sm:$0xf] %v1446_v58 }
  0x4e   :  { %83 = vst [vmem:[#allocation0 + $0x380] sm:$0xf] %v1447_v59  ;;  %v1528_v61 = vld [vmem:[%s2387_s0 + $0x7c] sm:$0xf]  ;;  %v884_v62 = vsel %vm642_vm0, %v882_v55, %v880_v60  ;;  %v1529_v0 = vld [vmem:[%s2387_s0 + $0x78] sm:$0xf] }
  0x4f   :  { %v893_v63 = vld [vmem:[#allocation0 + $0x283] ss:$8 sm:$0xf0]   ;;  %488 = vst [vmem:[#allocation0 + $0xf8] sm:$0xf] %v1528_v61  ;;  %885 = vrot.lane.b32.xlu1 %v884_v62, %s1622_s10 }
  0x50   :  { %493 = vst [vmem:[#allocation0 + $0xf0] sm:$0xf] %v1529_v0  ;;  %v1530_v1 = vld [vmem:[%s2387_s0 + $0x74] sm:$0xf]  ;;  %v1531_v2 = vld [vmem:[%s2387_s0 + $0x70] sm:$0xf] }
  0x51   :  { %v1532_v3 = vld [vmem:[%s2387_s0 + $0x6c] sm:$0xf]  ;;  %v891_v4 = vld [vmem:[#allocation0 + $0x283] ss:$8 sm:$0xf]  }
  0x52   :  { %498 = vst [vmem:[#allocation0 + $0xe8] sm:$0xf] %v1530_v1  ;;  %503 = vst [vmem:[#allocation0 + $0xe0] sm:$0xf] %v1531_v2  ;;  %v1533_v5 = vld [vmem:[%s2387_s0 + $0x68] sm:$0xf]  ;;  %v895_v6 = vsel %vm642_vm0, %v893_v63, %v891_v4 }
  0x53   :  { %508 = vst [vmem:[#allocation0 + $0xd8] sm:$0xf] %v1532_v3  ;;  %513 = vst [vmem:[#allocation0 + $0xd0] sm:$0xf] %v1533_v5  ;;  %v1534_v7 = vld [vmem:[%s2387_s0 + $0x64] sm:$0xf]  ;;  %896 = vrot.lane.b32.xlu0 %v895_v6, %s1622_s10 }
  0x54   :  { %v1535_v8 = vld [vmem:[%s2387_s0 + $0x60] sm:$0xf]  ;;  %v1496_v9 = vld [vmem:[%s2387_s0 + $0xfc] sm:$0xf]  ;;  %518 = vst [vmem:[#allocation0 + $0xc8] sm:$0xf] %v1534_v7 }
  0x55   :  { %v904_v10 = vld [vmem:[#allocation0 + $0x383] ss:$8 sm:$0xf0]   ;;  %523 = vst [vmem:[#allocation0 + $0xc0] sm:$0xf] %v1535_v8 }
  0x56   :  { %328 = vst [vmem:[#allocation0 + $0x1f8] sm:$0xf] %v1496_v9  ;;  %v1497_v11 = vld [vmem:[%s2387_s0 + $0xf8] sm:$0xf]  ;;  %v1498_v12 = vld [vmem:[%s2387_s0 + $0xf4] sm:$0xf] }
  0x57   :  { %333 = vst [vmem:[#allocation0 + $0x1f0] sm:$0xf] %v1497_v11  ;;  %v1499_v13 = vld [vmem:[%s2387_s0 + $0xf0] sm:$0xf]  ;;  %v1500_v14 = vld [vmem:[%s2387_s0 + $0xec] sm:$0xf] }
  0x58   :  { %v902_v15 = vld [vmem:[#allocation0 + $0x383] ss:$8 sm:$0xf]   ;;  %338 = vst [vmem:[#allocation0 + $0x1e8] sm:$0xf] %v1498_v12 }
  0x59   :  { %343 = vst [vmem:[#allocation0 + $0x1e0] sm:$0xf] %v1499_v13  ;;  %348 = vst [vmem:[#allocation0 + $0x1d8] sm:$0xf] %v1500_v14  ;;  %v1501_v16 = vld [vmem:[%s2387_s0 + $0xe8] sm:$0xf]  ;;  %v906_v17 = vsel %vm642_vm0, %v904_v10, %v902_v15 }
  0x5a   :  { %353 = vst [vmem:[#allocation0 + $0x1d0] sm:$0xf] %v1501_v16  ;;  %v1502_v18 = vld [vmem:[%s2387_s0 + $0xe4] sm:$0xf]  ;;  %v1503_v19 = vld [vmem:[%s2387_s0 + $0xe0] sm:$0xf]  ;;  %907 = vrot.lane.b32.xlu1 %v906_v17, %s1622_s10 }
  0x5b   :  { %v1464_v20 = vld [vmem:[%s2387_s0 + $0x17c] sm:$0xf]  ;;  %358 = vst [vmem:[#allocation0 + $0x1c8] sm:$0xf] %v1502_v18  ;;  %363 = vst [vmem:[#allocation0 + $0x1c0] sm:$0xf] %v1503_v19 }
  0x5c   :  { %168 = vst [vmem:[#allocation0 + $0x2f8] sm:$0xf] %v1464_v20  ;;  %v1465_v21 = vld [vmem:[%s2387_s0 + $0x178] sm:$0xf]  ;;  %v1466_v22 = vld [vmem:[%s2387_s0 + $0x174] sm:$0xf] }
  0x5d   :  { %v1467_v23 = vld [vmem:[%s2387_s0 + $0x170] sm:$0xf]  ;;  %173 = vst [vmem:[#allocation0 + $0x2f0] sm:$0xf] %v1465_v21  ;;  %178 = vst [vmem:[#allocation0 + $0x2e8] sm:$0xf] %v1466_v22 }
  0x5e   :  { %v915_v24 = vld [vmem:[#allocation0 + $0xc3] ss:$8 sm:$0xf0]   ;;  %183 = vst [vmem:[#allocation0 + $0x2e0] sm:$0xf] %v1467_v23 }
  0x5f   :  { %v1468_v25 = vld [vmem:[%s2387_s0 + $0x16c] sm:$0xf]  ;;  %v1469_v26 = vld [vmem:[%s2387_s0 + $0x168] sm:$0xf]  ;;  %v1470_v27 = vld [vmem:[%s2387_s0 + $0x164] sm:$0xf] }
  0x60   :  { %188 = vst [vmem:[#allocation0 + $0x2d8] sm:$0xf] %v1468_v25  ;;  %v1471_v28 = vld [vmem:[%s2387_s0 + $0x160] sm:$0xf]  ;;  %193 = vst [vmem:[#allocation0 + $0x2d0] sm:$0xf] %v1469_v26 }
  0x61   :  { %v913_v29 = vld [vmem:[#allocation0 + $0xc3] ss:$8 sm:$0xf]   ;;  %198 = vst [vmem:[#allocation0 + $0x2c8] sm:$0xf] %v1470_v27 }
  0x62   :  { %203 = vst [vmem:[#allocation0 + $0x2c0] sm:$0xf] %v1471_v28  ;;  %v1432_v30 = vld [vmem:[%s2387_s0 + $0x1fc] sm:$0xf]  ;;  %v917_v31 = vsel %vm642_vm0, %v915_v24, %v913_v29  ;;  %v1433_v32 = vld [vmem:[%s2387_s0 + $0x1f8] sm:$0xf] }
  0x63   :  { %8 = vst [vmem:[#allocation0 + $0x3f8] sm:$0xf] %v1432_v30  ;;  %v1434_v33 = vld [vmem:[%s2387_s0 + $0x1f4] sm:$0xf]  ;;  %v1435_v34 = vld [vmem:[%s2387_s0 + $0x1f0] sm:$0xf]  ;;  %918 = vrot.lane.b32.xlu0 %v917_v31, %s1622_s10 }
  0x64   :  { %v926_v35 = vld [vmem:[#allocation0 + $0x1c3] ss:$8 sm:$0xf0]   ;;  %13 = vst [vmem:[#allocation0 + $0x3f0] sm:$0xf] %v1433_v32 }
  0x65   :  { %18 = vst [vmem:[#allocation0 + $0x3e8] sm:$0xf] %v1434_v33  ;;  %23 = vst [vmem:[#allocation0 + $0x3e0] sm:$0xf] %v1435_v34  ;;  %v1436_v36 = vld [vmem:[%s2387_s0 + $0x1ec] sm:$0xf] }
  0x66   :  { %28 = vst [vmem:[#allocation0 + $0x3d8] sm:$0xf] %v1436_v36  ;;  %v1437_v37 = vld [vmem:[%s2387_s0 + $0x1e8] sm:$0xf]  ;;  %v1438_v38 = vld [vmem:[%s2387_s0 + $0x1e4] sm:$0xf] }
  0x67   :  { %v1439_v39 = vld [vmem:[%s2387_s0 + $0x1e0] sm:$0xf]  ;;  %33 = vst [vmem:[#allocation0 + $0x3d0] sm:$0xf] %v1437_v37  ;;  %38 = vst [vmem:[#allocation0 + $0x3c8] sm:$0xf] %v1438_v38 }
  0x68   :  { %v924_v40 = vld [vmem:[#allocation0 + $0x1c3] ss:$8 sm:$0xf]   ;;  %43 = vst [vmem:[#allocation0 + $0x3c0] sm:$0xf] %v1439_v39  ;;  %s1623_s0 = smov 64  }
  0x69   :  { %v928_v41 = vsel %vm642_vm0, %v926_v35, %v924_v40  ;;  %v937_v42 = vld [vmem:[#allocation0 + $0x2c3] ss:$8 sm:$0xf0]   ;;  %v957_v43 = vld [vmem:[#allocation0 + $0x2] ss:$8 sm:$0xf]  }
  0x6a   :  { %929 = vrot.lane.b32.xlu1 %v928_v41, %s1622_s10  ;;  %v935_v44 = vld [vmem:[#allocation0 + $0x2c3] ss:$8 sm:$0xf]   ;;  %v959_v45 = vld [vmem:[#allocation0 + $0x2] ss:$8 sm:$0xf0]  }
  0x6b   :  { %v939_v46 = vsel %vm642_vm0, %v937_v42, %v935_v44  ;;  %v967_v48 = vld [vmem:[#allocation0 + $0x102] ss:$8 sm:$0xf]   ;;  %v961_v49 = vsel %vm642_vm0, %v959_v45, %v957_v43  ;;  %v1132_v29 = vld [vmem:[#allocation0 + $0x1] ss:$8 sm:$0xf]  }
  0x6c   :  { %940 = vrot.lane.b32.xlu0 %v939_v46, %s1622_s10  ;;  %v948_v47 = vld [vmem:[#allocation0 + $0x3c3] ss:$8 sm:$0xf0]   ;;  %v969_v50 = vld [vmem:[#allocation0 + $0x102] ss:$8 sm:$0xf0]  }
  0x6d   :  { %v978_v51 = vld [vmem:[#allocation0 + $0x202] ss:$8 sm:$0xf]   ;;  %v971_v55 = vsel %vm642_vm0, %v969_v50, %v967_v48  ;;  %v1134_v32 = vld [vmem:[#allocation0 + $0x1] ss:$8 sm:$0xf0]  }
  0x6e   :  { %v980_v53 = vld [vmem:[#allocation0 + $0x202] ss:$8 sm:$0xf0]   ;;  %v640_v33 = vld [vmem:[#allocation0] ss:$8 sm:$0xf]  }
  0x6f   :  { %v946_v52 = vld [vmem:[#allocation0 + $0x3c3] ss:$8 sm:$0xf]   ;;  %v982_v56 = vsel %vm642_vm0, %v980_v53, %v978_v51  ;;  %v989_v57 = vld [vmem:[#allocation0 + $0x302] ss:$8 sm:$0xf]  }
  0x70   :  { %v950_v54 = vsel %vm642_vm0, %v948_v47, %v946_v52  ;;  %962 = vrot.lane.b32.xlu0 %v961_v49, %s1623_s0  ;;  %v991_v58 = vld [vmem:[#allocation0 + $0x302] ss:$8 sm:$0xf0]   ;;  %v641_v34 = vld [vmem:[#allocation0] ss:$8 sm:$0xf0]   ;;  %v1136_v47 = vsel %vm642_vm0, %v1134_v32, %v1132_v29 }
  0x71   :  { %951 = vrot.lane.b32.xlu1 %v950_v54, %s1622_s10  ;;  %v1000_v59 = vld [vmem:[#allocation0 + $0x42] ss:$8 sm:$0xf]   ;;  %v993_v61 = vsel %vm642_vm0, %v991_v58, %v989_v57  ;;  %v710_v35 = vld [vmem:[#allocation0 + $0x200] ss:$8 sm:$0xf]   ;;  %v643_v36 = vsel %vm642_vm0, %v641_v34, %v640_v33 }
  0x72   :  { %v1002_v60 = vld [vmem:[#allocation0 + $0x42] ss:$8 sm:$0xf0]   ;;  %v712_v37 = vld [vmem:[#allocation0 + $0x200] ss:$8 sm:$0xf0]  }
  0x73   :  { %v1004_v62 = vsel %vm642_vm0, %v1002_v60, %v1000_v59  ;;  %v1011_v63 = vld [vmem:[#allocation0 + $0x142] ss:$8 sm:$0xf]   ;;  %v674_v38 = vld [vmem:[#allocation0 + $0x100] ss:$8 sm:$0xf]   ;;  %v714_v43 = vsel %vm642_vm0, %v712_v37, %v710_v35 }
  0x74   :  { %983 = vrot.lane.b32.xlu0 %v982_v56, %s1623_s0  ;;  %v1013_v0 = vld [vmem:[#allocation0 + $0x142] ss:$8 sm:$0xf0]   ;;  %v1142_v39 = vld [vmem:[#allocation0 + $0x101] ss:$8 sm:$0xf]  }
  0x75   :  { %972 = vrot.lane.b32.xlu1 %v971_v55, %s1623_s0  ;;  %v1022_v1 = vld [vmem:[#allocation0 + $0x242] ss:$8 sm:$0xf]   ;;  %v1015_v3 = vsel %vm642_vm0, %v1013_v0, %v1011_v63  ;;  %v1144_v40 = vld [vmem:[#allocation0 + $0x101] ss:$8 sm:$0xf0]  }
  0x76   :  { %v1024_v2 = vld [vmem:[#allocation0 + $0x242] ss:$8 sm:$0xf0]   ;;  %v1153_v41 = vld [vmem:[#allocation0 + $0x201] ss:$8 sm:$0xf]   ;;  %v1146_v0 = vsel %vm642_vm0, %v1144_v40, %v1142_v39 }
  0x77   :  { %v1026_v4 = vsel %vm642_vm0, %v1024_v2, %v1022_v1  ;;  %v1033_v5 = vld [vmem:[#allocation0 + $0x342] ss:$8 sm:$0xf]   ;;  %v1155_v42 = vld [vmem:[#allocation0 + $0x201] ss:$8 sm:$0xf0]  }
  0x78   :  { %1005 = vrot.lane.b32.xlu0 %v1004_v62, %s1623_s0  ;;  %v1035_v6 = vld [vmem:[#allocation0 + $0x342] ss:$8 sm:$0xf0]   ;;  %645 = vst.msk [vmem:[%s2388_s1] sm:$0xff] %vm644_vm1, %v643_v36   ;;  %1566 = vst.msk [vmem:[%s2388_s1 + $0x40] sm:$0xff] %vm644_vm1, %v714_v43   ;;  %v1157_v1 = vsel %vm642_vm0, %v1155_v42, %v1153_v41 }
  0x79   :  { %994 = vrot.lane.b32.xlu1 %v993_v61, %s1623_s0  ;;  %v1044_v7 = vld [vmem:[#allocation0 + $0x82] ss:$8 sm:$0xf]   ;;  %v1037_v9 = vsel %vm642_vm0, %v1035_v6, %v1033_v5  ;;  %v676_v44 = vld [vmem:[#allocation0 + $0x100] ss:$8 sm:$0xf0]  }
  0x7a   :  { %v1046_v8 = vld [vmem:[#allocation0 + $0x82] ss:$8 sm:$0xf0]   ;;  %v746_v45 = vld [vmem:[#allocation0 + $0x300] ss:$8 sm:$0xf]   ;;  %v678_v48 = vsel %vm642_vm0, %v676_v44, %v674_v38 }
  0x7b   :  { %v1048_v10 = vsel %vm642_vm0, %v1046_v8, %v1044_v7  ;;  %v1055_v11 = vld [vmem:[#allocation0 + $0x182] ss:$8 sm:$0xf]   ;;  %v748_v49 = vld [vmem:[#allocation0 + $0x300] ss:$8 sm:$0xf0]  }
  0x7c   :  { %1027 = vrot.lane.b32.xlu0 %v1026_v4, %s1623_s0  ;;  %v1057_v12 = vld [vmem:[#allocation0 + $0x182] ss:$8 sm:$0xf0]   ;;  %v647_v50 = vld [vmem:[#allocation0 + $0x40] ss:$8 sm:$0xf]   ;;  %v750_v51 = vsel %vm642_vm0, %v748_v49, %v746_v45 }
  0x7d   :  { %1016 = vrot.lane.b32.xlu1 %v1015_v3, %s1623_s0  ;;  %v1066_v13 = vld [vmem:[#allocation0 + $0x282] ss:$8 sm:$0xf]   ;;  %v1059_v15 = vsel %vm642_vm0, %v1057_v12, %v1055_v11  ;;  %1562 = vst.msk [vmem:[%s2388_s1 + $0x20] sm:$0xff] %vm644_vm1, %v678_v48   ;;  %1570 = vst.msk [vmem:[%s2388_s1 + $0x60] sm:$0xff] %vm644_vm1, %v750_v51  }
  0x7e   :  { %v1068_v14 = vld [vmem:[#allocation0 + $0x282] ss:$8 sm:$0xf0]   ;;  %v649_v52 = vld [vmem:[#allocation0 + $0x40] ss:$8 sm:$0xf0]  }
  0x7f   :  { %v1070_v16 = vsel %vm642_vm0, %v1068_v14, %v1066_v13  ;;  %v1077_v17 = vld [vmem:[#allocation0 + $0x382] ss:$8 sm:$0xf]   ;;  %v683_v53 = vld [vmem:[#allocation0 + $0x140] ss:$8 sm:$0xf]   ;;  %v651_v54 = vsel %vm642_vm0, %v649_v52, %v647_v50 }
  0x80   :  { %1049 = vrot.lane.b32.xlu0 %v1048_v10, %s1623_s0  ;;  %v1079_v18 = vld [vmem:[#allocation0 + $0x382] ss:$8 sm:$0xf0]   ;;  %v685_v55 = vld [vmem:[#allocation0 + $0x140] ss:$8 sm:$0xf0]  }
  0x81   :  { %1038 = vrot.lane.b32.xlu1 %v1037_v9, %s1623_s0  ;;  %v1088_v19 = vld [vmem:[#allocation0 + $0xc2] ss:$8 sm:$0xf]   ;;  %v1081_v21 = vsel %vm642_vm0, %v1079_v18, %v1077_v17  ;;  %v719_v56 = vld [vmem:[#allocation0 + $0x240] ss:$8 sm:$0xf]   ;;  %v687_v61 = vsel %vm642_vm0, %v685_v55, %v683_v53 }
  0x82   :  { %v1090_v20 = vld [vmem:[#allocation0 + $0xc2] ss:$8 sm:$0xf0]   ;;  %v1164_v57 = vld [vmem:[#allocation0 + $0x301] ss:$8 sm:$0xf]  }
  0x83   :  { %v1092_v22 = vsel %vm642_vm0, %v1090_v20, %v1088_v19  ;;  %v1099_v23 = vld [vmem:[#allocation0 + $0x1c2] ss:$8 sm:$0xf]   ;;  %v1166_v58 = vld [vmem:[#allocation0 + $0x301] ss:$8 sm:$0xf0]  }
  0x84   :  { %1071 = vrot.lane.b32.xlu0 %v1070_v16, %s1623_s0  ;;  %v1101_v24 = vld [vmem:[#allocation0 + $0x1c2] ss:$8 sm:$0xf0]   ;;  %v1175_v59 = vld [vmem:[#allocation0 + $0x41] ss:$8 sm:$0xf]   ;;  %v1168_v18 = vsel %vm642_vm0, %v1166_v58, %v1164_v57 }
  0x85   :  { %1060 = vrot.lane.b32.xlu1 %v1059_v15, %s1623_s0  ;;  %v1110_v25 = vld [vmem:[#allocation0 + $0x2c2] ss:$8 sm:$0xf]   ;;  %v1103_v30 = vsel %vm642_vm0, %v1101_v24, %v1099_v23  ;;  %v1177_v60 = vld [vmem:[#allocation0 + $0x41] ss:$8 sm:$0xf0]  }
  0x86   :  { %v1112_v26 = vld [vmem:[#allocation0 + $0x2c2] ss:$8 sm:$0xf0]   ;;  %1559 = vst.msk [vmem:[%s2388_s1 + $0x8] sm:$0xff] %vm644_vm1, %v651_v54   ;;  %1563 = vst.msk [vmem:[%s2388_s1 + $0x28] sm:$0xff] %vm644_vm1, %v687_v61   ;;  %v1179_v19 = vsel %vm642_vm0, %v1177_v60, %v1175_v59 }
  0x87   :  { %v1121_v27 = vld [vmem:[#allocation0 + $0x3c2] ss:$8 sm:$0xf]   ;;  %v1114_v31 = vsel %vm642_vm0, %v1112_v26, %v1110_v25  ;;  %v721_v62 = vld [vmem:[#allocation0 + $0x240] ss:$8 sm:$0xf0]   ;;  %v788_v59 = vpop.permute.xlu0 %787  }
  0x88   :  { %1093 = vrot.lane.b32.xlu0 %v1092_v22, %s1623_s0  ;;  %v1123_v28 = vld [vmem:[#allocation0 + $0x3c2] ss:$8 sm:$0xf0]   ;;  %v755_v63 = vld [vmem:[#allocation0 + $0x340] ss:$8 sm:$0xf]   ;;  %v723_v2 = vsel %vm642_vm0, %v721_v62, %v719_v56 }
  0x89   :  { %1082 = vrot.lane.b32.xlu1 %v1081_v21, %s1623_s0  ;;  %v1125_v46 = vsel %vm642_vm0, %v1123_v28, %v1121_v27  ;;  %v757_v3 = vld [vmem:[#allocation0 + $0x340] ss:$8 sm:$0xf0]   ;;  %1567 = vst.msk [vmem:[%s2388_s1 + $0x48] sm:$0xff] %vm644_vm1, %v723_v2  }
  0x8a   :  { %v656_v4 = vld [vmem:[#allocation0 + $0x80] ss:$8 sm:$0xf]   ;;  %v759_v5 = vsel %vm642_vm0, %v757_v3, %v755_v63  ;;  %v1186_v11 = vld [vmem:[#allocation0 + $0x141] ss:$8 sm:$0xf]  }
  0x8b   :  { %v658_v6 = vld [vmem:[#allocation0 + $0x80] ss:$8 sm:$0xf0]   ;;  %1571 = vst.msk [vmem:[%s2388_s1 + $0x68] sm:$0xff] %vm644_vm1, %v759_v5  }
  0x8c   :  { %1115 = vrot.lane.b32.xlu0 %v1114_v31, %s1623_s0  ;;  %v692_v7 = vld [vmem:[#allocation0 + $0x180] ss:$8 sm:$0xf]   ;;  %v660_v8 = vsel %vm642_vm0, %v658_v6, %v656_v4  ;;  %v1188_v12 = vld [vmem:[#allocation0 + $0x141] ss:$8 sm:$0xf0]  }
  0x8d   :  { %1104 = vrot.lane.b32.xlu1 %v1103_v30, %s1623_s0  ;;  %v694_v9 = vld [vmem:[#allocation0 + $0x180] ss:$8 sm:$0xf0]   ;;  %v1197_v13 = vld [vmem:[#allocation0 + $0x241] ss:$8 sm:$0xf]   ;;  %v1190_v33 = vsel %vm642_vm0, %v1188_v12, %v1186_v11 }
  0x8e   :  { %v728_v10 = vld [vmem:[#allocation0 + $0x280] ss:$8 sm:$0xf]   ;;  %v1199_v14 = vld [vmem:[#allocation0 + $0x241] ss:$8 sm:$0xf0]   ;;  %v696_v15 = vsel %vm642_vm0, %v694_v9, %v692_v7 }
  0x8f   :  { %1560 = vst.msk [vmem:[%s2388_s1 + $0x10] sm:$0xff] %vm644_vm1, %v660_v8   ;;  %v730_v16 = vld [vmem:[#allocation0 + $0x280] ss:$8 sm:$0xf0]   ;;  %1564 = vst.msk [vmem:[%s2388_s1 + $0x30] sm:$0xff] %vm644_vm1, %v696_v15   ;;  %v1201_v34 = vsel %vm642_vm0, %v1199_v14, %v1197_v13 }
  0x90   :  { %1137 = vrot.lane.b32.xlu0 %v1136_v47, %s1624_s16  ;;  %v764_v17 = vld [vmem:[#allocation0 + $0x380] ss:$8 sm:$0xf]   ;;  %v732_v20 = vsel %vm642_vm0, %v730_v16, %v728_v10  ;;  %v1208_v29 = vld [vmem:[#allocation0 + $0x341] ss:$8 sm:$0xf]   ;;  %v798_v2 = vpop.permute.xlu0 %797  }
  0x91   :  { %1126 = vrot.lane.b32.xlu1 %v1125_v46, %s1623_s0  ;;  %v766_v21 = vld [vmem:[#allocation0 + $0x380] ss:$8 sm:$0xf0]   ;;  %1568 = vst.msk [vmem:[%s2388_s1 + $0x50] sm:$0xff] %vm644_vm1, %v732_v20  }
  0x92   :  { %v665_v22 = vld [vmem:[#allocation0 + $0xc0] ss:$8 sm:$0xf]   ;;  %v768_v23 = vsel %vm642_vm0, %v766_v21, %v764_v17  ;;  %v1210_v35 = vld [vmem:[#allocation0 + $0x341] ss:$8 sm:$0xf0]  }
  0x93   :  { %v667_v24 = vld [vmem:[#allocation0 + $0xc0] ss:$8 sm:$0xf0]   ;;  %1572 = vst.msk [vmem:[%s2388_s1 + $0x70] sm:$0xff] %vm644_vm1, %v768_v23   ;;  %v1212_v41 = vsel %vm642_vm0, %v1210_v35, %v1208_v29 }
  0x94   :  { %1158 = vrot.lane.b32.xlu0 %v1157_v1, %s1624_s16  ;;  %v701_v25 = vld [vmem:[#allocation0 + $0x1c0] ss:$8 sm:$0xf]   ;;  %v669_v26 = vsel %vm642_vm0, %v667_v24, %v665_v22  ;;  %v1219_v38 = vld [vmem:[#allocation0 + $0x81] ss:$8 sm:$0xf]  }
  0x95   :  { %1147 = vrot.lane.b32.xlu1 %v1146_v0, %s1624_s16  ;;  %v703_v27 = vld [vmem:[#allocation0 + $0x1c0] ss:$8 sm:$0xf0]   ;;  %1561 = vst.msk [vmem:[%s2388_s1 + $0x18] sm:$0xff] %vm644_vm1, %v669_v26   ;;  %v809_v0 = vpop.permute.xlu1 %808  }
  0x96   :  { %v737_v28 = vld [vmem:[#allocation0 + $0x2c0] ss:$8 sm:$0xf]   ;;  %v705_v30 = vsel %vm642_vm0, %v703_v27, %v701_v25  ;;  %v1221_v39 = vld [vmem:[#allocation0 + $0x81] ss:$8 sm:$0xf0]  }
  0x97   :  { %v739_v31 = vld [vmem:[#allocation0 + $0x2c0] ss:$8 sm:$0xf0]   ;;  %1565 = vst.msk [vmem:[%s2388_s1 + $0x38] sm:$0xff] %vm644_vm1, %v705_v30   ;;  %v1223_v42 = vsel %vm642_vm0, %v1221_v39, %v1219_v38 }
  0x98   :  { %1180 = vrot.lane.b32.xlu0 %v1179_v19, %s1624_s16  ;;  %v773_v32 = vld [vmem:[#allocation0 + $0x3c0] ss:$8 sm:$0xf]   ;;  %v741_v36 = vsel %vm642_vm0, %v739_v31, %v737_v28  ;;  %v1230_v43 = vld [vmem:[#allocation0 + $0x181] ss:$8 sm:$0xf]  }
  0x99   :  { %1169 = vrot.lane.b32.xlu1 %v1168_v18, %s1624_s16  ;;  %v775_v37 = vld [vmem:[#allocation0 + $0x3c0] ss:$8 sm:$0xf0]   ;;  %1569 = vst.msk [vmem:[%s2388_s1 + $0x58] sm:$0xff] %vm644_vm1, %v741_v36   ;;  %v820_v3 = vpop.permute.xlu1 %819  }
  0x9a   :  { %v777_v40 = vsel %vm642_vm0, %v775_v37, %v773_v32  ;;  %v1232_v44 = vld [vmem:[#allocation0 + $0x181] ss:$8 sm:$0xf0]   ;;  %790 = vst.msk [vmem:[%s2388_s1] sm:$0xff] %vm789_vm2, %v788_v59   ;;  %1575 = vst.msk [vmem:[%s2388_s1 + $0x40] sm:$0xff] %vm789_vm2, %v809_v0  }
  0x9b   :  { %1573 = vst.msk [vmem:[%s2388_s1 + $0x78] sm:$0xff] %vm644_vm1, %v777_v40   ;;  %v1241_v45 = vld [vmem:[#allocation0 + $0x281] ss:$8 sm:$0xf]   ;;  %v1234_v47 = vsel %vm642_vm0, %v1232_v44, %v1230_v43 }
  0x9c   :  { %1202 = vrot.lane.b32.xlu0 %v1201_v34, %s1624_s16  ;;  %v1243_v46 = vld [vmem:[#allocation0 + $0x281] ss:$8 sm:$0xf0]   ;;  %1574 = vst.msk [vmem:[%s2388_s1 + $0x20] sm:$0xff] %vm789_vm2, %v798_v2   ;;  %1576 = vst.msk [vmem:[%s2388_s1 + $0x60] sm:$0xff] %vm789_vm2, %v820_v3  }
  0x9d   :  { %1191 = vrot.lane.b32.xlu1 %v1190_v33, %s1624_s16  ;;  %v1245_v48 = vsel %vm642_vm0, %v1243_v46, %v1241_v45  ;;  %v1252_v49 = vld [vmem:[#allocation0 + $0x381] ss:$8 sm:$0xf]  }
  0x9e   :  { %v1254_v50 = vld [vmem:[#allocation0 + $0x381] ss:$8 sm:$0xf0]  }
  0x9f   :  { %v1263_v51 = vld [vmem:[#allocation0 + $0xc1] ss:$8 sm:$0xf]   ;;  %v1256_v53 = vsel %vm642_vm0, %v1254_v50, %v1252_v49 }
  0xa0   :  { %1224 = vrot.lane.b32.xlu0 %v1223_v42, %s1624_s16  ;;  %v1265_v52 = vld [vmem:[#allocation0 + $0xc1] ss:$8 sm:$0xf0]   ;;  %v831_v4 = vpop.permute.xlu0 %830  }
  0xa1   :  { %1213 = vrot.lane.b32.xlu1 %v1212_v41, %s1624_s16  ;;  %v1267_v54 = vsel %vm642_vm0, %v1265_v52, %v1263_v51  ;;  %v1274_v55 = vld [vmem:[#allocation0 + $0x1c1] ss:$8 sm:$0xf]   ;;  %1577 = vst.msk [vmem:[%s2388_s1 + $0x8] sm:$0xff] %vm789_vm2, %v831_v4  }
  0xa2   :  { %v1276_v56 = vld [vmem:[#allocation0 + $0x1c1] ss:$8 sm:$0xf0]  }
  0xa3   :  { %v1285_v57 = vld [vmem:[#allocation0 + $0x2c1] ss:$8 sm:$0xf]   ;;  %v1278_v60 = vsel %vm642_vm0, %v1276_v56, %v1274_v55 }
  0xa4   :  { %1246 = vrot.lane.b32.xlu0 %v1245_v48, %s1624_s16  ;;  %v1287_v58 = vld [vmem:[#allocation0 + $0x2c1] ss:$8 sm:$0xf0]  }
  0xa5   :  { %1235 = vrot.lane.b32.xlu1 %v1234_v47, %s1624_s16  ;;  %v1289_v61 = vsel %vm642_vm0, %v1287_v58, %v1285_v57  ;;  %v1296_v62 = vld [vmem:[#allocation0 + $0x3c1] ss:$8 sm:$0xf]  }
  0xa6   :  { %v1298_v63 = vld [vmem:[#allocation0 + $0x3c1] ss:$8 sm:$0xf0]   ;;  %v842_v5 = vpop.permute.xlu1 %841  }
  0xa7   :  { %v1300_v1 = vsel %vm642_vm0, %v1298_v63, %v1296_v62  ;;  %1578 = vst.msk [vmem:[%s2388_s1 + $0x28] sm:$0xff] %vm789_vm2, %v842_v5  }
  0xa8   :  { %1268 = vrot.lane.b32.xlu0 %v1267_v54, %s1624_s16 }
  0xa9   :  { %1257 = vrot.lane.b32.xlu1 %v1256_v53, %s1624_s16 }
  0xab   :  { %v853_v6 = vpop.permute.xlu0 %852  }
  0xac   :  { %1290 = vrot.lane.b32.xlu0 %v1289_v61, %s1624_s16  ;;  %1579 = vst.msk [vmem:[%s2388_s1 + $0x48] sm:$0xff] %vm789_vm2, %v853_v6  }
  0xad   :  { %1279 = vrot.lane.b32.xlu1 %v1278_v60, %s1624_s16 }
  0xb1   :  { %1301 = vrot.lane.b32.xlu1 %v1300_v1, %s1624_s16  ;;  %v864_v7 = vpop.permute.xlu1 %863  }
  0xb2   :  { %1580 = vst.msk [vmem:[%s2388_s1 + $0x68] sm:$0xff] %vm789_vm2, %v864_v7  }
  0xba   :  { %v875_v8 = vpop.permute.xlu0 %874  }
  0xbb   :  { %1581 = vst.msk [vmem:[%s2388_s1 + $0x10] sm:$0xff] %vm789_vm2, %v875_v8  }
  0xc1   :  { %v886_v9 = vpop.permute.xlu1 %885  }
  0xc2   :  { %1582 = vst.msk [vmem:[%s2388_s1 + $0x30] sm:$0xff] %vm789_vm2, %v886_v9  }
  0xc5   :  { %v897_v10 = vpop.permute.xlu0 %896  }
  0xc6   :  { %1583 = vst.msk [vmem:[%s2388_s1 + $0x50] sm:$0xff] %vm789_vm2, %v897_v10  }
  0xcc   :  { %v908_v11 = vpop.permute.xlu1 %907  }
  0xcd   :  { %1584 = vst.msk [vmem:[%s2388_s1 + $0x70] sm:$0xff] %vm789_vm2, %v908_v11  }
  0xd5   :  { %v919_v12 = vpop.permute.xlu0 %918  }
  0xd6   :  { %1585 = vst.msk [vmem:[%s2388_s1 + $0x18] sm:$0xff] %vm789_vm2, %v919_v12  }
  0xdc   :  { %v930_v13 = vpop.permute.xlu1 %929  }
  0xdd   :  { %1586 = vst.msk [vmem:[%s2388_s1 + $0x38] sm:$0xff] %vm789_vm2, %v930_v13  }
  0xde   :  { %v941_v14 = vpop.permute.xlu0 %940  }
  0xdf   :  { %1587 = vst.msk [vmem:[%s2388_s1 + $0x58] sm:$0xff] %vm789_vm2, %v941_v14  }
  0xe2   :  { %v963_v16 = vpop.permute.xlu0 %962  }
  0xe3   :  { %v952_v15 = vpop.permute.xlu1 %951   ;;  %965 = vst.msk [vmem:[%s2388_s1] sm:$0xff] %vm964_vm3, %v963_v16  }
  0xe4   :  { %1588 = vst.msk [vmem:[%s2388_s1 + $0x78] sm:$0xff] %vm789_vm2, %v952_v15  }
  0xe6   :  { %v984_v18 = vpop.permute.xlu0 %983  }
  0xe7   :  { %v973_v17 = vpop.permute.xlu1 %972   ;;  %1590 = vst.msk [vmem:[%s2388_s1 + $0x40] sm:$0xff] %vm964_vm3, %v984_v18  }
  0xe8   :  { %1589 = vst.msk [vmem:[%s2388_s1 + $0x20] sm:$0xff] %vm964_vm3, %v973_v17  }
  0xea   :  { %v1006_v20 = vpop.permute.xlu0 %1005  }
  0xeb   :  { %v995_v19 = vpop.permute.xlu1 %994   ;;  %1592 = vst.msk [vmem:[%s2388_s1 + $0x8] sm:$0xff] %vm964_vm3, %v1006_v20  }
  0xec   :  { %1591 = vst.msk [vmem:[%s2388_s1 + $0x60] sm:$0xff] %vm964_vm3, %v995_v19  }
  0xee   :  { %v1028_v22 = vpop.permute.xlu0 %1027  }
  0xef   :  { %v1017_v21 = vpop.permute.xlu1 %1016   ;;  %1594 = vst.msk [vmem:[%s2388_s1 + $0x48] sm:$0xff] %vm964_vm3, %v1028_v22  }
  0xf0   :  { %1593 = vst.msk [vmem:[%s2388_s1 + $0x28] sm:$0xff] %vm964_vm3, %v1017_v21  }
  0xf2   :  { %v1050_v24 = vpop.permute.xlu0 %1049  }
  0xf3   :  { %v1039_v23 = vpop.permute.xlu1 %1038   ;;  %1596 = vst.msk [vmem:[%s2388_s1 + $0x10] sm:$0xff] %vm964_vm3, %v1050_v24  }
  0xf4   :  { %1595 = vst.msk [vmem:[%s2388_s1 + $0x68] sm:$0xff] %vm964_vm3, %v1039_v23  }
  0xf6   :  { %v1072_v26 = vpop.permute.xlu0 %1071  }
  0xf7   :  { %v1061_v25 = vpop.permute.xlu1 %1060   ;;  %1598 = vst.msk [vmem:[%s2388_s1 + $0x50] sm:$0xff] %vm964_vm3, %v1072_v26  }
  0xf8   :  { %1597 = vst.msk [vmem:[%s2388_s1 + $0x30] sm:$0xff] %vm964_vm3, %v1061_v25  }
  0xfa   :  { %v1094_v28 = vpop.permute.xlu0 %1093  }
  0xfb   :  { %v1083_v27 = vpop.permute.xlu1 %1082   ;;  %1600 = vst.msk [vmem:[%s2388_s1 + $0x18] sm:$0xff] %vm964_vm3, %v1094_v28  }
  0xfc   :  { %1599 = vst.msk [vmem:[%s2388_s1 + $0x70] sm:$0xff] %vm964_vm3, %v1083_v27  }
  0xfe   :  { %v1116_v30 = vpop.permute.xlu0 %1115  }
  0xff   :  { %v1105_v29 = vpop.permute.xlu1 %1104   ;;  %1602 = vst.msk [vmem:[%s2388_s1 + $0x58] sm:$0xff] %vm964_vm3, %v1116_v30  }
 0x100   :  { %1601 = vst.msk [vmem:[%s2388_s1 + $0x38] sm:$0xff] %vm964_vm3, %v1105_v29  }
 0x102   :  { %v1138_v32 = vpop.permute.xlu0 %1137  }
 0x103   :  { %v1127_v31 = vpop.permute.xlu1 %1126   ;;  %1140 = vst.msk [vmem:[%s2388_s1] sm:$0xff] %vm1139_vm4, %v1138_v32  }
 0x104   :  { %1603 = vst.msk [vmem:[%s2388_s1 + $0x78] sm:$0xff] %vm964_vm3, %v1127_v31  }
 0x106   :  { %v1159_v34 = vpop.permute.xlu0 %1158  }
 0x107   :  { %v1148_v33 = vpop.permute.xlu1 %1147   ;;  %1605 = vst.msk [vmem:[%s2388_s1 + $0x40] sm:$0xff] %vm1139_vm4, %v1159_v34  }
 0x108   :  { %1604 = vst.msk [vmem:[%s2388_s1 + $0x20] sm:$0xff] %vm1139_vm4, %v1148_v33  }
 0x10a   :  { %v1181_v36 = vpop.permute.xlu0 %1180  }
 0x10b   :  { %v1170_v35 = vpop.permute.xlu1 %1169   ;;  %1607 = vst.msk [vmem:[%s2388_s1 + $0x8] sm:$0xff] %vm1139_vm4, %v1181_v36  }
 0x10c   :  { %1606 = vst.msk [vmem:[%s2388_s1 + $0x60] sm:$0xff] %vm1139_vm4, %v1170_v35  }
 0x10e   :  { %v1203_v38 = vpop.permute.xlu0 %1202  }
 0x10f   :  { %v1192_v37 = vpop.permute.xlu1 %1191   ;;  %1609 = vst.msk [vmem:[%s2388_s1 + $0x48] sm:$0xff] %vm1139_vm4, %v1203_v38  }
 0x110   :  { %1608 = vst.msk [vmem:[%s2388_s1 + $0x28] sm:$0xff] %vm1139_vm4, %v1192_v37  }
 0x112   :  { %v1225_v40 = vpop.permute.xlu0 %1224  }
 0x113   :  { %v1214_v39 = vpop.permute.xlu1 %1213   ;;  %1611 = vst.msk [vmem:[%s2388_s1 + $0x10] sm:$0xff] %vm1139_vm4, %v1225_v40  }
 0x114   :  { %1610 = vst.msk [vmem:[%s2388_s1 + $0x68] sm:$0xff] %vm1139_vm4, %v1214_v39  }
 0x116   :  { %v1247_v42 = vpop.permute.xlu0 %1246  }
 0x117   :  { %v1236_v41 = vpop.permute.xlu1 %1235   ;;  %1613 = vst.msk [vmem:[%s2388_s1 + $0x50] sm:$0xff] %vm1139_vm4, %v1247_v42  }
 0x118   :  { %1612 = vst.msk [vmem:[%s2388_s1 + $0x30] sm:$0xff] %vm1139_vm4, %v1236_v41  }
 0x11a   :  { %v1269_v44 = vpop.permute.xlu0 %1268  }
 0x11b   :  { %v1258_v43 = vpop.permute.xlu1 %1257   ;;  %1615 = vst.msk [vmem:[%s2388_s1 + $0x18] sm:$0xff] %vm1139_vm4, %v1269_v44  }
 0x11c   :  { %1614 = vst.msk [vmem:[%s2388_s1 + $0x70] sm:$0xff] %vm1139_vm4, %v1258_v43  }
 0x11e   :  { %v1291_v46 = vpop.permute.xlu0 %1290  }
 0x11f   :  { %v1280_v45 = vpop.permute.xlu1 %1279   ;;  %1617 = vst.msk [vmem:[%s2388_s1 + $0x58] sm:$0xff] %vm1139_vm4, %v1291_v46  }
 0x120   :  { %1616 = vst.msk [vmem:[%s2388_s1 + $0x38] sm:$0xff] %vm1139_vm4, %v1280_v45  }
 0x123   :  { %v1302_v47 = vpop.permute.xlu1 %1301  }
 0x124   :  { %1618 = vst.msk [vmem:[%s2388_s1 + $0x78] sm:$0xff] %vm1139_vm4, %v1302_v47  }

// kernel: capsule_layer.1
= control target key start
LH: loop header
LB: loop body
LE: loop exit
PB: predicated region body
PF: predicated region fallthrough
CT: control target
= control target key end

     0   :  { %v6165_v3 = vmov 0.0   ;;  %vm4508_vm0 = vmmov 0   ;;  %vm1240_vm1 = vcmask 261120   ;;  %s6158_s1 = inlined_call_operand.vmem [shape: f32[128,1024], index: 1, kind: input, shape index: {}]   ;;  %s6159_s0 = inlined_call_operand.vmem [shape: f32[8,128], index: 0, kind: input, shape index: {}]   ;;  %s6160_s4 = inlined_call_operand.vmem [shape: f32[128,128], index: 4, kind: input, shape index: {}]   ;;  %s6161_s5 = inlined_call_operand.vmem [shape: f32[1024,32], index: 5, kind: input, shape index: {}]   ;;  %s6162_s2 = inlined_call_operand.vmem [shape: f32[32,32], index: 2, kind: input, shape index: {}]   ;;  %s6163_s3 = inlined_call_operand.vmem [shape: f32[32,1024], index: 3, kind: input, shape index: {}]   ;;  %s6164_s6 = inlined_call_operand.vmem [shape: f32[8,128], index: 6, kind: output, shape index: {}]  }
   0x1   :  { %v25_v0 = vld [vmem:[%s6158_s1 + $0x8] sm:$0xff]  ;;  %v24_v2 = vld [vmem:[%s6158_s1] sm:$0xff]  ;;  %216 = vmatprep.mubr.f32.mxu0 %v6165_v3  ;;  %287 = vmatprep.mubr.f32.mxu1 %v6165_v3  ;;  %v27_v6 = vld [vmem:[%s6158_s1 + $0x18] sm:$0xff] }
   0x2   :  { %v33_v1 = vld [vmem:[%s6158_s1 + $0x48] sm:$0xff]  ;;  %v32_v5 = vld [vmem:[%s6158_s1 + $0x40] sm:$0xff]  ;;  %v35_v7 = vld [vmem:[%s6158_s1 + $0x58] sm:$0xff] }
   0x3   :  { %v3809_v4 = vpack.c.bf16 %v33_v1, %v25_v0  ;;  %v3811_v8 = vpack.c.bf16 %v32_v5, %v24_v2  ;;  %v3841_v9 = vpack.c.bf16 %v35_v7, %v27_v6  ;;  %v41_v10 = vld [vmem:[%s6158_s1 + $0x88] sm:$0xff]  ;;  %v26_v12 = vld [vmem:[%s6158_s1 + $0x10] sm:$0xff]  ;;  %v40_v15 = vld [vmem:[%s6158_s1 + $0x80] sm:$0xff] }
   0x4   :  { %v49_v11 = vld [vmem:[%s6158_s1 + $0xc8] sm:$0xff]  ;;  %v34_v14 = vld [vmem:[%s6158_s1 + $0x50] sm:$0xff]  ;;  %v48_v16 = vld [vmem:[%s6158_s1 + $0xc0] sm:$0xff] }
   0x5   :  { %3810 = vmatprep.subr.bf16.mxu0 %v3809_v4  ;;  %v3813_v13 = vpack.c.bf16 %v49_v11, %v41_v10  ;;  %3842 = vmatprep.subr.bf16.mxu1 %v3841_v9  ;;  %v3843_v17 = vpack.c.bf16 %v34_v14, %v26_v12  ;;  %v3815_v18 = vpack.c.bf16 %v48_v16, %v40_v15  ;;  %v43_v19 = vld [vmem:[%s6158_s1 + $0x98] sm:$0xff]  ;;  %v57_v21 = vld [vmem:[%s6158_s1 + $0x108] sm:$0xff]  ;;  %v42_v24 = vld [vmem:[%s6158_s1 + $0x90] sm:$0xff] }
   0x6   :  { %3812 = vmatpush1.bf16.msra.mxu0 %v3811_v8  ;;  %v51_v20 = vld [vmem:[%s6158_s1 + $0xd8] sm:$0xff]  ;;  %v65_v23 = vld [vmem:[%s6158_s1 + $0x148] sm:$0xff]  ;;  %v50_v25 = vld [vmem:[%s6158_s1 + $0xd0] sm:$0xff] }
   0x7   :  { %3814 = vmatprep.subr.bf16.mxu0 %v3813_v13  ;;  %v3845_v22 = vpack.c.bf16 %v51_v20, %v43_v19  ;;  %3844 = vmatpush1.bf16.msra.mxu1 %v3843_v17  ;;  %v3817_v26 = vpack.c.bf16 %v65_v23, %v57_v21  ;;  %v3847_v27 = vpack.c.bf16 %v50_v25, %v42_v24  ;;  %v56_v28 = vld [vmem:[%s6158_s1 + $0x100] sm:$0xff]  ;;  %v59_v30 = vld [vmem:[%s6158_s1 + $0x118] sm:$0xff]  ;;  %v73_v32 = vld [vmem:[%s6158_s1 + $0x188] sm:$0xff] }
   0x8   :  { %v64_v29 = vld [vmem:[%s6158_s1 + $0x140] sm:$0xff]  ;;  %v67_v31 = vld [vmem:[%s6158_s1 + $0x158] sm:$0xff]  ;;  %v81_v33 = vld [vmem:[%s6158_s1 + $0x1c8] sm:$0xff] }
   0x9   :  { %3846 = vmatprep.subr.bf16.mxu1 %v3845_v22  ;;  %v3819_v34 = vpack.c.bf16 %v64_v29, %v56_v28  ;;  %v3849_v35 = vpack.c.bf16 %v67_v31, %v59_v30  ;;  %v58_v36 = vld [vmem:[%s6158_s1 + $0x110] sm:$0xff]  ;;  %v72_v38 = vld [vmem:[%s6158_s1 + $0x180] sm:$0xff]  ;;  %v3821_v39 = vpack.c.bf16 %v81_v33, %v73_v32  ;;  %v75_v41 = vld [vmem:[%s6158_s1 + $0x198] sm:$0xff] }
   0xa   :  { %3816 = vmatpush1.bf16.msra.mxu0 %v3815_v18  ;;  %v66_v37 = vld [vmem:[%s6158_s1 + $0x150] sm:$0xff]  ;;  %v80_v40 = vld [vmem:[%s6158_s1 + $0x1c0] sm:$0xff]  ;;  %v83_v42 = vld [vmem:[%s6158_s1 + $0x1d8] sm:$0xff] }
   0xb   :  { %3818 = vmatprep.subr.bf16.mxu0 %v3817_v26  ;;  %3848 = vmatpush1.bf16.msra.mxu1 %v3847_v27  ;;  %v3851_v43 = vpack.c.bf16 %v66_v37, %v58_v36  ;;  %v89_v44 = vld [vmem:[%s6158_s1 + $0x208] sm:$0xff]  ;;  %v3853_v46 = vpack.c.bf16 %v83_v42, %v75_v41  ;;  %v74_v47 = vld [vmem:[%s6158_s1 + $0x190] sm:$0xff]  ;;  %v3823_v49 = vpack.c.bf16 %v80_v40, %v72_v38  ;;  %v91_v50 = vld [vmem:[%s6158_s1 + $0x218] sm:$0xff] }
   0xc   :  { %v97_v45 = vld [vmem:[%s6158_s1 + $0x248] sm:$0xff]  ;;  %3850 = vmatprep.subr.bf16.mxu1 %v3849_v35  ;;  %v82_v48 = vld [vmem:[%s6158_s1 + $0x1d0] sm:$0xff]  ;;  %v99_v51 = vld [vmem:[%s6158_s1 + $0x258] sm:$0xff] }
   0xd   :  { %v3825_v52 = vpack.c.bf16 %v97_v45, %v89_v44  ;;  %v88_v53 = vld [vmem:[%s6158_s1 + $0x200] sm:$0xff]  ;;  %v3855_v55 = vpack.c.bf16 %v82_v48, %v74_v47  ;;  %v105_v56 = vld [vmem:[%s6158_s1 + $0x288] sm:$0xff]  ;;  %v3857_v58 = vpack.c.bf16 %v99_v51, %v91_v50  ;;  %v90_v59 = vld [vmem:[%s6158_s1 + $0x210] sm:$0xff] }
   0xe   :  { %3820 = vmatpush1.bf16.msra.mxu0 %v3819_v34  ;;  %v96_v54 = vld [vmem:[%s6158_s1 + $0x240] sm:$0xff]  ;;  %v113_v57 = vld [vmem:[%s6158_s1 + $0x2c8] sm:$0xff]  ;;  %v98_v60 = vld [vmem:[%s6158_s1 + $0x250] sm:$0xff] }
   0xf   :  { %3822 = vmatprep.subr.bf16.mxu0 %v3821_v39  ;;  %3852 = vmatpush1.bf16.msra.mxu1 %v3851_v43  ;;  %v3827_v61 = vpack.c.bf16 %v96_v54, %v88_v53  ;;  %v107_v62 = vld [vmem:[%s6158_s1 + $0x298] sm:$0xff]  ;;  %v3829_v0 = vpack.c.bf16 %v113_v57, %v105_v56  ;;  %v104_v1 = vld [vmem:[%s6158_s1 + $0x280] sm:$0xff]  ;;  %v3859_v4 = vpack.c.bf16 %v98_v60, %v90_v59  ;;  %v121_v5 = vld [vmem:[%s6158_s1 + $0x308] sm:$0xff] }
  0x10   :  { %3854 = vmatprep.subr.bf16.mxu1 %v3853_v46  ;;  %v115_v63 = vld [vmem:[%s6158_s1 + $0x2d8] sm:$0xff]  ;;  %v112_v2 = vld [vmem:[%s6158_s1 + $0x2c0] sm:$0xff]  ;;  %v129_v6 = vld [vmem:[%s6158_s1 + $0x348] sm:$0xff] }
  0x11   :  { %v3861_v7 = vpack.c.bf16 %v115_v63, %v107_v62  ;;  %v106_v8 = vld [vmem:[%s6158_s1 + $0x290] sm:$0xff]  ;;  %v3831_v10 = vpack.c.bf16 %v112_v2, %v104_v1  ;;  %v123_v11 = vld [vmem:[%s6158_s1 + $0x318] sm:$0xff]  ;;  %v3833_v13 = vpack.c.bf16 %v129_v6, %v121_v5  ;;  %v120_v14 = vld [vmem:[%s6158_s1 + $0x300] sm:$0xff] }
  0x12   :  { %3824 = vmatpush1.bf16.msra.mxu0 %v3823_v49  ;;  %v114_v9 = vld [vmem:[%s6158_s1 + $0x2d0] sm:$0xff]  ;;  %v131_v12 = vld [vmem:[%s6158_s1 + $0x358] sm:$0xff]  ;;  %v128_v15 = vld [vmem:[%s6158_s1 + $0x340] sm:$0xff] }
  0x13   :  { %3826 = vmatprep.subr.bf16.mxu0 %v3825_v52  ;;  %3856 = vmatpush1.bf16.msra.mxu1 %v3855_v55  ;;  %v3863_v16 = vpack.c.bf16 %v114_v9, %v106_v8  ;;  %v137_v17 = vld [vmem:[%s6158_s1 + $0x388] sm:$0xff]  ;;  %v3865_v19 = vpack.c.bf16 %v131_v12, %v123_v11  ;;  %v122_v20 = vld [vmem:[%s6158_s1 + $0x310] sm:$0xff]  ;;  %v3835_v22 = vpack.c.bf16 %v128_v15, %v120_v14  ;;  %v139_v23 = vld [vmem:[%s6158_s1 + $0x398] sm:$0xff] }
  0x14   :  { %3858 = vmatprep.subr.bf16.mxu1 %v3857_v58  ;;  %v145_v18 = vld [vmem:[%s6158_s1 + $0x3c8] sm:$0xff]  ;;  %v130_v21 = vld [vmem:[%s6158_s1 + $0x350] sm:$0xff]  ;;  %v147_v24 = vld [vmem:[%s6158_s1 + $0x3d8] sm:$0xff] }
  0x15   :  { %v3837_v25 = vpack.c.bf16 %v145_v18, %v137_v17  ;;  %v136_v26 = vld [vmem:[%s6158_s1 + $0x380] sm:$0xff]  ;;  %v3867_v28 = vpack.c.bf16 %v130_v21, %v122_v20  ;;  %v29_v29 = vld [vmem:[%s6158_s1 + $0x28] sm:$0xff]  ;;  %v3869_v31 = vpack.c.bf16 %v147_v24, %v139_v23  ;;  %v138_v32 = vld [vmem:[%s6158_s1 + $0x390] sm:$0xff] }
  0x16   :  { %3828 = vmatpush1.bf16.msra.mxu0 %v3827_v61  ;;  %v144_v27 = vld [vmem:[%s6158_s1 + $0x3c0] sm:$0xff]  ;;  %v37_v30 = vld [vmem:[%s6158_s1 + $0x68] sm:$0xff]  ;;  %v146_v33 = vld [vmem:[%s6158_s1 + $0x3d0] sm:$0xff] }
  0x17   :  { %3830 = vmatprep.subr.bf16.mxu0 %v3829_v0  ;;  %3860 = vmatpush1.bf16.msra.mxu1 %v3859_v4  ;;  %v3839_v34 = vpack.c.bf16 %v144_v27, %v136_v26  ;;  %v31_v35 = vld [vmem:[%s6158_s1 + $0x38] sm:$0xff]  ;;  %v3873_v37 = vpack.c.bf16 %v37_v30, %v29_v29  ;;  %v28_v38 = vld [vmem:[%s6158_s1 + $0x20] sm:$0xff]  ;;  %v3871_v40 = vpack.c.bf16 %v146_v33, %v138_v32  ;;  %v45_v41 = vld [vmem:[%s6158_s1 + $0xa8] sm:$0xff] }
  0x18   :  { %3862 = vmatprep.subr.bf16.mxu1 %v3861_v7  ;;  %v39_v36 = vld [vmem:[%s6158_s1 + $0x78] sm:$0xff]  ;;  %v36_v39 = vld [vmem:[%s6158_s1 + $0x60] sm:$0xff]  ;;  %v53_v42 = vld [vmem:[%s6158_s1 + $0xe8] sm:$0xff] }
  0x19   :  { %v3905_v43 = vpack.c.bf16 %v39_v36, %v31_v35  ;;  %v30_v44 = vld [vmem:[%s6158_s1 + $0x30] sm:$0xff]  ;;  %v4771_v46 = vld [vmem:[%s6159_s0] sm:$0xff]  ;;  %v3875_v47 = vpack.c.bf16 %v36_v39, %v28_v38  ;;  %v47_v48 = vld [vmem:[%s6158_s1 + $0xb8] sm:$0xff]  ;;  %v3877_v50 = vpack.c.bf16 %v53_v42, %v45_v41 }
  0x1a   :  { %3832 = vmatpush1.bf16.msra.mxu0 %v3831_v10  ;;  %v38_v45 = vld [vmem:[%s6158_s1 + $0x70] sm:$0xff]  ;;  %v55_v49 = vld [vmem:[%s6158_s1 + $0xf8] sm:$0xff]  ;;  %v44_v51 = vld [vmem:[%s6158_s1 + $0xa0] sm:$0xff] }
  0x1b   :  { %3834 = vmatprep.subr.bf16.mxu0 %v3833_v13  ;;  %3864 = vmatpush1.bf16.msra.mxu1 %v3863_v16  ;;  %v52_v52 = vld [vmem:[%s6158_s1 + $0xe0] sm:$0xff]  ;;  %v3907_v53 = vpack.c.bf16 %v38_v45, %v30_v44  ;;  %v61_v54 = vld [vmem:[%s6158_s1 + $0x128] sm:$0xff]  ;;  %v3909_v56 = vpack.c.bf16 %v55_v49, %v47_v48  ;;  %v46_v57 = vld [vmem:[%s6158_s1 + $0xb0] sm:$0xff] }
  0x1c   :  { %3866 = vmatprep.subr.bf16.mxu1 %v3865_v19  ;;  %v69_v55 = vld [vmem:[%s6158_s1 + $0x168] sm:$0xff]  ;;  %v54_v58 = vld [vmem:[%s6158_s1 + $0xf0] sm:$0xff]  ;;  %v3879_v59 = vpack.c.bf16 %v52_v52, %v44_v51  ;;  %v63_v60 = vld [vmem:[%s6158_s1 + $0x138] sm:$0xff] }
  0x1d   :  { %v71_v61 = vld [vmem:[%s6158_s1 + $0x178] sm:$0xff]  ;;  %v3881_v62 = vpack.c.bf16 %v69_v55, %v61_v54  ;;  %v60_v63 = vld [vmem:[%s6158_s1 + $0x120] sm:$0xff]  ;;  %v3911_v1 = vpack.c.bf16 %v54_v58, %v46_v57  ;;  %v77_v2 = vld [vmem:[%s6158_s1 + $0x1a8] sm:$0xff] }
  0x1e   :  { %3836 = vmatpush1.bf16.msra.mxu0 %v3835_v22  ;;  %v68_v0 = vld [vmem:[%s6158_s1 + $0x160] sm:$0xff]  ;;  %v85_v4 = vld [vmem:[%s6158_s1 + $0x1e8] sm:$0xff]  ;;  %v3913_v5 = vpack.c.bf16 %v71_v61, %v63_v60  ;;  %v62_v6 = vld [vmem:[%s6158_s1 + $0x130] sm:$0xff] }
  0x1f   :  { %3838 = vmatprep.subr.bf16.mxu0 %v3837_v25  ;;  %3868 = vmatpush1.bf16.msra.mxu1 %v3867_v28  ;;  %v70_v7 = vld [vmem:[%s6158_s1 + $0x170] sm:$0xff]  ;;  %v3883_v8 = vpack.c.bf16 %v68_v0, %v60_v63  ;;  %v79_v9 = vld [vmem:[%s6158_s1 + $0x1b8] sm:$0xff]  ;;  %v3885_v11 = vpack.c.bf16 %v85_v4, %v77_v2  ;;  %v76_v12 = vld [vmem:[%s6158_s1 + $0x1a0] sm:$0xff] }
  0x20   :  { %3870 = vmatprep.subr.bf16.mxu1 %v3869_v31  ;;  %v87_v10 = vld [vmem:[%s6158_s1 + $0x1f8] sm:$0xff]  ;;  %v84_v13 = vld [vmem:[%s6158_s1 + $0x1e0] sm:$0xff]  ;;  %v3915_v14 = vpack.c.bf16 %v70_v7, %v62_v6  ;;  %v93_v15 = vld [vmem:[%s6158_s1 + $0x228] sm:$0xff]  ;;  %v6191_v6 = vmov 0.0|0.0  }
  0x21   :  { %v101_v16 = vld [vmem:[%s6158_s1 + $0x268] sm:$0xff]  ;;  %v3917_v17 = vpack.c.bf16 %v87_v10, %v79_v9  ;;  %v78_v18 = vld [vmem:[%s6158_s1 + $0x1b0] sm:$0xff]  ;;  %v3887_v20 = vpack.c.bf16 %v84_v13, %v76_v12  ;;  %v95_v21 = vld [vmem:[%s6158_s1 + $0x238] sm:$0xff] }
  0x22   :  { %3840 = vmatpush1.bf16.msra.mxu0 %v3839_v34  ;;  %v86_v19 = vld [vmem:[%s6158_s1 + $0x1f0] sm:$0xff]  ;;  %v103_v22 = vld [vmem:[%s6158_s1 + $0x278] sm:$0xff]  ;;  %v3889_v23 = vpack.c.bf16 %v101_v16, %v93_v15  ;;  %v92_v24 = vld [vmem:[%s6158_s1 + $0x220] sm:$0xff] }
  0x23   :  { %3874 = vmatprep.subr.bf16.mxu0 %v3873_v37  ;;  %3872 = vmatpush1.bf16.msra.mxu1 %v3871_v40  ;;  %v100_v25 = vld [vmem:[%s6158_s1 + $0x260] sm:$0xff]  ;;  %v3919_v26 = vpack.c.bf16 %v86_v19, %v78_v18  ;;  %v109_v27 = vld [vmem:[%s6158_s1 + $0x2a8] sm:$0xff]  ;;  %v3921_v29 = vpack.c.bf16 %v103_v22, %v95_v21  ;;  %v94_v30 = vld [vmem:[%s6158_s1 + $0x230] sm:$0xff] }
  0x24   :  { %3906 = vmatprep.subr.bf16.mxu1 %v3905_v43  ;;  %v117_v28 = vld [vmem:[%s6158_s1 + $0x2e8] sm:$0xff]  ;;  %v102_v31 = vld [vmem:[%s6158_s1 + $0x270] sm:$0xff]  ;;  %v3891_v32 = vpack.c.bf16 %v100_v25, %v92_v24  ;;  %v111_v33 = vld [vmem:[%s6158_s1 + $0x2b8] sm:$0xff] }
  0x25   :  { %217 = vmatmul.mubr.f32.vlgmr.msra.gmra.mrb[0].mxu0 %v4771_v46  ;;  %v119_v34 = vld [vmem:[%s6158_s1 + $0x2f8] sm:$0xff]  ;;  %v3893_v35 = vpack.c.bf16 %v117_v28, %v109_v27  ;;  %v108_v36 = vld [vmem:[%s6158_s1 + $0x2a0] sm:$0xff]  ;;  %v3923_v38 = vpack.c.bf16 %v102_v31, %v94_v30  ;;  %v125_v39 = vld [vmem:[%s6158_s1 + $0x328] sm:$0xff] }
  0x26   :  { %3876 = vmatpush1.bf16.msra.mxu0 %v3875_v47  ;;  %358 = vmatprep.mubr.f32.mxu0 %v6165_v3  ;;  %v116_v37 = vld [vmem:[%s6158_s1 + $0x2e0] sm:$0xff]  ;;  %v133_v40 = vld [vmem:[%s6158_s1 + $0x368] sm:$0xff]  ;;  %v3925_v41 = vpack.c.bf16 %v119_v34, %v111_v33  ;;  %v110_v42 = vld [vmem:[%s6158_s1 + $0x2b0] sm:$0xff] }
  0x27   :  { %288 = vmatmul.mubr.f32.vlgmr.msra.gmra.mrb[0].mxu1 %v4771_v46  ;;  %3878 = vmatprep.subr.bf16.mxu0 %v3877_v50  ;;  %v118_v43 = vld [vmem:[%s6158_s1 + $0x2f0] sm:$0xff]  ;;  %v3895_v44 = vpack.c.bf16 %v116_v37, %v108_v36  ;;  %v127_v45 = vld [vmem:[%s6158_s1 + $0x338] sm:$0xff]  ;;  %v3897_v48 = vpack.c.bf16 %v133_v40, %v125_v39  ;;  %v124_v49 = vld [vmem:[%s6158_s1 + $0x320] sm:$0xff] }
  0x28   :  { %3908 = vmatpush1.bf16.msra.mxu1 %v3907_v53  ;;  %429 = vmatprep.mubr.f32.mxu1 %v6165_v3  ;;  %v135_v47 = vld [vmem:[%s6158_s1 + $0x378] sm:$0xff]  ;;  %v132_v50 = vld [vmem:[%s6158_s1 + $0x360] sm:$0xff]  ;;  %v3927_v51 = vpack.c.bf16 %v118_v43, %v110_v42  ;;  %v141_v52 = vld [vmem:[%s6158_s1 + $0x3a8] sm:$0xff] }
  0x29   :  { %3910 = vmatprep.subr.bf16.mxu1 %v3909_v56  ;;  %v149_v53 = vld [vmem:[%s6158_s1 + $0x3e8] sm:$0xff]  ;;  %v3929_v54 = vpack.c.bf16 %v135_v47, %v127_v45  ;;  %v126_v55 = vld [vmem:[%s6158_s1 + $0x330] sm:$0xff]  ;;  %v3899_v57 = vpack.c.bf16 %v132_v50, %v124_v49  ;;  %v143_v58 = vld [vmem:[%s6158_s1 + $0x3b8] sm:$0xff] }
  0x2a   :  { %3880 = vmatpush1.bf16.msra.mxu0 %v3879_v59  ;;  %v134_v56 = vld [vmem:[%s6158_s1 + $0x370] sm:$0xff]  ;;  %v151_v59 = vld [vmem:[%s6158_s1 + $0x3f8] sm:$0xff]  ;;  %v3901_v60 = vpack.c.bf16 %v149_v53, %v141_v52  ;;  %v140_v61 = vld [vmem:[%s6158_s1 + $0x3a0] sm:$0xff] }
  0x2b   :  { %3882 = vmatprep.subr.bf16.mxu0 %v3881_v62  ;;  %v148_v62 = vld [vmem:[%s6158_s1 + $0x3e0] sm:$0xff]  ;;  %v3931_v63 = vpack.c.bf16 %v134_v56, %v126_v55  ;;  %v3933_v0 = vpack.c.bf16 %v151_v59, %v143_v58  ;;  %v150_v2 = vld [vmem:[%s6158_s1 + $0x3f0] sm:$0xff]  ;;  %v569_v13 = vld [vmem:[%s6160_s4 + $0x28] sm:$0xff] }
  0x2c   :  { %3912 = vmatpush1.bf16.msra.mxu1 %v3911_v1  ;;  %v142_v1 = vld [vmem:[%s6158_s1 + $0x3b0] sm:$0xff]  ;;  %v3903_v4 = vpack.c.bf16 %v148_v62, %v140_v61  ;;  %v564_v7 = vld [vmem:[%s6160_s4] sm:$0xff]  ;;  %v571_v16 = vld [vmem:[%s6160_s4 + $0x38] sm:$0xff] }
  0x2d   :  { %3914 = vmatprep.subr.bf16.mxu1 %v3913_v5  ;;  %v3935_v5 = vpack.c.bf16 %v150_v2, %v142_v1  ;;  %v566_v9 = vld [vmem:[%s6160_s4 + $0x10] sm:$0xff]  ;;  %v568_v12 = vld [vmem:[%s6160_s4 + $0x20] sm:$0xff]  ;;  %v573_v19 = vld [vmem:[%s6160_s4 + $0x48] sm:$0xff] }
  0x2e   :  { %3884 = vmatpush1.bf16.msra.mxu0 %v3883_v8  ;;  %v565_v8 = vld [vmem:[%s6160_s4 + $0x8] sm:$0xff]  ;;  %v570_v15 = vld [vmem:[%s6160_s4 + $0x30] sm:$0xff]  ;;  %v572_v18 = vld [vmem:[%s6160_s4 + $0x40] sm:$0xff] }
  0x2f   :  { %3886 = vmatprep.subr.bf16.mxu0 %v3885_v11  ;;  %v4952_v10 = vpack.c.bf16 %v565_v8, %v564_v7  ;;  %v574_v21 = vld [vmem:[%s6160_s4 + $0x50] sm:$0xff]  ;;  %v575_v22 = vld [vmem:[%s6160_s4 + $0x58] sm:$0xff]  ;;  %v576_v24 = vld [vmem:[%s6160_s4 + $0x60] sm:$0xff] }
  0x30   :  { %3916 = vmatpush1.bf16.msra.mxu1 %v3915_v14  ;;  %v4968_v14 = vpack.c.bf16 %v569_v13, %v568_v12  ;;  %v577_v25 = vld [vmem:[%s6160_s4 + $0x68] sm:$0xff]  ;;  %v578_v27 = vld [vmem:[%s6160_s4 + $0x70] sm:$0xff]  ;;  %v579_v28 = vld [vmem:[%s6160_s4 + $0x78] sm:$0xff] }
  0x31   :  { %3918 = vmatprep.subr.bf16.mxu1 %v3917_v17  ;;  %v4978_v17 = vpack.c.bf16 %v571_v16, %v570_v15  ;;  %v452_v30 = vld [vmem:[%s6161_s5 + $0x80] sm:$0xff]  ;;  %v453_v31 = vld [vmem:[%s6161_s5 + $0x88] sm:$0xff]  ;;  %v455_v34 = vld [vmem:[%s6161_s5 + $0x98] sm:$0xff] }
  0x32   :  { %3888 = vmatpush1.bf16.msra.mxu0 %v3887_v20  ;;  %6219 = vst [vmem:[#allocation3_spill] sm:$0xff] %v4968_v14  ;;  %v4988_v20 = vpack.c.bf16 %v573_v19, %v572_v18  ;;  %v5035_v33 = vpack.c.bf16 %v453_v31, %v452_v30  ;;  %v456_v36 = vld [vmem:[%s6161_s5 + $0xa0] sm:$0xff]  ;;  %v457_v37 = vld [vmem:[%s6161_s5 + $0xa8] sm:$0xff]  ;;  %v459_v58 = vld [vmem:[%s6161_s5 + $0xb8] sm:$0xff] }
  0x33   :  { %3890 = vmatprep.subr.bf16.mxu0 %v3889_v23  ;;  %6220 = vst [vmem:[#allocation4_spill] sm:$0xff] %v4978_v17  ;;  %v4999_v23 = vpack.c.bf16 %v575_v22, %v574_v21  ;;  %v461_v61 = vld [vmem:[%s6161_s5 + $0xc8] sm:$0xff]  ;;  %v464_v2 = vld [vmem:[%s6161_s5 + $0xe0] sm:$0xff]  ;;  %v466_v7 = vld [vmem:[%s6161_s5 + $0xf0] sm:$0xff] }
  0x34   :  { %3920 = vmatpush1.bf16.msra.mxu1 %v3919_v26  ;;  %6221 = vst [vmem:[#allocation5_spill] sm:$0xff] %v4988_v20  ;;  %v5009_v26 = vpack.c.bf16 %v577_v25, %v576_v24  ;;  %v467_v8 = vld [vmem:[%s6161_s5 + $0xf8] sm:$0xff]  ;;  %v436_v21 = vld [vmem:[%s6161_s5] sm:$0xff]  ;;  %v437_v22 = vld [vmem:[%s6161_s5 + $0x8] sm:$0xff] }
  0x35   :  { %3922 = vmatprep.subr.bf16.mxu1 %v3921_v29  ;;  %6222 = vst [vmem:[#allocation6_spill] sm:$0xff] %v4999_v23  ;;  %v5019_v29 = vpack.c.bf16 %v579_v28, %v578_v27  ;;  %v5137_v27 = vpack.c.bf16 %v437_v22, %v436_v21  ;;  %v438_v30 = vld [vmem:[%s6161_s5 + $0x10] sm:$0xff]  ;;  %v439_v31 = vld [vmem:[%s6161_s5 + $0x18] sm:$0xff] }
  0x36   :  { %3892 = vmatpush1.bf16.msra.mxu0 %v3891_v32  ;;  %6223 = vst [vmem:[#allocation7_spill] sm:$0xff] %v5009_v26  ;;  %v454_v32 = vld [vmem:[%s6161_s5 + $0x90] sm:$0xff]  ;;  %v471_v21 = vld [vmem:[%s6161_s5 + $0x118] sm:$0xff] }
  0x37   :  { %3894 = vmatprep.subr.bf16.mxu0 %v3893_v35  ;;  %6224 = vst [vmem:[#allocation8_spill] sm:$0xff] %v5019_v29  ;;  %v5041_v35 = vpack.c.bf16 %v455_v34, %v454_v32 }
  0x38   :  { %3924 = vmatpush1.bf16.msra.mxu1 %v3923_v38  ;;  %v5051_v38 = vpack.c.bf16 %v457_v37, %v456_v36 }
  0x39   :  { %3926 = vmatprep.subr.bf16.mxu1 %v3925_v41 }
  0x3a   :  { %3896 = vmatpush1.bf16.msra.mxu0 %v3895_v44 }
  0x3b   :  { %3898 = vmatprep.subr.bf16.mxu0 %v3897_v48 }
  0x3c   :  { %3928 = vmatpush1.bf16.msra.mxu1 %v3927_v51 }
  0x3d   :  { %3930 = vmatprep.subr.bf16.mxu1 %v3929_v54 }
  0x3e   :  { %3900 = vmatpush1.bf16.msra.mxu0 %v3899_v57  ;;  %v458_v57 = vld [vmem:[%s6161_s5 + $0xb0] sm:$0xff] }
  0x3f   :  { %3902 = vmatprep.subr.bf16.mxu0 %v3901_v60  ;;  %v5087_v59 = vpack.c.bf16 %v459_v58, %v458_v57  ;;  %v460_v60 = vld [vmem:[%s6161_s5 + $0xc0] sm:$0xff] }
  0x40   :  { %3932 = vmatpush1.bf16.msra.mxu1 %v3931_v63  ;;  %v5097_v62 = vpack.c.bf16 %v461_v61, %v460_v60  ;;  %v462_v63 = vld [vmem:[%s6161_s5 + $0xd0] sm:$0xff]  ;;  %v444_v58 = vld [vmem:[%s6161_s5 + $0x40] sm:$0xff]  ;;  %v445_v60 = vld [vmem:[%s6161_s5 + $0x48] sm:$0xff] }
  0x41   :  { %3934 = vmatprep.subr.bf16.mxu1 %v3933_v0  ;;  %v463_v0 = vld [vmem:[%s6161_s5 + $0xd8] sm:$0xff]  ;;  %v5198_v61 = vpack.c.bf16 %v445_v60, %v444_v58 }
  0x42   :  { %3904 = vmatpush1.bf16.msra.mxu0 %v3903_v4  ;;  %v5107_v1 = vpack.c.bf16 %v463_v0, %v462_v63  ;;  %v465_v4 = vld [vmem:[%s6161_s5 + $0xe8] sm:$0xff]  ;;  %v446_v63 = vld [vmem:[%s6161_s5 + $0x50] sm:$0xff]  ;;  %v447_v0 = vld [vmem:[%s6161_s5 + $0x58] sm:$0xff] }
  0x43   :  { %3937 = vmatprep.subr.bf16.mxu0 %v6191_v6  ;;  %v479_v58 = vld [vmem:[%s6161_s5 + $0x158] sm:$0xff] }
  0x44   :  { %3936 = vmatpush1.bf16.msra.mxu1 %v3935_v5  ;;  %v5117_v5 = vpack.c.bf16 %v465_v4, %v464_v2  ;;  %v5208_v2 = vpack.c.bf16 %v447_v0, %v446_v63  ;;  %v448_v4 = vld [vmem:[%s6161_s5 + $0x60] sm:$0xff]  ;;  %v481_v0 = vld [vmem:[%s6161_s5 + $0x168] sm:$0xff] }
  0x45   :  { %359 = vmatmul.mubr.f32.vlgmr.msra.gmra.mrb[2].mxu0 %v4771_v46  ;;  %3961 = vmatprep.subr.bf16.mxu1 %v6191_v6  ;;  %v480_v63 = vld [vmem:[%s6161_s5 + $0x160] sm:$0xff] }
  0x46   :  { %3939 = vmatpush3.bf16.msra.mxu0 %v4952_v10  ;;  %3154 = vmatprep.mubr.msk.f32.mxu0 %vm4508_vm0, %v6165_v3 }
  0x47   :  { %430 = vmatmul.mubr.f32.vlgmr.msra.gmra.mrb[2].mxu1 %v4771_v46  ;;  %v567_v46 = vld [vmem:[%s6160_s4 + $0x18] sm:$0xff]  ;;  %3940 = vmatprep.subr.bf16.mxu0 %v6191_v6 }
  0x48   :  { %v4958_v11 = vpack.c.bf16 %v567_v46, %v566_v9  ;;  %3189 = vmatprep.mubr.msk.f32.mxu1 %vm4508_vm0, %v6165_v3  ;;  %3963 = vmatpush3.bf16.msra.mxu1 %v5035_v33  ;;  %v5127_v9 = vpack.c.bf16 %v467_v8, %v466_v7  ;;  %v449_v7 = vld [vmem:[%s6161_s5 + $0x68] sm:$0xff] }
  0x49   :  { %3964 = vmatprep.subr.bf16.mxu1 %v6191_v6  ;;  %v5218_v8 = vpack.c.bf16 %v449_v7, %v448_v4  ;;  %v5300_v4 = vpack.c.bf16 %v481_v0, %v480_v63  ;;  %v482_v7 = vld [vmem:[%s6161_s5 + $0x170] sm:$0xff]  ;;  %v493_v63 = vld [vmem:[%s6161_s5 + $0x1c8] sm:$0xff] }
  0x4a   :  { %6218 = vst [vmem:[#allocation2_spill] sm:$0xff] %v4958_v11  ;;  %3942 = vmatpush3.bf16.msra.mxu0 %v4958_v11 }
  0x4b   :  { %3943 = vmatprep.subr.bf16.mxu0 %v6191_v6  ;;  %6229 = vst [vmem:[#allocation13_spill] sm:$0xff] %v5300_v4 }
  0x4c   :  { %3966 = vmatpush3.bf16.msra.mxu1 %v5041_v35 }
  0x4d   :  { %3967 = vmatprep.subr.bf16.mxu1 %v6191_v6 }
  0x4e   :  { %3945 = vmatpush3.bf16.msra.mxu0 %v4968_v14 }
  0x4f   :  { %3946 = vmatprep.subr.bf16.mxu0 %v6191_v6 }
  0x50   :  { %3969 = vmatpush3.bf16.msra.mxu1 %v5051_v38 }
  0x51   :  { %3970 = vmatprep.subr.bf16.mxu1 %v6191_v6 }
  0x52   :  { %3948 = vmatpush3.bf16.msra.mxu0 %v4978_v17 }
  0x53   :  { %3949 = vmatprep.subr.bf16.mxu0 %v6191_v6 }
  0x54   :  { %3972 = vmatpush3.bf16.msra.mxu1 %v5087_v59 }
  0x55   :  { %3973 = vmatprep.subr.bf16.mxu1 %v6191_v6 }
  0x56   :  { %3951 = vmatpush3.bf16.msra.mxu0 %v4988_v20 }
  0x57   :  { %3952 = vmatprep.subr.bf16.mxu0 %v6191_v6 }
  0x58   :  { %3975 = vmatpush3.bf16.msra.mxu1 %v5097_v62 }
  0x59   :  { %3976 = vmatprep.subr.bf16.mxu1 %v6191_v6 }
  0x5a   :  { %3954 = vmatpush3.bf16.msra.mxu0 %v4999_v23 }
  0x5b   :  { %3955 = vmatprep.subr.bf16.mxu0 %v6191_v6 }
  0x5c   :  { %3978 = vmatpush3.bf16.msra.mxu1 %v5107_v1 }
  0x5d   :  { %3979 = vmatprep.subr.bf16.mxu1 %v6191_v6 }
  0x5e   :  { %3957 = vmatpush3.bf16.msra.mxu0 %v5009_v26 }
  0x5f   :  { %3958 = vmatprep.subr.bf16.mxu0 %v6191_v6 }
  0x60   :  { %3981 = vmatpush3.bf16.msra.mxu1 %v5117_v5 }
  0x61   :  { %3982 = vmatprep.subr.bf16.mxu1 %v6191_v6 }
  0x62   :  { %3960 = vmatpush3.bf16.msra.mxu0 %v5019_v29 }
  0x64   :  { %3984 = vmatpush3.bf16.msra.mxu1 %v5127_v9 }
  0x65   :  { %3985 = vmatprep.subr.bf16.mxu1 %v6191_v6 }
  0xf8   :  { %v5056_v39 = vpop.f32.mrb[0].mxu0 }
  0xf9   :  { %v5058_v40 = vpop.f32.mrb[1].mxu0 }
  0xfa   :  { %v580_v41 = vadd.f32 %v5058_v40, %v5056_v39  ;;  %v5062_v42 = vpop.f32.mrb[0].mxu1 }
  0xfb   :  { %v5064_v43 = vpop.f32.mrb[1].mxu1 }
  0xfc   :  { %v581_v44 = vadd.f32 %v580_v41, %v5062_v42 }
  0xfe   :  { %v582_v45 = vadd.f32 %v581_v44, %v5064_v43 }
 0x118   :  { %v5068_v47 = vpop.f32.mrb[2].mxu0 }
 0x119   :  { %v583_v48 = vadd.f32 %v582_v45, %v5068_v47  ;;  %v5071_v49 = vpop.f32.mrb[3].mxu0 }
 0x11a   :  { %v5073_v50 = vpop.f32.mrb[2].mxu1 }
 0x11b   :  { %v584_v51 = vadd.f32 %v583_v48, %v5071_v49  ;;  %v5076_v52 = vpop.f32.mrb[3].mxu1  ;;  %v5166_v48 = vpack.c.bf16 %v439_v31, %v438_v30  ;;  %v474_v30 = vld [vmem:[%s6161_s5 + $0x130] sm:$0xff]  ;;  %v475_v31 = vld [vmem:[%s6161_s5 + $0x138] sm:$0xff] }
 0x11d   :  { %v585_v53 = vadd.f32 %v584_v51, %v5073_v50  ;;  %v440_v51 = vld [vmem:[%s6161_s5 + $0x20] sm:$0xff] }
 0x11f   :  { %v586_v54 = vadd.f32 %v585_v53, %v5076_v52  ;;  %v441_v53 = vld [vmem:[%s6161_s5 + $0x28] sm:$0xff] }
 0x121   :  { %v587_v55 = vmul.f32 0.25, %v586_v54  ;;  %v5178_v54 = vpack.c.bf16 %v441_v53, %v440_v51  ;;  %v476_v51 = vld [vmem:[%s6161_s5 + $0x140] sm:$0xff]  ;;  %v477_v53 = vld [vmem:[%s6161_s5 + $0x148] sm:$0xff] }
 0x123   :  { %v588_v56 = vmul.f32 %v587_v55, %v587_v55 }
 0x125   :  { %3155 = vmatmul.mubr.f32.vlgmr.msra.gmra.mrb[4].mxu0 %v588_v56  ;;  %v443_v56 = vld [vmem:[%s6161_s5 + $0x38] sm:$0xff] }
 0x126   :  { %1496 = vmatprep.mubr.f32.mxu0 %v6165_v3 }
 0x1f8   :  { %v655_v46 = vpop.f32.mrb[4].mxu0 }
 0x1f9   :  { %v659_v12 = vadd.f32 1.0, %v655_v46  ;;  %v3156_v13 = vpop.f32.mrb[5].mxu0  ;;  %v663_v15 = vadd.f32 1e-07, %v655_v46 }
 0x1fb   :  { %4486 = vrcp.f32 %v659_v12  ;;  %v451_v12 = vld [vmem:[%s6161_s5 + $0x78] sm:$0xff] }
 0x1fc   :  { %4488 = vrsqrt.f32 %v663_v15  ;;  %v468_v15 = vld [vmem:[%s6161_s5 + $0x100] sm:$0xff] }
 0x205   :  { %v4487_v16 = vpop.eup %4486 }
 0x206   :  { %v661_v18 = vmul.f32 %v4487_v16, %v655_v46  ;;  %v4489_v24 = vpop.eup %4488  ;;  %v450_v46 = vld [vmem:[%s6161_s5 + $0x70] sm:$0xff]  ;;  %v469_v16 = vld [vmem:[%s6161_s5 + $0x108] sm:$0xff] }
 0x207   :  { %v5228_v13 = vpack.c.bf16 %v451_v12, %v450_v46  ;;  %v483_v46 = vld [vmem:[%s6161_s5 + $0x178] sm:$0xff] }
 0x208   :  { %v662_v19 = vmul.f32 %v661_v18, %v587_v55  ;;  %v442_v55 = vld [vmem:[%s6161_s5 + $0x30] sm:$0xff]  ;;  %v5238_v18 = vpack.c.bf16 %v469_v16, %v468_v15  ;;  %v5310_v12 = vpack.c.bf16 %v483_v46, %v482_v7  ;;  %v484_v15 = vld [vmem:[%s6161_s5 + $0x180] sm:$0xff]  ;;  %v485_v16 = vld [vmem:[%s6161_s5 + $0x188] sm:$0xff] }
 0x209   :  { %v5188_v57 = vpack.c.bf16 %v443_v56, %v442_v55  ;;  %v5280_v55 = vpack.c.bf16 %v477_v53, %v476_v51  ;;  %v478_v56 = vld [vmem:[%s6161_s5 + $0x150] sm:$0xff]  ;;  %v491_v53 = vld [vmem:[%s6161_s5 + $0x1b8] sm:$0xff] }
 0x20a   :  { %v665_v25 = vmul.f32 %v4489_v24, %v662_v19  ;;  %v470_v19 = vld [vmem:[%s6161_s5 + $0x110] sm:$0xff]  ;;  %v472_v24 = vld [vmem:[%s6161_s5 + $0x120] sm:$0xff]  ;;  %v5290_v60 = vpack.c.bf16 %v479_v58, %v478_v56  ;;  %6230 = vst [vmem:[#allocation14_spill] sm:$0xff] %v5310_v12  ;;  %v495_v46 = vld [vmem:[%s6161_s5 + $0x1d8] sm:$0xff] }
 0x20b   :  { %v5248_v22 = vpack.c.bf16 %v471_v21, %v470_v19  ;;  %6227 = vst [vmem:[#allocation11_spill] sm:$0xff] %v5280_v55  ;;  %v5320_v19 = vpack.c.bf16 %v485_v16, %v484_v15  ;;  %v486_v21 = vld [vmem:[%s6161_s5 + $0x190] sm:$0xff]  ;;  %v492_v58 = vld [vmem:[%s6161_s5 + $0x1c0] sm:$0xff] }
 0x20c   :  { %v667_v28 = vmul.f32 %v665_v25, %v5058_v40  ;;  %v666_v32 = vmul.f32 %v665_v25, %v5056_v39  ;;  %v5148_v34 = vmul.f32 %v665_v25, %v5062_v42  ;;  %v5151_v36 = vmul.f32 %v665_v25, %v5064_v43  ;;  %6228 = vst [vmem:[#allocation12_spill] sm:$0xff] %v5290_v60  ;;  %v490_v51 = vld [vmem:[%s6161_s5 + $0x1b0] sm:$0xff]  ;;  %v496_v16 = vld [vmem:[%s6161_s5 + $0x1e0] sm:$0xff] }
 0x20d   :  { %v5154_v37 = vmul.f32 %v665_v25, %v5068_v47  ;;  %v5157_v41 = vmul.f32 %v665_v25, %v5071_v49  ;;  %v5160_v44 = vmul.f32 %v665_v25, %v5073_v50  ;;  %v5163_v45 = vmul.f32 %v665_v25, %v5076_v52  ;;  %v473_v25 = vld [vmem:[%s6161_s5 + $0x128] sm:$0xff]  ;;  %6231 = vst [vmem:[#allocation15_spill] sm:$0xff] %v5320_v19  ;;  %v494_v7 = vld [vmem:[%s6161_s5 + $0x1d0] sm:$0xff] }
 0x20e   :  { %3190 = vmatmul.mubr.f32.vlgmr.msra.gmra.mrb[4].mxu1 %v667_v28  ;;  %v5260_v28 = vpack.c.bf16 %v473_v25, %v472_v24  ;;  %v487_v24 = vld [vmem:[%s6161_s5 + $0x198] sm:$0xff]  ;;  %v5353_v56 = vpack.c.bf16 %v491_v53, %v490_v51  ;;  %v5363_v0 = vpack.c.bf16 %v493_v63, %v492_v58  ;;  %v5373_v15 = vpack.c.bf16 %v495_v46, %v494_v7  ;;  %v500_v53 = vld [vmem:[%s6161_s5 + $0x200] sm:$0xff]  ;;  %v501_v58 = vld [vmem:[%s6161_s5 + $0x208] sm:$0xff] }
 0x20f   :  { %3987 = vmatpush3.bf16.msra.mxu1 %v5137_v27  ;;  %3224 = vmatprep.mubr.msk.f32.mxu1 %vm4508_vm0, %v6165_v3  ;;  %v5331_v25 = vpack.c.bf16 %v487_v24, %v486_v21  ;;  %v497_v21 = vld [vmem:[%s6161_s5 + $0x1e8] sm:$0xff]  ;;  %v5403_v63 = vpack.c.bf16 %v501_v58, %v500_v53  ;;  %v502_v7 = vld [vmem:[%s6161_s5 + $0x210] sm:$0xff]  ;;  %v503_v46 = vld [vmem:[%s6161_s5 + $0x218] sm:$0xff] }
 0x210   :  { %3988 = vmatprep.subr.bf16.mxu1 %v6191_v6  ;;  %6225 = vst [vmem:[#allocation9_spill] sm:$0xff] %v5260_v28  ;;  %6234 = vst [vmem:[#allocation18_spill] sm:$0xff] %v5353_v56  ;;  %v5383_v24 = vpack.c.bf16 %v497_v21, %v496_v16  ;;  %v5414_v16 = vpack.c.bf16 %v503_v46, %v502_v7  ;;  %v504_v21 = vld [vmem:[%s6161_s5 + $0x220] sm:$0xff]  ;;  %v507_v53 = vld [vmem:[%s6161_s5 + $0x238] sm:$0xff] }
 0x211   :  { %6232 = vst [vmem:[#allocation16_spill] sm:$0xff] %v5331_v25  ;;  %6235 = vst [vmem:[#allocation19_spill] sm:$0xff] %v5363_v0  ;;  %v508_v7 = vld [vmem:[%s6161_s5 + $0x240] sm:$0xff]  ;;  %v509_v46 = vld [vmem:[%s6161_s5 + $0x248] sm:$0xff] }
 0x212   :  { %6236 = vst [vmem:[#allocation20_spill] sm:$0xff] %v5373_v15  ;;  %6237 = vst [vmem:[#allocation21_spill] sm:$0xff] %v5383_v24 }
 0x213   :  { %3990 = vmatpush3.bf16.msra.mxu1 %v5166_v48  ;;  %6239 = vst [vmem:[#allocation23_spill] sm:$0xff] %v5403_v63  ;;  %6240 = vst [vmem:[#allocation24_spill] sm:$0xff] %v5414_v16 }
 0x214   :  { %3991 = vmatprep.subr.bf16.mxu1 %v6191_v6 }
 0x217   :  { %3993 = vmatpush3.bf16.msra.mxu1 %v5178_v54 }
 0x218   :  { %3994 = vmatprep.subr.bf16.mxu1 %v6191_v6 }
 0x21b   :  { %3996 = vmatpush3.bf16.msra.mxu1 %v5188_v57 }
 0x21c   :  { %3997 = vmatprep.subr.bf16.mxu1 %v6191_v6 }
 0x21f   :  { %3999 = vmatpush3.bf16.msra.mxu1 %v5198_v61 }
 0x220   :  { %4000 = vmatprep.subr.bf16.mxu1 %v6191_v6 }
 0x223   :  { %4002 = vmatpush3.bf16.msra.mxu1 %v5208_v2 }
 0x224   :  { %4003 = vmatprep.subr.bf16.mxu1 %v6191_v6 }
 0x227   :  { %4005 = vmatpush3.bf16.msra.mxu1 %v5218_v8 }
 0x228   :  { %4006 = vmatprep.subr.bf16.mxu1 %v6191_v6 }
 0x22b   :  { %4008 = vmatpush3.bf16.msra.mxu1 %v5228_v13 }
 0x22c   :  { %4009 = vmatprep.subr.bf16.mxu1 %v6191_v6 }
 0x22e   :  { %3225 = vmatmul.mubr.f32.vlgmr.msra.gmra.mrb[4].mxu1 %v666_v32  ;;  %v5270_v32 = vpack.c.bf16 %v475_v31, %v474_v30  ;;  %v488_v30 = vld [vmem:[%s6161_s5 + $0x1a0] sm:$0xff]  ;;  %v489_v31 = vld [vmem:[%s6161_s5 + $0x1a8] sm:$0xff] }
 0x22f   :  { %4011 = vmatpush3.bf16.msra.mxu1 %v5238_v18  ;;  %3259 = vmatprep.mubr.msk.f32.mxu1 %vm4508_vm0, %v6165_v3 }
 0x230   :  { %4012 = vmatprep.subr.bf16.mxu1 %v6191_v6  ;;  %6226 = vst [vmem:[#allocation10_spill] sm:$0xff] %v5270_v32 }
 0x233   :  { %4014 = vmatpush3.bf16.msra.mxu1 %v5248_v22 }
 0x234   :  { %4015 = vmatprep.subr.bf16.mxu1 %v6191_v6 }
 0x237   :  { %4017 = vmatpush3.bf16.msra.mxu1 %v5260_v28 }
 0x238   :  { %4018 = vmatprep.subr.bf16.mxu1 %v6191_v6 }
 0x23b   :  { %4020 = vmatpush3.bf16.msra.mxu1 %v5270_v32 }
 0x23c   :  { %4021 = vmatprep.subr.bf16.mxu1 %v6191_v6 }
 0x23f   :  { %4023 = vmatpush3.bf16.msra.mxu1 %v5280_v55 }
 0x240   :  { %4024 = vmatprep.subr.bf16.mxu1 %v6191_v6 }
 0x243   :  { %4026 = vmatpush3.bf16.msra.mxu1 %v5290_v60 }
 0x244   :  { %4027 = vmatprep.subr.bf16.mxu1 %v6191_v6 }
 0x247   :  { %4029 = vmatpush3.bf16.msra.mxu1 %v5300_v4 }
 0x248   :  { %4030 = vmatprep.subr.bf16.mxu1 %v6191_v6 }
 0x24b   :  { %4032 = vmatpush3.bf16.msra.mxu1 %v5310_v12  ;;  %v6259_v12 = vmov 0.0|0.0  }
 0x24c   :  { %4033 = vmatprep.subr.bf16.mxu1 %v6191_v6 }
 0x24e   :  { %3260 = vmatmul.mubr.f32.vlgmr.msra.gmra.mrb[4].mxu1 %v5148_v34  ;;  %v5343_v34 = vpack.c.bf16 %v489_v31, %v488_v30  ;;  %v498_v30 = vld [vmem:[%s6161_s5 + $0x1f0] sm:$0xff]  ;;  %v499_v31 = vld [vmem:[%s6161_s5 + $0x1f8] sm:$0xff] }
 0x24f   :  { %4035 = vmatpush3.bf16.msra.mxu1 %v5320_v19  ;;  %3294 = vmatprep.mubr.msk.f32.mxu1 %vm4508_vm0, %v6165_v3  ;;  %v5393_v51 = vpack.c.bf16 %v499_v31, %v498_v30  ;;  %v505_v30 = vld [vmem:[%s6161_s5 + $0x228] sm:$0xff]  ;;  %v506_v31 = vld [vmem:[%s6161_s5 + $0x230] sm:$0xff] }
 0x250   :  { %4036 = vmatprep.subr.bf16.mxu1 %v6191_v6  ;;  %6233 = vst [vmem:[#allocation17_spill] sm:$0xff] %v5343_v34  ;;  %v5436_v58 = vpack.c.bf16 %v507_v53, %v506_v31  ;;  %v511_v31 = vld [vmem:[%s6161_s5 + $0x258] sm:$0xff] }
 0x251   :  { %6238 = vst [vmem:[#allocation22_spill] sm:$0xff] %v5393_v51 }
 0x252   :  { %6242 = vst [vmem:[#allocation26_spill] sm:$0xff] %v5436_v58 }
 0x253   :  { %4038 = vmatpush3.bf16.msra.mxu1 %v5331_v25 }
 0x254   :  { %4039 = vmatprep.subr.bf16.mxu1 %v6191_v6 }
 0x257   :  { %4041 = vmatpush3.bf16.msra.mxu1 %v5343_v34 }
 0x258   :  { %4042 = vmatprep.subr.bf16.mxu1 %v6191_v6 }
 0x25b   :  { %4044 = vmatpush3.bf16.msra.mxu1 %v5353_v56 }
 0x25c   :  { %4045 = vmatprep.subr.bf16.mxu1 %v6191_v6 }
 0x25f   :  { %4047 = vmatpush3.bf16.msra.mxu1 %v5363_v0 }
 0x260   :  { %4048 = vmatprep.subr.bf16.mxu1 %v6191_v6 }
 0x263   :  { %4050 = vmatpush3.bf16.msra.mxu1 %v5373_v15 }
 0x264   :  { %4051 = vmatprep.subr.bf16.mxu1 %v6191_v6 }
 0x267   :  { %4053 = vmatpush3.bf16.msra.mxu1 %v5383_v24 }
 0x268   :  { %4054 = vmatprep.subr.bf16.mxu1 %v6191_v6 }
 0x26b   :  { %4056 = vmatpush3.bf16.msra.mxu1 %v5393_v51 }
 0x26c   :  { %4057 = vmatprep.subr.bf16.mxu1 %v6191_v6 }
 0x26e   :  { %3295 = vmatmul.mubr.f32.vlgmr.msra.gmra.mrb[4].mxu1 %v5151_v36  ;;  %v5426_v36 = vpack.c.bf16 %v505_v30, %v504_v21  ;;  %v5446_v21 = vpack.c.bf16 %v509_v46, %v508_v7  ;;  %v510_v30 = vld [vmem:[%s6161_s5 + $0x250] sm:$0xff]  ;;  %v512_v7 = vld [vmem:[%s6161_s5 + $0x260] sm:$0xff]  ;;  %v513_v46 = vld [vmem:[%s6161_s5 + $0x268] sm:$0xff] }
 0x26f   :  { %4059 = vmatpush3.bf16.msra.mxu1 %v5403_v63  ;;  %3329 = vmatprep.mubr.msk.f32.mxu1 %vm4508_vm0, %v6165_v3  ;;  %v5456_v53 = vpack.c.bf16 %v511_v31, %v510_v30  ;;  %v5466_v3 = vpack.c.bf16 %v513_v46, %v512_v7  ;;  %v514_v30 = vld [vmem:[%s6161_s5 + $0x270] sm:$0xff]  ;;  %v515_v31 = vld [vmem:[%s6161_s5 + $0x278] sm:$0xff]  ;;  %v516_v7 = vld [vmem:[%s6161_s5 + $0x280] sm:$0xff] }
 0x270   :  { %4060 = vmatprep.subr.bf16.mxu1 %v6191_v6  ;;  %6241 = vst [vmem:[#allocation25_spill] sm:$0xff] %v5426_v36  ;;  %6243 = vst [vmem:[#allocation27_spill] sm:$0xff] %v5446_v21  ;;  %v517_v46 = vld [vmem:[%s6161_s5 + $0x288] sm:$0xff] }
 0x271   :  { %6244 = vst [vmem:[#allocation28_spill] sm:$0xff] %v5456_v53  ;;  %6245 = vst [vmem:[#allocation29_spill] sm:$0xff] %v5466_v3 }
 0x273   :  { %4062 = vmatpush3.bf16.msra.mxu1 %v5414_v16 }
 0x274   :  { %4063 = vmatprep.subr.bf16.mxu1 %v6191_v6 }
 0x277   :  { %4065 = vmatpush3.bf16.msra.mxu1 %v5426_v36 }
 0x278   :  { %4066 = vmatprep.subr.bf16.mxu1 %v6191_v6 }
 0x27b   :  { %4068 = vmatpush3.bf16.msra.mxu1 %v5436_v58  ;;  %v6247_v58 = vmov 0.0  }
 0x27c   :  { %4069 = vmatprep.subr.bf16.mxu1 %v6191_v6 }
 0x27f   :  { %4071 = vmatpush3.bf16.msra.mxu1 %v5446_v21  ;;  %v5476_v21 = vpack.c.bf16 %v515_v31, %v514_v30  ;;  %v518_v30 = vld [vmem:[%s6161_s5 + $0x290] sm:$0xff]  ;;  %v519_v31 = vld [vmem:[%s6161_s5 + $0x298] sm:$0xff] }
 0x280   :  { %4072 = vmatprep.subr.bf16.mxu1 %v6191_v6 }
 0x281   :  { %6246 = vst [vmem:[#allocation30_spill] sm:$0xff] %v5476_v21 }
 0x283   :  { %4074 = vmatpush3.bf16.msra.mxu1 %v5456_v53  ;;  %v5486_v53 = vpack.c.bf16 %v517_v46, %v516_v7  ;;  %v520_v7 = vld [vmem:[%s6161_s5 + $0x2a0] sm:$0xff]  ;;  %v521_v46 = vld [vmem:[%s6161_s5 + $0x2a8] sm:$0xff] }
 0x284   :  { %4075 = vmatprep.subr.bf16.mxu1 %v6191_v6 }
 0x287   :  { %4077 = vmatpush3.bf16.msra.mxu1 %v5466_v3  ;;  %v5497_v3 = vpack.c.bf16 %v519_v31, %v518_v30  ;;  %v522_v30 = vld [vmem:[%s6161_s5 + $0x2b0] sm:$0xff]  ;;  %v523_v31 = vld [vmem:[%s6161_s5 + $0x2b8] sm:$0xff] }
 0x288   :  { %4078 = vmatprep.subr.bf16.mxu1 %v6191_v6 }
 0x28b   :  { %4080 = vmatpush3.bf16.msra.mxu1 %v5476_v21  ;;  %v5519_v21 = vpack.c.bf16 %v523_v31, %v522_v30  ;;  %v526_v30 = vld [vmem:[%s6161_s5 + $0x2d0] sm:$0xff]  ;;  %v527_v31 = vld [vmem:[%s6161_s5 + $0x2d8] sm:$0xff] }
 0x28c   :  { %4081 = vmatprep.subr.bf16.mxu1 %v6191_v6  ;;  %v5539_v16 = vpack.c.bf16 %v527_v31, %v526_v30  ;;  %v530_v30 = vld [vmem:[%s6161_s5 + $0x2f0] sm:$0xff]  ;;  %v531_v31 = vld [vmem:[%s6161_s5 + $0x2f8] sm:$0xff] }
 0x28d   :  { %v5559_v51 = vpack.c.bf16 %v531_v31, %v530_v30  ;;  %v534_v30 = vld [vmem:[%s6161_s5 + $0x310] sm:$0xff]  ;;  %v535_v31 = vld [vmem:[%s6161_s5 + $0x318] sm:$0xff] }
 0x28e   :  { %3330 = vmatmul.mubr.f32.vlgmr.msra.gmra.mrb[4].mxu1 %v5154_v37  ;;  %v5509_v37 = vpack.c.bf16 %v521_v46, %v520_v7  ;;  %v524_v7 = vld [vmem:[%s6161_s5 + $0x2c0] sm:$0xff]  ;;  %v525_v46 = vld [vmem:[%s6161_s5 + $0x2c8] sm:$0xff]  ;;  %v5580_v15 = vpack.c.bf16 %v535_v31, %v534_v30  ;;  %v538_v30 = vld [vmem:[%s6161_s5 + $0x330] sm:$0xff] }
 0x28f   :  { %4083 = vmatpush3.bf16.msra.mxu1 %v5486_v53  ;;  %3364 = vmatprep.mubr.msk.f32.mxu1 %vm4508_vm0, %v6247_v58  ;;  %v5529_v36 = vpack.c.bf16 %v525_v46, %v524_v7  ;;  %v528_v7 = vld [vmem:[%s6161_s5 + $0x2e0] sm:$0xff]  ;;  %v529_v46 = vld [vmem:[%s6161_s5 + $0x2e8] sm:$0xff]  ;;  %v539_v31 = vld [vmem:[%s6161_s5 + $0x338] sm:$0xff] }
 0x290   :  { %4084 = vmatprep.subr.bf16.mxu1 %v6191_v6  ;;  %v5549_v63 = vpack.c.bf16 %v529_v46, %v528_v7  ;;  %v532_v7 = vld [vmem:[%s6161_s5 + $0x300] sm:$0xff]  ;;  %v533_v46 = vld [vmem:[%s6161_s5 + $0x308] sm:$0xff]  ;;  %6249 = vst [vmem:[#allocation32_spill] sm:$0xff] %v5580_v15 }
 0x291   :  { %v5569_v24 = vpack.c.bf16 %v533_v46, %v532_v7  ;;  %v536_v7 = vld [vmem:[%s6161_s5 + $0x320] sm:$0xff]  ;;  %v537_v46 = vld [vmem:[%s6161_s5 + $0x328] sm:$0xff] }
 0x293   :  { %4086 = vmatpush3.bf16.msra.mxu1 %v5497_v3  ;;  %6248 = vst [vmem:[#allocation31_spill] sm:$0xff] %v5569_v24 }
 0x294   :  { %4087 = vmatprep.subr.bf16.mxu1 %v6191_v6 }
 0x297   :  { %4089 = vmatpush3.bf16.msra.mxu1 %v5509_v37 }
 0x298   :  { %4090 = vmatprep.subr.bf16.mxu1 %v6191_v6 }
 0x29b   :  { %4092 = vmatpush3.bf16.msra.mxu1 %v5519_v21 }
 0x29c   :  { %4093 = vmatprep.subr.bf16.mxu1 %v6191_v6 }
 0x29f   :  { %4095 = vmatpush3.bf16.msra.mxu1 %v5529_v36 }
 0x2a0   :  { %4096 = vmatprep.subr.bf16.mxu1 %v6191_v6 }
 0x2a3   :  { %4098 = vmatpush3.bf16.msra.mxu1 %v5539_v16 }
 0x2a4   :  { %4099 = vmatprep.subr.bf16.mxu1 %v6191_v6 }
 0x2a7   :  { %4101 = vmatpush3.bf16.msra.mxu1 %v5549_v63 }
 0x2a8   :  { %4102 = vmatprep.subr.bf16.mxu1 %v6191_v6 }
 0x2ab   :  { %4104 = vmatpush3.bf16.msra.mxu1 %v5559_v51 }
 0x2ac   :  { %4105 = vmatprep.subr.bf16.mxu1 %v6191_v6 }
 0x2ae   :  { %3365 = vmatmul.mubr.f32.vlgmr.msra.gmra.mrb[4].mxu1 %v5157_v41  ;;  %v5592_v41 = vpack.c.bf16 %v537_v46, %v536_v7  ;;  %v540_v7 = vld [vmem:[%s6161_s5 + $0x340] sm:$0xff]  ;;  %v541_v46 = vld [vmem:[%s6161_s5 + $0x348] sm:$0xff] }
 0x2af   :  { %4107 = vmatpush3.bf16.msra.mxu1 %v5569_v24  ;;  %3399 = vmatprep.mubr.msk.f32.mxu1 %vm4508_vm0, %v6247_v58  ;;  %v5602_v24 = vpack.c.bf16 %v539_v31, %v538_v30  ;;  %v542_v30 = vld [vmem:[%s6161_s5 + $0x350] sm:$0xff]  ;;  %v543_v31 = vld [vmem:[%s6161_s5 + $0x358] sm:$0xff] }
 0x2b0   :  { %4108 = vmatprep.subr.bf16.mxu1 %v6191_v6  ;;  %6250 = vst [vmem:[#allocation33_spill] sm:$0xff] %v5592_v41 }
 0x2b1   :  { %6251 = vst [vmem:[#allocation34_spill] sm:$0xff] %v5602_v24 }
 0x2b3   :  { %4110 = vmatpush3.bf16.msra.mxu1 %v5580_v15  ;;  %v5612_v15 = vpack.c.bf16 %v541_v46, %v540_v7  ;;  %v544_v7 = vld [vmem:[%s6161_s5 + $0x360] sm:$0xff]  ;;  %v545_v46 = vld [vmem:[%s6161_s5 + $0x368] sm:$0xff] }
 0x2b4   :  { %4111 = vmatprep.subr.bf16.mxu1 %v6191_v6 }
 0x2b5   :  { %6252 = vst [vmem:[#allocation35_spill] sm:$0xff] %v5612_v15 }
 0x2b7   :  { %4113 = vmatpush3.bf16.msra.mxu1 %v5592_v41  ;;  %v5622_v41 = vpack.c.bf16 %v543_v31, %v542_v30  ;;  %v546_v30 = vld [vmem:[%s6161_s5 + $0x370] sm:$0xff]  ;;  %v547_v31 = vld [vmem:[%s6161_s5 + $0x378] sm:$0xff] }
 0x2b8   :  { %4114 = vmatprep.subr.bf16.mxu1 %v6191_v6 }
 0x2b9   :  { %6253 = vst [vmem:[#allocation36_spill] sm:$0xff] %v5622_v41 }
 0x2bb   :  { %4116 = vmatpush3.bf16.msra.mxu1 %v5602_v24  ;;  %v5632_v24 = vpack.c.bf16 %v545_v46, %v544_v7  ;;  %v548_v7 = vld [vmem:[%s6161_s5 + $0x380] sm:$0xff]  ;;  %v549_v46 = vld [vmem:[%s6161_s5 + $0x388] sm:$0xff] }
 0x2bc   :  { %4117 = vmatprep.subr.bf16.mxu1 %v6191_v6 }
 0x2bd   :  { %6254 = vst [vmem:[#allocation37_spill] sm:$0xff] %v5632_v24 }
 0x2bf   :  { %4119 = vmatpush3.bf16.msra.mxu1 %v5612_v15  ;;  %v5642_v15 = vpack.c.bf16 %v547_v31, %v546_v30  ;;  %v550_v30 = vld [vmem:[%s6161_s5 + $0x390] sm:$0xff]  ;;  %v551_v31 = vld [vmem:[%s6161_s5 + $0x398] sm:$0xff] }
 0x2c0   :  { %4120 = vmatprep.subr.bf16.mxu1 %v6191_v6 }
 0x2c1   :  { %6255 = vst [vmem:[#allocation38_spill] sm:$0xff] %v5642_v15 }
 0x2c3   :  { %4122 = vmatpush3.bf16.msra.mxu1 %v5622_v41  ;;  %v5652_v41 = vpack.c.bf16 %v549_v46, %v548_v7  ;;  %v552_v7 = vld [vmem:[%s6161_s5 + $0x3a0] sm:$0xff]  ;;  %v553_v46 = vld [vmem:[%s6161_s5 + $0x3a8] sm:$0xff] }
 0x2c4   :  { %4123 = vmatprep.subr.bf16.mxu1 %v6191_v6 }
 0x2c7   :  { %4125 = vmatpush3.bf16.msra.mxu1 %v5632_v24  ;;  %v5663_v24 = vpack.c.bf16 %v551_v31, %v550_v30  ;;  %v554_v30 = vld [vmem:[%s6161_s5 + $0x3b0] sm:$0xff]  ;;  %v555_v31 = vld [vmem:[%s6161_s5 + $0x3b8] sm:$0xff] }
 0x2c8   :  { %4126 = vmatprep.subr.bf16.mxu1 %v6191_v6 }
 0x2cb   :  { %4128 = vmatpush3.bf16.msra.mxu1 %v5642_v15  ;;  %v5685_v15 = vpack.c.bf16 %v555_v31, %v554_v30  ;;  %v558_v30 = vld [vmem:[%s6161_s5 + $0x3d0] sm:$0xff]  ;;  %v559_v31 = vld [vmem:[%s6161_s5 + $0x3d8] sm:$0xff] }
 0x2cc   :  { %4129 = vmatprep.subr.bf16.mxu1 %v6191_v6  ;;  %v5705_v56 = vpack.c.bf16 %v559_v31, %v558_v30  ;;  %v562_v30 = vld [vmem:[%s6161_s5 + $0x3f0] sm:$0xff]  ;;  %v563_v31 = vld [vmem:[%s6161_s5 + $0x3f8] sm:$0xff] }
 0x2cd   :  { %v5725_v25 = vpack.c.bf16 %v563_v31, %v562_v30  ;;  %v1247_v30 = vld [vmem:[%s6162_s2] sm:$0xff]  ;;  %v1248_v31 = vld [vmem:[%s6162_s2 + $0x8] sm:$0xff] }
 0x2ce   :  { %3400 = vmatmul.mubr.f32.vlgmr.msra.gmra.mrb[4].mxu1 %v5160_v44  ;;  %v5675_v44 = vpack.c.bf16 %v553_v46, %v552_v7  ;;  %v556_v7 = vld [vmem:[%s6161_s5 + $0x3c0] sm:$0xff]  ;;  %v557_v46 = vld [vmem:[%s6161_s5 + $0x3c8] sm:$0xff] }
 0x2cf   :  { %4131 = vmatpush3.bf16.msra.mxu1 %v5652_v41  ;;  %3434 = vmatprep.mubr.msk.f32.mxu1 %vm4508_vm0, %v6247_v58  ;;  %v5695_v0 = vpack.c.bf16 %v557_v46, %v556_v7  ;;  %v560_v7 = vld [vmem:[%s6161_s5 + $0x3e0] sm:$0xff]  ;;  %v561_v46 = vld [vmem:[%s6161_s5 + $0x3e8] sm:$0xff] }
 0x2d0   :  { %4132 = vmatprep.subr.bf16.mxu1 %v6191_v6  ;;  %v5715_v34 = vpack.c.bf16 %v561_v46, %v560_v7 }
 0x2d3   :  { %4134 = vmatpush3.bf16.msra.mxu1 %v5663_v24 }
 0x2d4   :  { %4135 = vmatprep.subr.bf16.mxu1 %v6191_v6 }
 0x2d7   :  { %4137 = vmatpush3.bf16.msra.mxu1 %v5675_v44 }
 0x2d8   :  { %4138 = vmatprep.subr.bf16.mxu1 %v6191_v6 }
 0x2db   :  { %4140 = vmatpush3.bf16.msra.mxu1 %v5685_v15 }
 0x2dc   :  { %4141 = vmatprep.subr.bf16.mxu1 %v6191_v6 }
 0x2df   :  { %4143 = vmatpush3.bf16.msra.mxu1 %v5695_v0 }
 0x2e0   :  { %4144 = vmatprep.subr.bf16.mxu1 %v6191_v6 }
 0x2e3   :  { %4146 = vmatpush3.bf16.msra.mxu1 %v5705_v56 }
 0x2e4   :  { %4147 = vmatprep.subr.bf16.mxu1 %v6191_v6 }
 0x2e7   :  { %4149 = vmatpush3.bf16.msra.mxu1 %v5715_v34 }
 0x2e8   :  { %4150 = vmatprep.subr.bf16.mxu1 %v6191_v6 }
 0x2eb   :  { %4152 = vmatpush3.bf16.msra.mxu1 %v5725_v25 }
 0x2ec   :  { %4153 = vmatprep.subr.bf16.mxu1 %v6191_v6  ;;  %v5746_v6 = vpack.c.bf16 %v1248_v31, %v1247_v30  ;;  %v1329_v30 = vld [vmem:[%s6163_s3 + $0x18] sm:$0xff] }
 0x2ed   :  { %v1337_v31 = vld [vmem:[%s6163_s3 + $0x58] sm:$0xff] }
 0x2ee   :  { %3435 = vmatmul.mubr.f32.vlgmr.msra.gmra.mrb[4].mxu1 %v5163_v45  ;;  %v1249_v45 = vld [vmem:[%s6162_s2 + $0x10] sm:$0xff]  ;;  %6257 = vst [vmem:[#allocation40_spill] sm:$0xff] %v5746_v6 }
 0x2ef   :  { %3445 = vmatprep.mubr.msk.f32.mxu1 %vm4508_vm0, %v6247_v58  ;;  %4155 = vmatpush3.bf16.msra.mxu1 %v5746_v6 }
 0x2f0   :  { %4156 = vmatprep.subr.bf16.mxu1 %v6259_v12 }
 0x3c1   :  { %v5733_v7 = vpop.f32.mrb[4].mxu1 }
 0x3c2   :  { %6256 = vst [vmem:[#allocation39_spill] sm:$0xff] %v5733_v7  ;;  %v3436_v46 = vpop.f32.mrb[5].mxu1  ;;  %v1241_v19 = vsel %vm1240_vm1, %v5733_v7, -inf }
 0x3c3   :  { %1242 = vmax.xlane.f32.xlu0 %v1241_v19  ;;  %v1250_v46 = vld [vmem:[%s6162_s2 + $0x18] sm:$0xff] }
 0x3c4   :  { %v5752_v19 = vpack.c.bf16 %v1250_v46, %v1249_v45  ;;  %v5765_v45 = vpack.c.bf16 %v1337_v31, %v1329_v30  ;;  %v1326_v30 = vld [vmem:[%s6163_s3] sm:$0xff] }
 0x3c5   :  { %v1334_v31 = vld [vmem:[%s6163_s3 + $0x40] sm:$0xff] }
 0x3c6   :  { %6258 = vst [vmem:[#allocation41_spill] sm:$0xff] %v5752_v19  ;;  %4158 = vmatpush3.bf16.msra.mxu1 %v5752_v19  ;;  %6260 = vst [vmem:[#allocation42_spill] sm:$0xff] %v5765_v45  ;;  %4168 = vmatprep.subr.bf16.mxu0 %v5765_v45  ;;  %v5790_v6 = vpack.c.bf16 %v1334_v31, %v1326_v30  ;;  %v1344_v30 = vld [vmem:[%s6163_s3 + $0x90] sm:$0xff] }
 0x3c8   :  { %6263 = vst [vmem:[#allocation45_spill] sm:$0xff] %v5790_v6 }
 0x450   :  { %v1243_v4 = vpop.xlane.xlu0 %1242 }
 0x451   :  { %v1244_v60 = vsub.f32 %v5733_v7, %v1243_v4  ;;  %v1328_v4 = vld [vmem:[%s6163_s3 + $0x10] sm:$0xff] }
 0x452   :  { %v1336_v7 = vld [vmem:[%s6163_s3 + $0x50] sm:$0xff] }
 0x453   :  { %v1245_v55 = vmul.f32 1.442695, %v1244_v60  ;;  %v1327_v60 = vld [vmem:[%s6163_s3 + $0x8] sm:$0xff]  ;;  %v5788_v19 = vpack.c.bf16 %v1336_v7, %v1328_v4 }
 0x454   :  { %v1343_v7 = vld [vmem:[%s6163_s3 + $0x88] sm:$0xff] }
 0x455   :  { %4490 = vpow2.f32 %v1245_v55  ;;  %v1335_v55 = vld [vmem:[%s6163_s3 + $0x48] sm:$0xff]  ;;  %6262 = vst [vmem:[#allocation44_spill] sm:$0xff] %v5788_v19  ;;  %4170 = vmatpush1.bf16.msra.mxu0 %v5788_v19  ;;  %v1352_v19 = vld [vmem:[%s6163_s3 + $0xd0] sm:$0xff] }
 0x456   :  { %v5776_v46 = vpack.c.bf16 %v1335_v55, %v1327_v60  ;;  %v1345_v60 = vld [vmem:[%s6163_s3 + $0x98] sm:$0xff]  ;;  %v1351_v4 = vld [vmem:[%s6163_s3 + $0xc8] sm:$0xff]  ;;  %v5824_v45 = vpack.c.bf16 %v1352_v19, %v1344_v30 }
 0x457   :  { %v1353_v55 = vld [vmem:[%s6163_s3 + $0xd8] sm:$0xff]  ;;  %v5812_v31 = vpack.c.bf16 %v1351_v4, %v1343_v7  ;;  %v1331_v7 = vld [vmem:[%s6163_s3 + $0x28] sm:$0xff] }
 0x458   :  { %6261 = vst [vmem:[#allocation43_spill] sm:$0xff] %v5776_v46  ;;  %4160 = vmatprep.subr.bf16.mxu1 %v5776_v46  ;;  %v5801_v28 = vpack.c.bf16 %v1353_v55, %v1345_v60  ;;  %v1342_v60 = vld [vmem:[%s6163_s3 + $0x80] sm:$0xff]  ;;  %6266 = vst [vmem:[#allocation48_spill] sm:$0xff] %v5824_v45  ;;  %v1339_v4 = vld [vmem:[%s6163_s3 + $0x68] sm:$0xff] }
 0x459   :  { %6265 = vst [vmem:[#allocation47_spill] sm:$0xff] %v5812_v31  ;;  %v1350_v55 = vld [vmem:[%s6163_s3 + $0xc0] sm:$0xff]  ;;  %v5837_v46 = vpack.c.bf16 %v1339_v4, %v1331_v7  ;;  %v1347_v7 = vld [vmem:[%s6163_s3 + $0xa8] sm:$0xff] }
 0x45a   :  { %6264 = vst [vmem:[#allocation46_spill] sm:$0xff] %v5801_v28  ;;  %4172 = vmatprep.subr.bf16.mxu0 %v5801_v28  ;;  %v1355_v4 = vld [vmem:[%s6163_s3 + $0xe8] sm:$0xff]  ;;  %v1346_v28 = vld [vmem:[%s6163_s3 + $0xa0] sm:$0xff] }
 0x45b   :  { %4174 = vmatpush1.bf16.msra.mxu0 %v5824_v45  ;;  %6268 = vst [vmem:[#allocation50_spill] sm:$0xff] %v5837_v46 }
 0x45c   :  { %4176 = vmatprep.subr.bf16.mxu0 %v5837_v46 }
 0x45f   :  { %v4491_v32 = vpop.eup %4490 }
 0x460   :  { %3446 = vmatmul.mubr.msk.f32.vlgmr.msra.gmra.mrb[6].mxu1 %vm1240_vm1, %v4491_v32 }
 0x461   :  { %1425 = vmatprep.mubr.f32.mxu1 %v6247_v58  ;;  %4162 = vmatpush1.bf16.msra.mxu1 %v5790_v6  ;;  %v5826_v6 = vpack.c.bf16 %v1350_v55, %v1342_v60  ;;  %v1330_v60 = vld [vmem:[%s6163_s3 + $0x20] sm:$0xff] }
 0x462   :  { %4164 = vmatprep.subr.bf16.mxu1 %v5812_v31  ;;  %v1338_v55 = vld [vmem:[%s6163_s3 + $0x60] sm:$0xff]  ;;  %v1333_v31 = vld [vmem:[%s6163_s3 + $0x38] sm:$0xff] }
 0x463   :  { %6267 = vst [vmem:[#allocation49_spill] sm:$0xff] %v5826_v6  ;;  %v5853_v45 = vpack.c.bf16 %v1338_v55, %v1330_v60  ;;  %v1341_v60 = vld [vmem:[%s6163_s3 + $0x78] sm:$0xff]  ;;  %v1332_v55 = vld [vmem:[%s6163_s3 + $0x30] sm:$0xff] }
 0x465   :  { %4166 = vmatpush1.bf16.msra.mxu1 %v5826_v6  ;;  %v1354_v6 = vld [vmem:[%s6163_s3 + $0xe0] sm:$0xff] }
 0x466   :  { %4335 = vmatprep.subr.bf16.mxu1 %v6259_v12 }
 0x533   :  { %v1320_v19 = vpop.f32.mrb[6].mxu1 }
 0x534   :  { %4492 = vrcp.f32 %v1320_v19  ;;  %v3447_v30 = vpop.f32.mrb[7].mxu1 }
 0x535   :  { %v5855_v30 = vpack.c.bf16 %v1355_v4, %v1347_v7  ;;  %v1340_v7 = vld [vmem:[%s6163_s3 + $0x70] sm:$0xff] }
 0x536   :  { %v1348_v4 = vld [vmem:[%s6163_s3 + $0xb0] sm:$0xff] }
 0x53e   :  { %v4493_v46 = vpop.eup %4492 }
 0x53f   :  { %v1325_v19 = vmul.f32 %v4493_v46, %v4491_v32  ;;  %v5872_v32 = vpack.c.bf16 %v1354_v6, %v1346_v28  ;;  %v5876_v46 = vpack.c.bf16 %v1341_v60, %v1333_v31  ;;  %v1349_v6 = vld [vmem:[%s6163_s3 + $0xb8] sm:$0xff]  ;;  %v5895_v31 = vpack.c.bf16 %v1340_v7, %v1332_v55  ;;  %v1356_v60 = vld [vmem:[%s6163_s3 + $0xf0] sm:$0xff] }
 0x540   :  { %v1357_v28 = vld [vmem:[%s6163_s3 + $0xf8] sm:$0xff]  ;;  %v5910_v55 = vpack.c.bf16 %v1356_v60, %v1348_v4 }
 0x541   :  { %2780 = vmatmul.mubr.msk.f32.vlgmr.msra.gmra.mrb[8].mxu1 %vm1240_vm1, %v1325_v19  ;;  %2781 = vmatmul.mubr.msk.f32.vlgmr.msra.gmra.mrb[6].mxu0 %vm1240_vm1, %v1325_v19 }
 0x542   :  { %4178 = vmatpush1.bf16.msra.mxu0 %v5853_v45  ;;  %1567 = vmatprep.mubr.f32.mxu0 %v6247_v58 }
 0x543   :  { %4180 = vmatprep.subr.bf16.mxu0 %v5855_v30  ;;  %4337 = vmatpush3.bf16.msra.mxu1 %v5486_v53  ;;  %v5898_v53 = vpack.c.bf16 %v1357_v28, %v1349_v6 }
 0x544   :  { %4338 = vmatprep.subr.bf16.mxu1 %v6259_v12  ;;  %3690 = vmatprep.mubr.msk.f32.mxu1 %vm4508_vm0, %v6247_v58 }
 0x546   :  { %4182 = vmatpush1.bf16.msra.mxu0 %v5872_v32 }
 0x547   :  { %4184 = vmatprep.subr.bf16.mxu0 %v5876_v46  ;;  %4340 = vmatpush3.bf16.msra.mxu1 %v5497_v3 }
 0x548   :  { %4341 = vmatprep.subr.bf16.mxu1 %v6259_v12 }
 0x549   :  { %2782 = vmatmul.mubr.msk.f32.vlgmr.msra.gmra.mrb[8].mxu0 %vm1240_vm1, %v1325_v19 }
 0x54a   :  { %4186 = vmatpush1.bf16.msra.mxu0 %v5895_v31  ;;  %1638 = vmatprep.mubr.f32.mxu0 %v6247_v58 }
 0x54b   :  { %4188 = vmatprep.subr.bf16.mxu0 %v5898_v53  ;;  %4343 = vmatpush3.bf16.msra.mxu1 %v5509_v37 }
 0x54c   :  { %4344 = vmatprep.subr.bf16.mxu1 %v6259_v12 }
 0x54e   :  { %4190 = vmatpush1.bf16.msra.mxu0 %v5910_v55 }
 0x54f   :  { %4191 = vmatprep.subr.bf16.mxu0 %v6259_v12  ;;  %4346 = vmatpush3.bf16.msra.mxu1 %v5519_v21 }
 0x550   :  { %4347 = vmatprep.subr.bf16.mxu1 %v6259_v12 }
 0x551   :  { %2783 = vmatmul.mubr.msk.f32.vlgmr.msra.gmra.mrb[10].mxu0 %vm1240_vm1, %v1325_v19 }
 0x552   :  { %4193 = vmatpush3.bf16.msra.mxu0 %v4952_v10  ;;  %3480 = vmatprep.mubr.msk.f32.mxu0 %vm4508_vm0, %v6247_v58 }
 0x553   :  { %4194 = vmatprep.subr.bf16.mxu0 %v6259_v12  ;;  %4349 = vmatpush3.bf16.msra.mxu1 %v5529_v36 }
 0x554   :  { %4350 = vmatprep.subr.bf16.mxu1 %v6259_v12 }
 0x556   :  { %4196 = vmatpush3.bf16.msra.mxu0 %v4958_v11 }
 0x557   :  { %4197 = vmatprep.subr.bf16.mxu0 %v6259_v12  ;;  %4352 = vmatpush3.bf16.msra.mxu1 %v5539_v16 }
 0x558   :  { %4353 = vmatprep.subr.bf16.mxu1 %v6259_v12 }
 0x55a   :  { %4199 = vmatpush3.bf16.msra.mxu0 %v4968_v14 }
 0x55b   :  { %4200 = vmatprep.subr.bf16.mxu0 %v6259_v12  ;;  %4355 = vmatpush3.bf16.msra.mxu1 %v5549_v63 }
 0x55c   :  { %4356 = vmatprep.subr.bf16.mxu1 %v6259_v12 }
 0x55e   :  { %4202 = vmatpush3.bf16.msra.mxu0 %v4978_v17 }
 0x55f   :  { %4203 = vmatprep.subr.bf16.mxu0 %v6259_v12  ;;  %4358 = vmatpush3.bf16.msra.mxu1 %v5559_v51 }
 0x560   :  { %4383 = vmatprep.subr.bf16.mxu1 %v6259_v12 }
 0x562   :  { %4205 = vmatpush3.bf16.msra.mxu0 %v4988_v20 }
 0x563   :  { %4206 = vmatprep.subr.bf16.mxu0 %v6259_v12 }
 0x566   :  { %4208 = vmatpush3.bf16.msra.mxu0 %v4999_v23 }
 0x567   :  { %4209 = vmatprep.subr.bf16.mxu0 %v6259_v12 }
 0x56a   :  { %4211 = vmatpush3.bf16.msra.mxu0 %v5009_v26 }
 0x56b   :  { %4212 = vmatprep.subr.bf16.mxu0 %v6259_v12 }
 0x56e   :  { %4214 = vmatpush3.bf16.msra.mxu0 %v5019_v29 }
 0x56f   :  { %4215 = vmatprep.subr.bf16.mxu0 %v6259_v12 }
 0x614   :  { %v1427_v3 = vpop.f32.mrb[8].mxu1  ;;  %v1498_v51 = vpop.f32.mrb[6].mxu0 }
 0x615   :  { %v1645_v63 = vmul.f32 %v1427_v3, %v5056_v39  ;;  %v1648_v16 = vmul.f32 %v1498_v51, %v5062_v42  ;;  %v1429_v36 = vpop.f32.mrb[9].mxu1  ;;  %v1500_v21 = vpop.f32.mrb[7].mxu0 }
 0x616   :  { %v1646_v37 = vmul.f32 %v1429_v36, %v5058_v40  ;;  %v1650_v19 = vmul.f32 %v1500_v21, %v5064_v43 }
 0x618   :  { %v1647_v7 = vadd.f32 %v1646_v37, %v1645_v63  ;;  %v6291_v37 = vld [vmem:[#allocation31_spill] sm:$0xff] }
 0x61a   :  { %v1649_v6 = vadd.f32 %v1648_v16, %v1647_v7  ;;  %v6293_v7 = vld [vmem:[#allocation33_spill] sm:$0xff] }
 0x61c   :  { %v1651_v28 = vadd.f32 %v1650_v19, %v1649_v6  ;;  %v1569_v4 = vpop.f32.mrb[8].mxu0  ;;  %v6292_v19 = vld [vmem:[#allocation32_spill] sm:$0xff]  ;;  %v6294_v6 = vld [vmem:[#allocation34_spill] sm:$0xff] }
 0x61d   :  { %v1652_v60 = vmul.f32 %v1569_v4, %v5068_v47  ;;  %v1571_v29 = vpop.f32.mrb[9].mxu0  ;;  %v6296_v4 = vld [vmem:[#allocation36_spill] sm:$0xff] }
 0x61e   :  { %v1654_v26 = vmul.f32 %v1571_v29, %v5071_v49 }
 0x61f   :  { %v1653_v23 = vadd.f32 %v1652_v60, %v1651_v28  ;;  %v6295_v28 = vld [vmem:[#allocation35_spill] sm:$0xff]  ;;  %v6297_v60 = vld [vmem:[#allocation37_spill] sm:$0xff] }
 0x621   :  { %v1655_v20 = vadd.f32 %v1654_v26, %v1653_v23 }
 0x624   :  { %v1640_v3 = vpop.f32.mrb[10].mxu0 }
 0x625   :  { %v1656_v51 = vmul.f32 %v1640_v3, %v5073_v50  ;;  %v1642_v17 = vpop.f32.mrb[11].mxu0  ;;  %v6298_v3 = vld [vmem:[#allocation38_spill] sm:$0xff] }
 0x626   :  { %v1658_v14 = vmul.f32 %v1642_v17, %v5076_v52 }
 0x627   :  { %v1657_v36 = vadd.f32 %v1656_v51, %v1655_v20  ;;  %v6299_v51 = vld [vmem:[#allocation40_spill] sm:$0xff] }
 0x629   :  { %v1659_v11 = vadd.f32 %v1658_v14, %v1657_v36  ;;  %v6300_v36 = vld [vmem:[#allocation41_spill] sm:$0xff] }
 0x62b   :  { %v1660_v21 = vmul.f32 %v1659_v11, %v1659_v11 }
 0x62d   :  { %3481 = vmatmul.mubr.f32.vlgmr.msra.gmra.mrb[12].mxu0 %v1660_v21  ;;  %v6301_v21 = vld [vmem:[#allocation43_spill] sm:$0xff] }
 0x62e   :  { %4217 = vmatpush3.bf16.msra.mxu0 %v5035_v33  ;;  %3515 = vmatprep.mubr.msk.f32.mxu0 %vm4508_vm0, %v6247_v58 }
 0x62f   :  { %4218 = vmatprep.subr.bf16.mxu0 %v6259_v12 }
 0x632   :  { %4220 = vmatpush3.bf16.msra.mxu0 %v5041_v35 }
 0x633   :  { %4221 = vmatprep.subr.bf16.mxu0 %v6259_v12 }
 0x636   :  { %4223 = vmatpush3.bf16.msra.mxu0 %v5051_v38 }
 0x637   :  { %4224 = vmatprep.subr.bf16.mxu0 %v6259_v12 }
 0x63a   :  { %4226 = vmatpush3.bf16.msra.mxu0 %v5087_v59 }
 0x63b   :  { %4227 = vmatprep.subr.bf16.mxu0 %v6259_v12 }
 0x63e   :  { %4229 = vmatpush3.bf16.msra.mxu0 %v5097_v62 }
 0x63f   :  { %4230 = vmatprep.subr.bf16.mxu0 %v6259_v12 }
 0x642   :  { %4232 = vmatpush3.bf16.msra.mxu0 %v5107_v1 }
 0x643   :  { %4233 = vmatprep.subr.bf16.mxu0 %v6259_v12 }
 0x646   :  { %4235 = vmatpush3.bf16.msra.mxu0 %v5117_v5 }
 0x647   :  { %4236 = vmatprep.subr.bf16.mxu0 %v6259_v12 }
 0x64a   :  { %4238 = vmatpush3.bf16.msra.mxu0 %v5127_v9 }
 0x64b   :  { %4239 = vmatprep.subr.bf16.mxu0 %v6259_v12 }
 0x700   :  { %v1727_v14 = vpop.f32.mrb[12].mxu0 }
 0x701   :  { %v1731_v17 = vadd.f32 1.0, %v1727_v14  ;;  %v3482_v20 = vpop.f32.mrb[13].mxu0  ;;  %v1735_v23 = vadd.f32 1e-07, %v1727_v14 }
 0x703   :  { %4494 = vrcp.f32 %v1731_v17 }
 0x704   :  { %4496 = vrsqrt.f32 %v1735_v23 }
 0x70d   :  { %v4495_v26 = vpop.eup %4494 }
 0x70e   :  { %v1733_v29 = vmul.f32 %v4495_v26, %v1727_v14  ;;  %v4497_v35 = vpop.eup %4496 }
 0x710   :  { %v1734_v33 = vmul.f32 %v1733_v29, %v1659_v11 }
 0x712   :  { %v1737_v38 = vmul.f32 %v4497_v35, %v1734_v33 }
 0x714   :  { %v1739_v59 = vmul.f32 %v1737_v38, %v5058_v40  ;;  %v2096_v62 = vmul.f32 %v1737_v38, %v5071_v49  ;;  %v1738_v1 = vmul.f32 %v1737_v38, %v5056_v39  ;;  %v2240_v5 = vmul.f32 %v1737_v38, %v5076_v52 }
 0x715   :  { %v1880_v9 = vmul.f32 %v1737_v38, %v5062_v42  ;;  %v5979_v63 = vmul.f32 %v1737_v38, %v5064_v43  ;;  %v5982_v16 = vmul.f32 %v1737_v38, %v5068_v47  ;;  %v5985_v11 = vmul.f32 %v1737_v38, %v5073_v50 }
 0x716   :  { %3516 = vmatmul.mubr.f32.vlgmr.msra.gmra.mrb[14].mxu0 %v1739_v59  ;;  %3691 = vmatmul.mubr.f32.vlgmr.msra.gmra.mrb[10].mxu1 %v2096_v62 }
 0x717   :  { %4241 = vmatpush3.bf16.msra.mxu0 %v5137_v27  ;;  %4385 = vmatpush3.bf16.msra.mxu1 %v5652_v41  ;;  %v6269_v27 = vld [vmem:[#allocation9_spill] sm:$0xff] }
 0x718   :  { %4242 = vmatprep.subr.bf16.mxu0 %v6259_v12  ;;  %4386 = vmatprep.subr.bf16.mxu1 %v6259_v12  ;;  %v6285_v41 = vld [vmem:[#allocation25_spill] sm:$0xff] }
 0x719   :  { %3550 = vmatprep.mubr.msk.f32.mxu0 %vm4508_vm0, %v6247_v58  ;;  %3760 = vmatprep.mubr.msk.f32.mxu1 %vm4508_vm0, %v6247_v58 }
 0x71b   :  { %4244 = vmatpush3.bf16.msra.mxu0 %v5166_v48  ;;  %4388 = vmatpush3.bf16.msra.mxu1 %v5663_v24  ;;  %v6270_v48 = vld [vmem:[#allocation10_spill] sm:$0xff]  ;;  %v6284_v24 = vld [vmem:[#allocation24_spill] sm:$0xff] }
 0x71c   :  { %4245 = vmatprep.subr.bf16.mxu0 %v6259_v12  ;;  %4389 = vmatprep.subr.bf16.mxu1 %v6259_v12 }
 0x71f   :  { %4247 = vmatpush3.bf16.msra.mxu0 %v5178_v54  ;;  %4391 = vmatpush3.bf16.msra.mxu1 %v5675_v44  ;;  %v6271_v54 = vld [vmem:[#allocation11_spill] sm:$0xff]  ;;  %v6286_v44 = vld [vmem:[#allocation26_spill] sm:$0xff] }
 0x720   :  { %4248 = vmatprep.subr.bf16.mxu0 %v6259_v12  ;;  %4392 = vmatprep.subr.bf16.mxu1 %v6259_v12 }
 0x723   :  { %4250 = vmatpush3.bf16.msra.mxu0 %v5188_v57  ;;  %4394 = vmatpush3.bf16.msra.mxu1 %v5685_v15  ;;  %v6272_v57 = vld [vmem:[#allocation12_spill] sm:$0xff]  ;;  %v6283_v15 = vld [vmem:[#allocation23_spill] sm:$0xff] }
 0x724   :  { %4251 = vmatprep.subr.bf16.mxu0 %v6259_v12  ;;  %4395 = vmatprep.subr.bf16.mxu1 %v6259_v12 }
 0x727   :  { %4253 = vmatpush3.bf16.msra.mxu0 %v5198_v61  ;;  %4397 = vmatpush3.bf16.msra.mxu1 %v5695_v0  ;;  %v6273_v61 = vld [vmem:[#allocation13_spill] sm:$0xff]  ;;  %v6282_v0 = vld [vmem:[#allocation22_spill] sm:$0xff] }
 0x728   :  { %4254 = vmatprep.subr.bf16.mxu0 %v6259_v12  ;;  %4398 = vmatprep.subr.bf16.mxu1 %v6259_v12 }
 0x72b   :  { %4256 = vmatpush3.bf16.msra.mxu0 %v5208_v2  ;;  %4400 = vmatpush3.bf16.msra.mxu1 %v5705_v56  ;;  %v6274_v2 = vld [vmem:[#allocation14_spill] sm:$0xff]  ;;  %v6281_v56 = vld [vmem:[#allocation21_spill] sm:$0xff] }
 0x72c   :  { %4257 = vmatprep.subr.bf16.mxu0 %v6259_v12  ;;  %4401 = vmatprep.subr.bf16.mxu1 %v6259_v12 }
 0x72f   :  { %4259 = vmatpush3.bf16.msra.mxu0 %v5218_v8  ;;  %4403 = vmatpush3.bf16.msra.mxu1 %v5715_v34  ;;  %v6275_v8 = vld [vmem:[#allocation15_spill] sm:$0xff]  ;;  %v6280_v34 = vld [vmem:[#allocation20_spill] sm:$0xff] }
 0x730   :  { %4260 = vmatprep.subr.bf16.mxu0 %v6259_v12  ;;  %4404 = vmatprep.subr.bf16.mxu1 %v6259_v12 }
 0x733   :  { %4262 = vmatpush3.bf16.msra.mxu0 %v5228_v13  ;;  %4406 = vmatpush3.bf16.msra.mxu1 %v5725_v25  ;;  %v6276_v13 = vld [vmem:[#allocation16_spill] sm:$0xff]  ;;  %v6279_v25 = vld [vmem:[#allocation19_spill] sm:$0xff] }
 0x734   :  { %4263 = vmatprep.subr.bf16.mxu0 %v6259_v12  ;;  %4438 = vmatprep.subr.bf16.mxu1 %v5876_v46  ;;  %v6287_v46 = vld [vmem:[#allocation27_spill] sm:$0xff] }
 0x736   :  { %3551 = vmatmul.mubr.f32.vlgmr.msra.gmra.mrb[16].mxu0 %v1738_v1  ;;  %3761 = vmatmul.mubr.f32.vlgmr.msra.gmra.mrb[12].mxu1 %v2240_v5 }
 0x737   :  { %4265 = vmatpush3.bf16.msra.mxu0 %v5238_v18  ;;  %3585 = vmatprep.mubr.msk.f32.mxu0 %vm4508_vm0, %v6247_v58  ;;  %v6277_v18 = vld [vmem:[#allocation17_spill] sm:$0xff] }
 0x738   :  { %4266 = vmatprep.subr.bf16.mxu0 %v6259_v12  ;;  %4440 = vmatpush1.bf16.msra.mxu1 %v5895_v31  ;;  %v6288_v31 = vld [vmem:[#allocation28_spill] sm:$0xff] }
 0x739   :  { %4442 = vmatprep.subr.bf16.mxu1 %v5898_v53  ;;  %2674 = vmatprep.mubr.f32.mxu1 %v6247_v58  ;;  %v6289_v53 = vld [vmem:[#allocation29_spill] sm:$0xff] }
 0x73b   :  { %4268 = vmatpush3.bf16.msra.mxu0 %v5248_v22  ;;  %v6278_v22 = vld [vmem:[#allocation18_spill] sm:$0xff] }
 0x73c   :  { %4269 = vmatprep.subr.bf16.mxu0 %v6259_v12  ;;  %4444 = vmatpush1.bf16.msra.mxu1 %v5910_v55  ;;  %v6290_v55 = vld [vmem:[#allocation30_spill] sm:$0xff] }
 0x73f   :  { %4271 = vmatpush3.bf16.msra.mxu0 %v6269_v27 }
 0x740   :  { %4272 = vmatprep.subr.bf16.mxu0 %v6259_v12 }
 0x743   :  { %4274 = vmatpush3.bf16.msra.mxu0 %v6270_v48 }
 0x744   :  { %4275 = vmatprep.subr.bf16.mxu0 %v6259_v12 }
 0x747   :  { %4277 = vmatpush3.bf16.msra.mxu0 %v6271_v54 }
 0x748   :  { %4278 = vmatprep.subr.bf16.mxu0 %v6259_v12 }
 0x74b   :  { %4280 = vmatpush3.bf16.msra.mxu0 %v6272_v57 }
 0x74c   :  { %4281 = vmatprep.subr.bf16.mxu0 %v6259_v12 }
 0x74f   :  { %4283 = vmatpush3.bf16.msra.mxu0 %v6273_v61 }
 0x750   :  { %4284 = vmatprep.subr.bf16.mxu0 %v6259_v12 }
 0x753   :  { %4286 = vmatpush3.bf16.msra.mxu0 %v6274_v2 }
 0x754   :  { %4287 = vmatprep.subr.bf16.mxu0 %v6259_v12 }
 0x756   :  { %3586 = vmatmul.mubr.f32.vlgmr.msra.gmra.mrb[18].mxu0 %v1880_v9 }
 0x757   :  { %4289 = vmatpush3.bf16.msra.mxu0 %v6275_v8  ;;  %3620 = vmatprep.mubr.msk.f32.mxu0 %vm4508_vm0, %v6247_v58  ;;  %v6302_v8 = vld [vmem:[#allocation39_spill] sm:$0xff] }
 0x758   :  { %4290 = vmatprep.subr.bf16.mxu0 %v6259_v12 }
 0x75b   :  { %4292 = vmatpush3.bf16.msra.mxu0 %v6276_v13 }
 0x75c   :  { %4293 = vmatprep.subr.bf16.mxu0 %v6259_v12 }
 0x75f   :  { %4295 = vmatpush3.bf16.msra.mxu0 %v6277_v18 }
 0x760   :  { %4296 = vmatprep.subr.bf16.mxu0 %v6259_v12 }
 0x763   :  { %4298 = vmatpush3.bf16.msra.mxu0 %v6278_v22 }
 0x764   :  { %4299 = vmatprep.subr.bf16.mxu0 %v6259_v12 }
 0x767   :  { %4301 = vmatpush3.bf16.msra.mxu0 %v6279_v25 }
 0x768   :  { %4302 = vmatprep.subr.bf16.mxu0 %v6259_v12 }
 0x76b   :  { %4304 = vmatpush3.bf16.msra.mxu0 %v6280_v34 }
 0x76c   :  { %4305 = vmatprep.subr.bf16.mxu0 %v6259_v12 }
 0x76f   :  { %4307 = vmatpush3.bf16.msra.mxu0 %v6281_v56 }
 0x770   :  { %4308 = vmatprep.subr.bf16.mxu0 %v6259_v12 }
 0x773   :  { %4310 = vmatpush3.bf16.msra.mxu0 %v6282_v0  ;;  %v6303_v0 = vld [vmem:[#allocation45_spill] sm:$0xff] }
 0x774   :  { %4311 = vmatprep.subr.bf16.mxu0 %v6259_v12 }
 0x776   :  { %3621 = vmatmul.mubr.f32.vlgmr.msra.gmra.mrb[20].mxu0 %v5979_v63 }
 0x777   :  { %4313 = vmatpush3.bf16.msra.mxu0 %v6283_v15  ;;  %3655 = vmatprep.mubr.msk.f32.mxu0 %vm4508_vm0, %v6247_v58  ;;  %v6304_v15 = vld [vmem:[#allocation47_spill] sm:$0xff] }
 0x778   :  { %4314 = vmatprep.subr.bf16.mxu0 %v6259_v12 }
 0x77b   :  { %4316 = vmatpush3.bf16.msra.mxu0 %v6284_v24  ;;  %v6305_v24 = vld [vmem:[#allocation49_spill] sm:$0xff] }
 0x77c   :  { %4317 = vmatprep.subr.bf16.mxu0 %v6259_v12 }
 0x77f   :  { %4319 = vmatpush3.bf16.msra.mxu0 %v6285_v41  ;;  %v6306_v41 = vld [vmem:[#allocation42_spill] sm:$0xff] }
 0x780   :  { %4320 = vmatprep.subr.bf16.mxu0 %v6259_v12 }
 0x783   :  { %4322 = vmatpush3.bf16.msra.mxu0 %v6286_v44 }
 0x784   :  { %4323 = vmatprep.subr.bf16.mxu0 %v6259_v12 }
 0x787   :  { %4325 = vmatpush3.bf16.msra.mxu0 %v6287_v46 }
 0x788   :  { %4326 = vmatprep.subr.bf16.mxu0 %v6259_v12 }
 0x78b   :  { %4328 = vmatpush3.bf16.msra.mxu0 %v6288_v31 }
 0x78c   :  { %4329 = vmatprep.subr.bf16.mxu0 %v6259_v12 }
 0x78f   :  { %4331 = vmatpush3.bf16.msra.mxu0 %v6289_v53 }
 0x790   :  { %4332 = vmatprep.subr.bf16.mxu0 %v6259_v12 }
 0x793   :  { %4334 = vmatpush3.bf16.msra.mxu0 %v6290_v55  ;;  %v6307_v55 = vld [vmem:[#allocation44_spill] sm:$0xff] }
 0x794   :  { %4359 = vmatprep.subr.bf16.mxu0 %v6259_v12 }
 0x796   :  { %3656 = vmatmul.mubr.f32.vlgmr.msra.gmra.mrb[22].mxu0 %v5982_v16 }
 0x797   :  { %4361 = vmatpush3.bf16.msra.mxu0 %v6291_v37  ;;  %3725 = vmatprep.mubr.msk.f32.mxu0 %vm4508_vm0, %v6247_v58  ;;  %v6308_v37 = vld [vmem:[#allocation46_spill] sm:$0xff] }
 0x798   :  { %4362 = vmatprep.subr.bf16.mxu0 %v6259_v12 }
 0x79b   :  { %4364 = vmatpush3.bf16.msra.mxu0 %v6292_v19  ;;  %v6309_v19 = vld [vmem:[#allocation48_spill] sm:$0xff] }
 0x79c   :  { %4365 = vmatprep.subr.bf16.mxu0 %v6259_v12 }
 0x79f   :  { %4367 = vmatpush3.bf16.msra.mxu0 %v6293_v7  ;;  %v6310_v7 = vld [vmem:[#allocation50_spill] sm:$0xff] }
 0x7a0   :  { %4368 = vmatprep.subr.bf16.mxu0 %v6259_v12 }
 0x7a3   :  { %4370 = vmatpush3.bf16.msra.mxu0 %v6294_v6  ;;  %v6311_v6 = vld [vmem:[#allocation2_spill] sm:$0xff] }
 0x7a4   :  { %4371 = vmatprep.subr.bf16.mxu0 %v6259_v12 }
 0x7a7   :  { %4373 = vmatpush3.bf16.msra.mxu0 %v6295_v28  ;;  %v6317_v28 = vld [vmem:[#allocation8_spill] sm:$0xff] }
 0x7a8   :  { %4374 = vmatprep.subr.bf16.mxu0 %v6259_v12 }
 0x7ab   :  { %4376 = vmatpush3.bf16.msra.mxu0 %v6296_v4 }
 0x7ac   :  { %4377 = vmatprep.subr.bf16.mxu0 %v6259_v12 }
 0x7af   :  { %4379 = vmatpush3.bf16.msra.mxu0 %v6297_v60 }
 0x7b0   :  { %4380 = vmatprep.subr.bf16.mxu0 %v6259_v12 }
 0x7b3   :  { %4382 = vmatpush3.bf16.msra.mxu0 %v6298_v3 }
 0x7b4   :  { %4407 = vmatprep.subr.bf16.mxu0 %v6259_v12 }
 0x7b6   :  { %3726 = vmatmul.mubr.f32.vlgmr.msra.gmra.mrb[24].mxu0 %v5985_v11 }
 0x7b7   :  { %4409 = vmatpush3.bf16.msra.mxu0 %v6299_v51  ;;  %3771 = vmatprep.mubr.msk.f32.mxu0 %vm4508_vm0, %v6247_v58 }
 0x7b8   :  { %4410 = vmatprep.subr.bf16.mxu0 %v6259_v12 }
 0x7bb   :  { %4412 = vmatpush3.bf16.msra.mxu0 %v6300_v36 }
 0x7bc   :  { %4414 = vmatprep.subr.bf16.mxu0 %v6301_v21 }
 0x7e9   :  { %v1806_v14 = vpop.f32.mrb[14].mxu0  ;;  %v2163_v17 = vpop.f32.mrb[10].mxu1 }
 0x7ea   :  { %v3517_v20 = vpop.f32.mrb[15].mxu0  ;;  %v3692_v23 = vpop.f32.mrb[11].mxu1 }
 0x809   :  { %v1876_v26 = vpop.f32.mrb[16].mxu0  ;;  %v2307_v29 = vpop.f32.mrb[12].mxu1 }
 0x80a   :  { %v1877_v33 = vadd.f32 %v1876_v26, %v1806_v14  ;;  %v3552_v35 = vpop.f32.mrb[17].mxu0  ;;  %v3762_v38 = vpop.f32.mrb[13].mxu1 }
 0x829   :  { %v1947_v59 = vpop.f32.mrb[18].mxu0 }
 0x82a   :  { %v1951_v62 = vadd.f32 %v1947_v59, %v1877_v33  ;;  %v3587_v1 = vpop.f32.mrb[19].mxu0 }
 0x849   :  { %v2019_v5 = vpop.f32.mrb[20].mxu0 }
 0x84a   :  { %v2023_v9 = vadd.f32 %v2019_v5, %v1951_v62  ;;  %v3622_v63 = vpop.f32.mrb[21].mxu0 }
 0x869   :  { %v2091_v16 = vpop.f32.mrb[22].mxu0 }
 0x86a   :  { %v2095_v11 = vadd.f32 %v2091_v16, %v2023_v9  ;;  %v3657_v27 = vpop.f32.mrb[23].mxu0 }
 0x86c   :  { %v2167_v48 = vadd.f32 %v2163_v17, %v2095_v11 }
 0x889   :  { %v2235_v54 = vpop.f32.mrb[24].mxu0 }
 0x88a   :  { %v2239_v57 = vadd.f32 %v2235_v54, %v2167_v48  ;;  %v3727_v61 = vpop.f32.mrb[25].mxu0 }
 0x88c   :  { %v2311_v2 = vadd.f32 %v2307_v29, %v2239_v57 }
 0x88e   :  { %v2312_v13 = vadd.f32 %v2311_v2, %v6302_v8 }
 0x890   :  { %v2313_v18 = vsel %vm1240_vm1, %v2312_v13, -inf }
 0x891   :  { %2314 = vmax.xlane.f32.xlu0 %v2313_v18 }
 0x91e   :  { %v2315_v22 = vpop.xlane.xlu0 %2314 }
 0x91f   :  { %v2316_v25 = vsub.f32 %v2312_v13, %v2315_v22 }
 0x921   :  { %v2317_v34 = vmul.f32 1.442695, %v2316_v25 }
 0x923   :  { %4498 = vpow2.f32 %v2317_v34 }
 0x92d   :  { %v4499_v56 = vpop.eup %4498 }
 0x92e   :  { %3772 = vmatmul.mubr.msk.f32.vlgmr.msra.gmra.mrb[26].mxu0 %vm1240_vm1, %v4499_v56 }
 0x92f   :  { %4416 = vmatpush1.bf16.msra.mxu0 %v6303_v0  ;;  %2461 = vmatprep.mubr.f32.mxu0 %v6247_v58 }
 0x930   :  { %4418 = vmatprep.subr.bf16.mxu0 %v6304_v15 }
 0x933   :  { %4420 = vmatpush1.bf16.msra.mxu0 %v6305_v24 }
 0x934   :  { %4422 = vmatprep.subr.bf16.mxu0 %v6306_v41 }
 0xa01   :  { %v2388_v44 = vpop.f32.mrb[26].mxu0 }
 0xa02   :  { %4500 = vrcp.f32 %v2388_v44  ;;  %v3773_v46 = vpop.f32.mrb[27].mxu0 }
 0xa0c   :  { %v4501_v31 = vpop.eup %4500 }
 0xa0d   :  { %v2393_v53 = vmul.f32 %v4501_v31, %v4499_v56 }
 0xa0f   :  { %2785 = vmatmul.mubr.msk.f32.vlgmr.msra.gmra.mrb[28].mxu0 %vm1240_vm1, %v2393_v53  ;;  %2788 = vmatmul.mubr.msk.f32.vlgmr.msra.gmra.mrb[14].mxu1 %vm1240_vm1, %v2393_v53 }
 0xa10   :  { %4424 = vmatpush1.bf16.msra.mxu0 %v6307_v55  ;;  %2532 = vmatprep.mubr.f32.mxu0 %v6247_v58 }
 0xa11   :  { %4426 = vmatprep.subr.bf16.mxu0 %v6308_v37 }
 0xa14   :  { %4428 = vmatpush1.bf16.msra.mxu0 %v6309_v19 }
 0xa15   :  { %4430 = vmatprep.subr.bf16.mxu0 %v6310_v7 }
 0xa17   :  { %2786 = vmatmul.mubr.msk.f32.vlgmr.msra.gmra.mrb[30].mxu0 %vm1240_vm1, %v2393_v53 }
 0xa18   :  { %4432 = vmatpush1.bf16.msra.mxu0 %v5853_v45  ;;  %2603 = vmatprep.mubr.f32.mxu0 %v6247_v58  ;;  %v6312_v45 = vld [vmem:[#allocation3_spill] sm:$0xff] }
 0xa19   :  { %4434 = vmatprep.subr.bf16.mxu0 %v5855_v30  ;;  %v6313_v30 = vld [vmem:[#allocation4_spill] sm:$0xff] }
 0xa1c   :  { %4436 = vmatpush1.bf16.msra.mxu0 %v5872_v32  ;;  %v6314_v32 = vld [vmem:[#allocation5_spill] sm:$0xff] }
 0xa1d   :  { %4445 = vmatprep.subr.bf16.mxu0 %v6259_v12 }
 0xa1f   :  { %2787 = vmatmul.mubr.msk.f32.vlgmr.msra.gmra.mrb[32].mxu0 %vm1240_vm1, %v2393_v53 }
 0xa20   :  { %4447 = vmatpush3.bf16.msra.mxu0 %v4952_v10  ;;  %3806 = vmatprep.mubr.msk.f32.mxu0 %vm4508_vm0, %v6247_v58  ;;  %v6315_v10 = vld [vmem:[#allocation6_spill] sm:$0xff]  ;;  %v6316_v58 = vld [vmem:[#allocation7_spill] sm:$0xff] }
 0xa21   :  { %4448 = vmatprep.subr.bf16.mxu0 %v6259_v12 }
 0xa24   :  { %4450 = vmatpush3.bf16.msra.mxu0 %v6311_v6 }
 0xa25   :  { %4451 = vmatprep.subr.bf16.mxu0 %v6259_v12 }
 0xa28   :  { %4453 = vmatpush3.bf16.msra.mxu0 %v6312_v45 }
 0xa29   :  { %4454 = vmatprep.subr.bf16.mxu0 %v6259_v12 }
 0xa2c   :  { %4456 = vmatpush3.bf16.msra.mxu0 %v6313_v30 }
 0xa2d   :  { %4457 = vmatprep.subr.bf16.mxu0 %v6259_v12 }
 0xa30   :  { %4459 = vmatpush3.bf16.msra.mxu0 %v6314_v32 }
 0xa31   :  { %4460 = vmatprep.subr.bf16.mxu0 %v6259_v12 }
 0xa34   :  { %4462 = vmatpush3.bf16.msra.mxu0 %v6315_v10 }
 0xa35   :  { %4463 = vmatprep.subr.bf16.mxu0 %v6259_v12 }
 0xa38   :  { %4465 = vmatpush3.bf16.msra.mxu0 %v6316_v58 }
 0xa39   :  { %4466 = vmatprep.subr.bf16.mxu0 %v6259_v12 }
 0xa3c   :  { %4468 = vmatpush3.bf16.msra.mxu0 %v6317_v28 }
 0xae2   :  { %v2463_v4 = vpop.f32.mrb[28].mxu0  ;;  %v2676_v60 = vpop.f32.mrb[14].mxu1 }
 0xae3   :  { %v2681_v3 = vmul.f32 %v2463_v4, %v5056_v39  ;;  %v2692_v51 = vmul.f32 %v2676_v60, %v5073_v50  ;;  %v2465_v36 = vpop.f32.mrb[29].mxu0  ;;  %v2678_v21 = vpop.f32.mrb[15].mxu1 }
 0xae4   :  { %v2682_v14 = vmul.f32 %v2465_v36, %v5058_v40  ;;  %v2694_v17 = vmul.f32 %v2678_v21, %v5076_v52 }
 0xae6   :  { %v2683_v20 = vadd.f32 %v2682_v14, %v2681_v3 }
 0xaea   :  { %v2534_v23 = vpop.f32.mrb[30].mxu0 }
 0xaeb   :  { %v2684_v26 = vmul.f32 %v2534_v23, %v5062_v42  ;;  %v2536_v29 = vpop.f32.mrb[31].mxu0 }
 0xaec   :  { %v2686_v12 = vmul.f32 %v2536_v29, %v5064_v43 }
 0xaed   :  { %v2685_v33 = vadd.f32 %v2684_v26, %v2683_v20 }
 0xaef   :  { %v2687_v35 = vadd.f32 %v2686_v12, %v2685_v33 }
 0xaf2   :  { %v2605_v38 = vpop.f32.mrb[32].mxu0 }
 0xaf3   :  { %v2688_v39 = vmul.f32 %v2605_v38, %v5068_v47  ;;  %v2607_v59 = vpop.f32.mrb[33].mxu0 }
 0xaf4   :  { %v2690_v50 = vmul.f32 %v2607_v59, %v5071_v49 }
 0xaf5   :  { %v2689_v62 = vadd.f32 %v2688_v39, %v2687_v35 }
 0xaf7   :  { %v2691_v1 = vadd.f32 %v2690_v50, %v2689_v62 }
 0xaf9   :  { %v2693_v40 = vadd.f32 %v2692_v51, %v2691_v1 }
 0xafb   :  { %v2695_v5 = vadd.f32 %v2694_v17, %v2693_v40 }
 0xafd   :  { %v2696_v52 = vmul.f32 %v2695_v5, %v2695_v5 }
 0xaff   :  { %3807 = vmatmul.mubr.f32.vlgmr.msra.gmra.mrb[34].mxu0 %v2696_v52 }
 0xbd2   :  { %v2763_v9 = vpop.f32.mrb[34].mxu0 }
 0xbd3   :  { %v2767_v63 = vadd.f32 1.0, %v2763_v9  ;;  %v3808_v42 = vpop.f32.mrb[35].mxu0  ;;  %v2771_v16 = vadd.f32 1e-07, %v2763_v9 }
 0xbd5   :  { %4502 = vrcp.f32 %v2767_v63 }
 0xbd6   :  { %4504 = vrsqrt.f32 %v2771_v16 }
 0xbdf   :  { %v4503_v43 = vpop.eup %4502 }
 0xbe0   :  { %v2769_v11 = vmul.f32 %v4503_v43, %v2763_v9  ;;  %v4505_v48 = vpop.eup %4504 }
 0xbe2   :  { %v2770_v27 = vmul.f32 %v2769_v11, %v2695_v5 }
 0xbe4   :  { %v2773_v47 = vmul.f32 %v4505_v48, %v2770_v27 }
 0xbe6   :  { %2774 = vst [vmem:[%s6164_s6] sm:$0xff] %v2773_v47 }

</bundles_post_ra>
